<compile_context>
chip_gen: v5e
topology: v5e:2x2
jax: 0.10.0
libtpu: 0.0.40
codegen_flags: <defaults>
</compile_context>

<pallas_src>
import numpy as np
import jax
import jax.numpy as jnp
from jax import lax
from jax.experimental import pallas as pl
from jax.experimental.pallas import tpu as pltpu

# ---------------- scaled-down hyper-parameters (same relations as the module) ----------
CLASS_NUM = 2
F1 = 4
D = 2
F2 = 8                                   # == F1 * D
KERN_LEN = 16
CHANS = 8
C2 = F1 * D                              # 8
K3 = 32                                  # layer3 depthwise kernel length (hard-coded)
PADL1 = (KERN_LEN - 1) // 2 + 1          # 8
PADR1 = (KERN_LEN - 1) // 2              # 7
PADL3, PADR3 = (K3 - 1) // 2 + 1, (K3 - 1) // 2   # 16, 15 (hard-coded in the module)
POOL1, POOL2 = 16, 32

T = 544                                  # input time length
T1 = (T - 1) // POOL1 + 1                # 34 pooled columns after layer2
T2 = (T1 - 1) // POOL2 + 1               # 2 pooled columns after layer3
TC = T1                                  # only the surviving 34 columns are computed
KC = KERN_LEN * CHANS                    # 128 contraction depth of fused layer1+layer2

# column offsets inside the single packed (8, TAIL_W) f32 tail-parameter buffer
_SH2 = 0
_W3P = 1
_SH3 = 1 + C2
_WL0 = 2 + C2
_WL1 = 2 + C2 + F2
_BL = 2 + C2 + 2 * F2
TAIL_W = 32

assert F2 == C2, "layer3 depthwise conv needs F2 == F1*D"
assert KERN_LEN == POOL1, "conv window must equal pool stride for the reshape-im2col"
assert F2 * T2 == F2 * 2, "time length must produce exactly F2*2 flattened features"


# ------------------------------ fused Pallas kernel ------------------------------------

def _eegnet_kernel(x_ref, w12_ref, tap_ref, s_ref, tail_ref, out_ref):
    """Whole forward pass for one batch tile of Bt elements.  grid = (B // Bt,)."""
    f32 = jnp.float32
    elu = lambda v: jnp.where(v > 0, v, jnp.exp(jnp.minimum(v, 0.0)) - 1.0)

    bt = s_ref.shape[1] // 2                                     # static tile size

    tail = tail_ref[...]                                         # (8, TAIL_W) f32
    sh2 = tail[:, _SH2:_SH2 + 1]                                 # (C2, 1) folded BN2 shift
    w3pk = tail[:, _W3P:_W3P + C2]                               # (F2, C2) BN3-scaled pointwise
    sh3 = tail[:, _SH3:_SH3 + 1]                                 # (F2, 1) folded BN3 shift
    wl0 = tail[:, _WL0:_WL0 + F2]                                # (8, F2); rows>=CLASS_NUM are 0
    wl1 = tail[:, _WL1:_WL1 + F2]                                # (8, F2)
    blp = tail[:, _BL:_BL + 1]                                   # (8, 1);  rows>=CLASS_NUM are 0

    # layer1 (temporal conv) + BN1 + layer2 (grouped spatial conv) + BN2, with the
    # AvgPool(1,16) hoisted: one lane-dense bf16 MXU matmul for the whole batch tile.
    y2 = jnp.dot(w12_ref[...], x_ref[...],
                 preferred_element_type=f32)                     # (C2, Bt*TC) f32
    y2 = elu(y2 + sh2)
    # F.dropout(0.5): identity.  # TODO(synk): stochastic dropout not reproduced.

    # layer3 depthwise (1,32) conv + AvgPool(1,32): only the two survivor columns exist,
    # and they read disjoint halves of each batch's 34 pooled columns.  Tap multiply on
    # the VPU + one segment-sum MXU matmul keeps the tail fully batched (no per-element
    # loops or lane reductions).
    prod = (y2 * tap_ref[...]).astype(jnp.bfloat16)              # (C2, Bt*TC)
    d = jnp.dot(prod, s_ref[...], preferred_element_type=f32)    # (C2, 2*Bt)

    # pointwise (1,1) conv + BN3 (folded) + ELU, still batched across the tile.
    pw = elu(jnp.dot(w3pk, d, preferred_element_type=f32) + sh3)  # (F2, 2*Bt)
    # F.dropout(0.5): identity.  # TODO(synk): stochastic dropout not reproduced.

    # flatten + Linear(F2*2 -> class_num): columns [0,Bt) hold layer-3 output column 0,
    # [Bt,2Bt) hold column 1, so the Linear splits into two tiny matmuls.
    logits = (jnp.dot(wl0, pw[:, :bt], preferred_element_type=f32)
              + jnp.dot(wl1, pw[:, bt:], preferred_element_type=f32)
              + blp)                                             # (8, Bt); rows>=CLASS_NUM junk-free 0
    out_ref[0, :, :] = logits[:CLASS_NUM, :]                     # lane-dense (CLASS, Bt) store


# ------------------------------ offline parameter folding ------------------------------

def fold_params(p):
    """Fold eval-mode BN (eps=0 per BatchNorm2d(C, False), with a tiny var floor for
    numerical safety), conv biases and the conv1*conv2 composition into kernel-ready
    tensors.  Runs once, outside the jit hot path."""
    vfloor = 1e-12
    sc1 = p['bn1_g'] / jnp.sqrt(jnp.maximum(p['bn1_v'], vfloor))
    sh1 = p['bn1_b'] - p['bn1_m'] * sc1
    sc2 = p['bn2_g'] / jnp.sqrt(jnp.maximum(p['bn2_v'], vfloor))
    sc3 = p['bn3_g'] / jnp.sqrt(jnp.maximum(p['bn3_v'], vfloor))

    w1m = p['w1'].reshape(F1, KERN_LEN)                     # (F1, K)
    w2g = p['w2'].reshape(F1, D, CHANS)                     # (F1, D, Chans)

    # (conv1 o conv2) with BN1/BN2 scales == one dense (C2, K*Chans) matrix, stored bf16
    # since it feeds the bf16 MXU stream.
    w12 = jnp.einsum('fk,fdc->fdkc', w1m, w2g)
    w12 = w12 * (sc1[:, None] * sc2.reshape(F1, D))[:, :, None, None]
    w12 = w12.reshape(C2, KC).astype(jnp.bfloat16)
    s2 = w2g.sum(-1).reshape(C2)
    sh2 = sc2 * (jnp.repeat(sh1, D) * s2 + p['w2_bias'] - p['bn2_m']) + p['bn2_b']

    # layer3 depthwise taps for the two AvgPool(1,32) survivor columns.  They read
    # disjoint pooled columns, so one (C2, TC) row holds both:
    #   cols 0..15  -> survivor 0 via taps 16..31,   cols 16..33 -> survivor 1 via taps 0..17
    w3d = p['w3d'].reshape(F2, K3)
    tap = jnp.zeros((C2, TC), jnp.float32)
    tap = tap.at[:, 0:PADL3].set(w3d[:, PADL3:K3])
    tap = tap.at[:, PADL3:TC].set(w3d[:, 0:TC - PADL3])

    w3p = p['w3p'].reshape(F2, F2)
    w3pk = w3p * sc3[:, None]                                # (F2, C2), BN3 scale folded
    sh3 = sc3 * (w3p @ p['w3d_bias'] + p['w3p_bias'] - p['bn3_m']) + p['bn3_b']

    wl = p['wl'].reshape(CLASS_NUM, F2, T2)                  # flatten order: feature-major

    # pack every tiny tail parameter into one (8, TAIL_W) buffer -> single in_spec.
    tail = jnp.zeros((8, TAIL_W), jnp.float32)
    tail = tail.at[:, _SH2].set(sh2)
    tail = tail.at[:, _W3P:_W3P + C2].set(w3pk)
    tail = tail.at[:, _SH3].set(sh3)
    tail = tail.at[:CLASS_NUM, _WL0:_WL0 + F2].set(wl[:, :, 0])
    tail = tail.at[:CLASS_NUM, _WL1:_WL1 + F2].set(wl[:, :, 1])
    tail = tail.at[:CLASS_NUM, _BL].set(p['bl'])
    return dict(w12=w12, tap=tap, tail=tail)


# ------------------------------ forward (wrapper) ---------------------------------------

def _pick_bt(b):
    """Batch-tile size.  Bt*TC must be a multiple of 128 (Bt % 64 == 0) unless Bt == B.
    Prefer >=2 grid steps (keeps both v7x TensorCores busy) with tiles large enough to
    amortize the ~0.35us per-step cost; capped at 128 because the segment-sum matrix
    grows as Bt^2."""
    for cand in (128, 64):
        if b % cand == 0 and b // cand >= 2:
            return cand
    return b


def eegnet_forward(x, fp):
    """x: (B, 1, Chans, T) NCHW float32 -> logits (B, CLASS_NUM)."""
    b = x.shape[0]
    assert x.shape[1:] == (1, CHANS, T)
    bt = _pick_bt(b)
    nsteps = b // bt

    # im2col for the pooled layer-1/2 output columns only (AvgPool(1,16) hoisted into the
    # conv).  Column j of batch n needs exactly the j-th contiguous 16-sample block of the
    # left-padded signal, so one fused pad+reshape+transpose(+bf16 cast) emits the
    # activations directly in the final lane-dense (KC, B*TC) layout the kernel streams;
    # the trailing 8 samples only fed pooled-away conv outputs and are dropped.
    xp = jnp.pad(x[:, 0, :, :TC * KERN_LEN - PADL1], ((0, 0), (0, 0), (PADL1, 0)))
    xcol = (xp.reshape(b, CHANS, TC, KERN_LEN)
              .transpose(3, 1, 0, 2)                        # (K, Chans, B, TC)
              .reshape(KC, b * TC)
              .astype(jnp.bfloat16))

    # depthwise taps tiled to the batch tile (constant index_map -> fetched once).
    tap_tile = jnp.tile(fp['tap'], (1, bt))                 # (C2, Bt*TC) f32

    # 0/1 segment-sum matrix: column p*Bt+n sums the tap-weighted lanes of batch n that
    # feed layer-3 survivor column p (p=0 -> j<16, p=1 -> j>=16).  Built at trace time.
    s_np = np.zeros((bt * TC, 2 * bt), np.float32)
    for n in range(bt):
        s_np[n * TC:n * TC + PADL3, n] = 1.0
        s_np[n * TC + PADL3:(n + 1) * TC, bt + n] = 1.0
    seg = jnp.asarray(s_np, jnp.bfloat16)                   # exact 0/1 in bf16

    out = pl.pallas_call(
        _eegnet_kernel,
        out_shape=jax.ShapeDtypeStruct((nsteps, CLASS_NUM, bt), jnp.float32),
        grid=(nsteps,),
        in_specs=[
            pl.BlockSpec((KC, bt * TC), lambda i: (0, i)),        # streamed activations
            pl.BlockSpec((C2, KC), lambda i: (0, 0)),             # fused conv1*conv2*BN weights
            pl.BlockSpec((C2, bt * TC), lambda i: (0, 0)),        # tiled layer-3 taps
            pl.BlockSpec((bt * TC, 2 * bt), lambda i: (0, 0)),    # segment-sum matrix
            pl.BlockSpec((8, TAIL_W), lambda i: (0, 0)),          # packed tail params
        ],
        out_specs=pl.BlockSpec((1, CLASS_NUM, bt), lambda i: (i, 0, 0)),
        compiler_params=pltpu.CompilerParams(dimension_semantics=("parallel",)),
    )(xcol, fp['w12'], tap_tile, seg, fp['tail'])

    # tiny (~1 KB) relayout of the logits back to (B, CLASS_NUM)
    return out.transpose(0, 2, 1).reshape(b, CLASS_NUM)


# ------------------------------ pure-JAX reference (for checking) -----------------------

def reference_forward(x, p):
    elu = lambda v: jnp.where(v > 0, v, jnp.exp(jnp.minimum(v, 0.0)) - 1.0)

    def bn(v, g, bb, m, var):
        sc = g / jnp.sqrt(var)                      # eps == 0 (BatchNorm2d(C, False))
        return (v - m[None, :, None, None]) * sc[None, :, None, None] + bb[None, :, None, None]

    dn = ('NCHW', 'OIHW', 'NCHW')
    hp = lax.Precision.HIGHEST
    y = jnp.pad(x, ((0, 0), (0, 0), (0, 0), (PADL1, PADR1)))
    y = lax.conv_general_dilated(y, p['w1'], (1, 1), 'VALID',
                                 dimension_numbers=dn, precision=hp)
    y = bn(y, p['bn1_g'], p['bn1_b'], p['bn1_m'], p['bn1_v'])
    y = lax.conv_general_dilated(y, p['w2'], (1, 1), 'VALID', dimension_numbers=dn,
                                 feature_group_count=F1, precision=hp)
    y = y + p['w2_bias'][None, :, None, None]
    y = bn(y, p['bn2_g'], p['bn2_b'], p['bn2_m'], p['bn2_v'])
    y = y[:, :, ::POOL1, ::POOL1]                   # AvgPool2d(1, 16)
    y = elu(y)
    y = jnp.pad(y, ((0, 0), (0, 0), (0, 0), (PADL3, PADR3)))
    y = lax.conv_general_dilated(y, p['w3d'], (1, 1), 'VALID', dimension_numbers=dn,
                                 feature_group_count=C2, precision=hp)
    y = y + p['w3d_bias'][None, :, None, None]
    y = lax.conv_general_dilated(y, p['w3p'], (1, 1), 'VALID',
                                 dimension_numbers=dn, precision=hp)
    y = y + p['w3p_bias'][None, :, None, None]
    y = bn(y, p['bn3_g'], p['bn3_b'], p['bn3_m'], p['bn3_v'])
    y = y[:, :, ::POOL2, ::POOL2]                   # AvgPool2d(1, 32)
    y = elu(y)
    y = y.reshape(y.shape[0], -1)
    return jnp.matmul(y, p['wl'].T, precision=hp) + p['bl'][None, :]


# ------------------------------ deterministic parameter init ----------------------------

def init_params(key):
    ks = jax.random.split(key, 21)
    n = lambda k, shape, s=0.1: s * jax.random.normal(k, shape, jnp.float32)
    p = {}
    p['w1'] = n(ks[0], (F1, 1, 1, KERN_LEN))            # Conv2d(1, F1, (1,KL)), bias=False
    p['bn1_g'] = 1.0 + n(ks[1], (F1,))
    p['bn1_b'] = n(ks[2], (F1,))
    p['bn1_m'] = n(ks[3], (F1,), 0.05)
    p['bn1_v'] = 0.5 + jax.random.uniform(ks[4], (F1,), jnp.float32)
    p['w2'] = n(ks[5], (C2, 1, CHANS, 1))               # Conv2d(F1, F1*D, (Chans,1), groups=F1)
    p['w2_bias'] = n(ks[6], (C2,))
    p['bn2_g'] = 1.0 + n(ks[7], (C2,))
    p['bn2_b'] = n(ks[8], (C2,))
    p['bn2_m'] = n(ks[9], (C2,), 0.05)
    p['bn2_v'] = 0.5 + jax.random.uniform(ks[10], (C2,), jnp.float32)
    p['w3d'] = n(ks[11], (F2, 1, 1, K3))                # depthwise Conv2d(C2, F2, (1,32))
    p['w3d_bias'] = n(ks[12], (F2,))
    p['w3p'] = n(ks[13], (F2, F2, 1, 1))                # pointwise Conv2d(F2, F2, 1)
    p['w3p_bias'] = n(ks[14], (F2,))
    p['bn3_g'] = 1.0 + n(ks[15], (F2,))
    p['bn3_b'] = n(ks[16], (F2,))
    p['bn3_m'] = n(ks[17], (F2,), 0.05)
    p['bn3_v'] = 0.5 + jax.random.uniform(ks[18], (F2,), jnp.float32)
    p['wl'] = n(ks[19], (CLASS_NUM, F2 * 2))            # Linear(F2*2, class_num)
    p['bl'] = n(ks[20], (CLASS_NUM,))
    return p


# ------------------------------ main -----------------------------------------------------

if __name__ == "__main__":
    B = 128                                  # exercises batch tiling: Bt=64, grid=(2,)
    key = jax.random.PRNGKey(0)
    kx, kp = jax.random.split(key)
    x = jax.random.normal(kx, (B, 1, CHANS, T), jnp.float32)
    params = init_params(kp)

    folded = fold_params(params)             # one-time folding, outside the jit hot path
    fwd = jax.jit(eegnet_forward)
    out = jax.block_until_ready(fwd(x, folded))
    assert out.shape == (B, CLASS_NUM)

    ref = reference_forward(x, params)
    # bf16 streaming operands (per perf review) vs. a HIGHEST-precision f32 reference:
    # tolerances loosened accordingly.
    np.testing.assert_allclose(np.asarray(out), np.asarray(ref), rtol=2e-2, atol=2e-3)

    print("KERNEL_OK")
</pallas_src>

<mosaic_0001>
module attributes {stable_mosaic.version = 11 : i64} {
  func.func @_eegnet_kernel(%arg0: i32, %arg1: memref<128x2176xbf16, #tpu.memory_space<vmem>>, %arg2: memref<8x128xbf16, #tpu.memory_space<vmem>>, %arg3: memref<8x2176xf32, #tpu.memory_space<vmem>>, %arg4: memref<2176x128xbf16, #tpu.memory_space<vmem>>, %arg5: memref<8x32xf32, #tpu.memory_space<vmem>>, %arg6: memref<1x2x64xf32, #tpu.memory_space<vmem>>) attributes {dimension_semantics = [#tpu.dimension_semantics<parallel>], iteration_bounds = array<i64: 2>, scalar_prefetch = 0 : i64, scratch_operands = 0 : i64, tpu.core_type = #tpu.core_type<tc>, window_params = [{transform_indices = @transform_0, window_bounds = array<i64: 128, 2176>}, {pipeline_mode = #tpu.pipeline_mode<synchronous>, transform_indices = @transform_1, window_bounds = array<i64: 8, 128>}, {pipeline_mode = #tpu.pipeline_mode<synchronous>, transform_indices = @transform_2, window_bounds = array<i64: 8, 2176>}, {pipeline_mode = #tpu.pipeline_mode<synchronous>, transform_indices = @transform_3, window_bounds = array<i64: 2176, 128>}, {pipeline_mode = #tpu.pipeline_mode<synchronous>, transform_indices = @transform_4, window_bounds = array<i64: 8, 32>}, {transform_indices = @transform_5, window_bounds = array<i64: 1, 2, 64>}]} {
    %c0 = arith.constant 0 : index
    %c0_0 = arith.constant 0 : index
    %0 = vector.load %arg5[%c0, %c0_0] : memref<8x32xf32, #tpu.memory_space<vmem>>, vector<8x32xf32>
    %1 = vector.extract_strided_slice %0 {offsets = [0, 0], sizes = [8, 1], strides = [1, 1]} : vector<8x32xf32> to vector<8x1xf32>
    %2 = vector.extract_strided_slice %0 {offsets = [0, 1], sizes = [8, 8], strides = [1, 1]} : vector<8x32xf32> to vector<8x8xf32>
    %3 = vector.extract_strided_slice %0 {offsets = [0, 9], sizes = [8, 1], strides = [1, 1]} : vector<8x32xf32> to vector<8x1xf32>
    %4 = vector.extract_strided_slice %0 {offsets = [0, 10], sizes = [8, 8], strides = [1, 1]} : vector<8x32xf32> to vector<8x8xf32>
    %5 = vector.extract_strided_slice %0 {offsets = [0, 18], sizes = [8, 8], strides = [1, 1]} : vector<8x32xf32> to vector<8x8xf32>
    %6 = vector.extract_strided_slice %0 {offsets = [0, 26], sizes = [8, 1], strides = [1, 1]} : vector<8x32xf32> to vector<8x1xf32>
    %c0_1 = arith.constant 0 : index
    %c0_2 = arith.constant 0 : index
    %7 = vector.load %arg2[%c0_1, %c0_2] : memref<8x128xbf16, #tpu.memory_space<vmem>>, vector<8x128xbf16>
    %c0_3 = arith.constant 0 : index
    %c0_4 = arith.constant 0 : index
    %8 = vector.load %arg1[%c0_3, %c0_4] : memref<128x2176xbf16, #tpu.memory_space<vmem>>, vector<128x2176xbf16>
    %cst = arith.constant dense<0.000000e+00> : vector<8x2176xf32>
    %9 = tpu.matmul %7, %8, %cst {dimension_numbers = #tpu.dot_dimension_numbers<[1], [0], [0], [1], [0, 0, 1, 1], [], []>} : vector<8x128xbf16>, vector<128x2176xbf16>, vector<8x2176xf32> -> vector<8x2176xf32>
    %10 = vector.broadcast %1 : vector<8x1xf32> to vector<8x2176xf32>
    %11 = arith.addf %9, %10 : vector<8x2176xf32>
    %cst_5 = arith.constant 0.000000e+00 : f32
    %12 = vector.broadcast %cst_5 : f32 to vector<8x2176xf32>
    %13 = arith.cmpf ogt, %11, %12 : vector<8x2176xf32>
    %cst_6 = arith.constant 0.000000e+00 : f32
    %14 = vector.broadcast %cst_6 : f32 to vector<8x2176xf32>
    %15 = arith.minimumf %11, %14 : vector<8x2176xf32>
    %16 = math.exp %15 : vector<8x2176xf32>
    %cst_7 = arith.constant 1.000000e+00 : f32
    %17 = vector.broadcast %cst_7 : f32 to vector<8x2176xf32>
    %18 = arith.subf %16, %17 : vector<8x2176xf32>
    %19 = arith.select %13, %11, %18 : vector<8x2176xi1>, vector<8x2176xf32>
    %c0_8 = arith.constant 0 : index
    %c0_9 = arith.constant 0 : index
    %20 = vector.load %arg3[%c0_8, %c0_9] : memref<8x2176xf32, #tpu.memory_space<vmem>>, vector<8x2176xf32>
    %21 = arith.mulf %19, %20 : vector<8x2176xf32>
    %22 = arith.truncf %21 : vector<8x2176xf32> to vector<8x2176xbf16>
    %c0_10 = arith.constant 0 : index
    %c0_11 = arith.constant 0 : index
    %23 = vector.load %arg4[%c0_10, %c0_11] : memref<2176x128xbf16, #tpu.memory_space<vmem>>, vector<2176x128xbf16>
    %cst_12 = arith.constant dense<0.000000e+00> : vector<8x128xf32>
    %24 = tpu.matmul %22, %23, %cst_12 {dimension_numbers = #tpu.dot_dimension_numbers<[1], [0], [0], [1], [0, 0, 1, 1], [], []>} : vector<8x2176xbf16>, vector<2176x128xbf16>, vector<8x128xf32> -> vector<8x128xf32>
    %cst_13 = arith.constant dense<0.000000e+00> : vector<8x128xf32>
    %25 = tpu.matmul %2, %24, %cst_13 {dimension_numbers = #tpu.dot_dimension_numbers<[1], [0], [0], [1], [0, 0, 1, 1], [], []>} : vector<8x8xf32>, vector<8x128xf32>, vector<8x128xf32> -> vector<8x128xf32>
    %26 = vector.broadcast %3 : vector<8x1xf32> to vector<8x128xf32>
    %27 = arith.addf %25, %26 : vector<8x128xf32>
    %cst_14 = arith.constant 0.000000e+00 : f32
    %28 = vector.broadcast %cst_14 : f32 to vector<8x128xf32>
    %29 = arith.cmpf ogt, %27, %28 : vector<8x128xf32>
    %cst_15 = arith.constant 0.000000e+00 : f32
    %30 = vector.broadcast %cst_15 : f32 to vector<8x128xf32>
    %31 = arith.minimumf %27, %30 : vector<8x128xf32>
    %32 = math.exp %31 : vector<8x128xf32>
    %cst_16 = arith.constant 1.000000e+00 : f32
    %33 = vector.broadcast %cst_16 : f32 to vector<8x128xf32>
    %34 = arith.subf %32, %33 : vector<8x128xf32>
    %35 = arith.select %29, %27, %34 : vector<8x128xi1>, vector<8x128xf32>
    %36 = vector.extract_strided_slice %35 {offsets = [0, 0], sizes = [8, 64], strides = [1, 1]} : vector<8x128xf32> to vector<8x64xf32>
    %cst_17 = arith.constant dense<0.000000e+00> : vector<8x64xf32>
    %37 = tpu.matmul %4, %36, %cst_17 {dimension_numbers = #tpu.dot_dimension_numbers<[1], [0], [0], [1], [0, 0, 1, 1], [], []>} : vector<8x8xf32>, vector<8x64xf32>, vector<8x64xf32> -> vector<8x64xf32>
    %38 = vector.extract_strided_slice %35 {offsets = [0, 64], sizes = [8, 64], strides = [1, 1]} : vector<8x128xf32> to vector<8x64xf32>
    %cst_18 = arith.constant dense<0.000000e+00> : vector<8x64xf32>
    %39 = tpu.matmul %5, %38, %cst_18 {dimension_numbers = #tpu.dot_dimension_numbers<[1], [0], [0], [1], [0, 0, 1, 1], [], []>} : vector<8x8xf32>, vector<8x64xf32>, vector<8x64xf32> -> vector<8x64xf32>
    %40 = arith.addf %37, %39 : vector<8x64xf32>
    %41 = vector.broadcast %6 : vector<8x1xf32> to vector<8x64xf32>
    %42 = arith.addf %40, %41 : vector<8x64xf32>
    %43 = vector.extract_strided_slice %42 {offsets = [0, 0], sizes = [2, 64], strides = [1, 1]} : vector<8x64xf32> to vector<2x64xf32>
    %c0_19 = arith.constant 0 : index
    %c0_20 = arith.constant 0 : index
    %c0_21 = arith.constant 0 : index
    %44 = vector.load %arg6[%c0_19, %c0_20, %c0_21] : memref<1x2x64xf32, #tpu.memory_space<vmem>>, vector<1x2x64xf32>
    %45 = vector.shape_cast %44 : vector<1x2x64xf32> to vector<2x64xf32>
    %46 = vector.shape_cast %43 : vector<2x64xf32> to vector<1x2x64xf32>
    tpu.vector_store %arg6[%c0_19, %c0_20, %c0_21], %46 {strides = array<i32>} : memref<1x2x64xf32, #tpu.memory_space<vmem>>, vector<1x2x64xf32>,
    return
  }
  func.func @transform_0(%arg0: i32) -> (i32, i32) {
    %c0_i32 = arith.constant 0 : i32
    %c0_i32_0 = arith.constant 0 : i32
    return %c0_i32, %arg0 : i32, i32
  }
  func.func @transform_1(%arg0: i32) -> (i32, i32) {
    %c0_i32 = arith.constant 0 : i32
    %c0_i32_0 = arith.constant 0 : i32
    %c0_i32_1 = arith.constant 0 : i32
    return %c0_i32, %c0_i32_0 : i32, i32
  }
  func.func @transform_2(%arg0: i32) -> (i32, i32) {
    %c0_i32 = arith.constant 0 : i32
    %c0_i32_0 = arith.constant 0 : i32
    %c0_i32_1 = arith.constant 0 : i32
    return %c0_i32, %c0_i32_0 : i32, i32
  }
  func.func @transform_3(%arg0: i32) -> (i32, i32) {
    %c0_i32 = arith.constant 0 : i32
    %c0_i32_0 = arith.constant 0 : i32
    %c0_i32_1 = arith.constant 0 : i32
    return %c0_i32, %c0_i32_0 : i32, i32
  }
  func.func @transform_4(%arg0: i32) -> (i32, i32) {
    %c0_i32 = arith.constant 0 : i32
    %c0_i32_0 = arith.constant 0 : i32
    %c0_i32_1 = arith.constant 0 : i32
    return %c0_i32, %c0_i32_0 : i32, i32
  }
  func.func @transform_5(%arg0: i32) -> (i32, i32, i32) {
    %c0_i32 = arith.constant 0 : i32
    %c0_i32_0 = arith.constant 0 : i32
    %c0_i32_1 = arith.constant 0 : i32
    return %arg0, %c0_i32, %c0_i32_0 : i32, i32, i32
  }
}

</mosaic_0001>

<bundles_post_ra>
// kernel: tile.9
= control target key start
LH: loop header
LB: loop body
LE: loop exit
PB: predicated region body
PF: predicated region fallthrough
CT: control target
= control target key end

     0   :  { %vm5_vm0 = vcmask 1041409   ;;  %vm9_vm1 = vcmask 1042434   ;;  %vm13_vm2 = vcmask 1043459   ;;  %vm17_vm3 = vcmask 1044484   ;;  %s3573_s25 = smov 126   ;;  %s3574_s9 = smov 124   ;;  %s6438_s0 = inlined_call_operand.vmem [shape: f32[8,64,34], index: 0, kind: input, shape index: {}]   ;;  %s6439_s1 = inlined_call_operand.vmem [shape: f32[8,2176], index: 1, kind: output, shape index: {}]  }
   0x1   :  { %vm21_vm4 = vcmask 1045509   ;;  %v2802_v0 = vld [vmem:[%s6438_s0 + $0xf] sm:$0x1]   ;;  %vm25_vm5 = vcmask 1046534   ;;  %vm29_vm6 = vcmask 1047559   ;;  %s3575_s2 = smov 120  }
   0x2   :  { %v2803_v1 = vld [vmem:[%s6438_s0 + $0x4e] sm:$0x2]   ;;  %v2820_v9 = vld [vmem:[%s6438_s0 + $0x1e] sm:$0x1]   ;;  %v2856_v52 = vld [vmem:[%s6438_s0 + $0x3c] sm:$0x1]  }
   0x3   :  { %v2804_v2 = vld [vmem:[%s6438_s0 + $0x8d] sm:$0x4]   ;;  %v38_v4 = vsel %vm5_vm0, %v2803_v1, %v2802_v0  ;;  %v2821_v10 = vld [vmem:[%s6438_s0 + $0x5d] sm:$0x2]   ;;  %v2857_v53 = vld [vmem:[%s6438_s0 + $0x7b] sm:$0x2]  }
   0x4   :  { %v2805_v3 = vld [vmem:[%s6438_s0 + $0xcc] sm:$0x8]   ;;  %v42_v7 = vsel %vm9_vm1, %v2804_v2, %v38_v4  ;;  %v108_v12 = vsel %vm5_vm0, %v2821_v10, %v2820_v9  ;;  %v2822_v13 = vld [vmem:[%s6438_s0 + $0x9c] sm:$0x4]   ;;  %v248_v56 = vsel %vm5_vm0, %v2857_v53, %v2856_v52  ;;  %v2858_v57 = vld [vmem:[%s6438_s0 + $0xba] sm:$0x4]  }
   0x5   :  { %v2806_v5 = vld [vmem:[%s6438_s0 + $0x10b] sm:$0x10]   ;;  %v46_v11 = vsel %vm13_vm2, %v2805_v3, %v42_v7  ;;  %v2823_v14 = vld [vmem:[%s6438_s0 + $0xdb] sm:$0x8]   ;;  %v112_v18 = vsel %vm9_vm1, %v2822_v13, %v108_v12  ;;  %v2859_v58 = vld [vmem:[%s6438_s0 + $0xf9] sm:$0x8]   ;;  %v252_v62 = vsel %vm9_vm1, %v2858_v57, %v248_v56 }
   0x6   :  { %v2807_v6 = vld [vmem:[%s6438_s0 + $0x14a] sm:$0x20]   ;;  %v2824_v15 = vld [vmem:[%s6438_s0 + $0x11a] sm:$0x10]   ;;  %v50_v16 = vsel %vm17_vm3, %v2806_v5, %v46_v11  ;;  %v116_v22 = vsel %vm13_vm2, %v2823_v14, %v112_v18  ;;  %v2860_v59 = vld [vmem:[%s6438_s0 + $0x138] sm:$0x10]   ;;  %v256_v2 = vsel %vm13_vm2, %v2859_v58, %v252_v62 }
   0x7   :  { %v2808_v8 = vld [vmem:[%s6438_s0 + $0x189] sm:$0x40]   ;;  %v2825_v19 = vld [vmem:[%s6438_s0 + $0x159] sm:$0x20]   ;;  %v54_v21 = vsel %vm21_vm4, %v2807_v6, %v50_v16  ;;  %v120_v27 = vsel %vm17_vm3, %v2824_v15, %v116_v22  ;;  %v2861_v63 = vld [vmem:[%s6438_s0 + $0x177] sm:$0x20]   ;;  %v260_v7 = vsel %vm17_vm3, %v2860_v59, %v256_v2 }
   0x8   :  { %v2809_v17 = vld [vmem:[%s6438_s0 + $0x1c8] sm:$0x80]   ;;  %v2826_v20 = vld [vmem:[%s6438_s0 + $0x198] sm:$0x40]   ;;  %v58_v26 = vsel %vm25_vm5, %v2808_v8, %v54_v21  ;;  %v124_v33 = vsel %vm21_vm4, %v2825_v19, %v120_v27  ;;  %v2865_v3 = vld [vmem:[%s6438_s0 + $0x3c] sm:$0x1]   ;;  %v264_v12 = vsel %vm21_vm4, %v2861_v63, %v260_v7 }
   0x9   :  { %v2811_v23 = vld [vmem:[%s6438_s0 + $0xf] sm:$0x1]   ;;  %v2827_v28 = vld [vmem:[%s6438_s0 + $0x1d7] sm:$0x80]   ;;  %v62_v32 = vsel %vm29_vm6, %v2809_v17, %v58_v26  ;;  %v128_v38 = vsel %vm25_vm5, %v2826_v20, %v124_v33  ;;  %v2866_v4 = vld [vmem:[%s6438_s0 + $0x7b] sm:$0x2]  }
   0xa   :  { %v2812_v24 = vld [vmem:[%s6438_s0 + $0x4e] sm:$0x2]   ;;  %v2829_v37 = vld [vmem:[%s6438_s0 + $0x1e] sm:$0x1]   ;;  %63 = vrot.lane.b32.xlu0 %v62_v32, %s3573_s25  ;;  %v132_v43 = vsel %vm29_vm6, %v2827_v28, %v128_v38  ;;  %v2867_v5 = vld [vmem:[%s6438_s0 + $0xba] sm:$0x4]   ;;  %v283_v8 = vsel %vm5_vm0, %v2866_v4, %v2865_v3 }
   0xb   :  { %v2813_v25 = vld [vmem:[%s6438_s0 + $0x8d] sm:$0x4]   ;;  %v73_v29 = vsel %vm5_vm0, %v2812_v24, %v2811_v23  ;;  %v2830_v40 = vld [vmem:[%s6438_s0 + $0x5d] sm:$0x2]   ;;  %133 = vrot.lane.b32.xlu1 %v132_v43, %s3574_s9  ;;  %v2868_v9 = vld [vmem:[%s6438_s0 + $0xf9] sm:$0x8]   ;;  %v287_v14 = vsel %vm9_vm1, %v2867_v5, %v283_v8 }
   0xc   :  { %v2814_v30 = vld [vmem:[%s6438_s0 + $0xcc] sm:$0x8]   ;;  %v77_v34 = vsel %vm9_vm1, %v2813_v25, %v73_v29  ;;  %v2831_v41 = vld [vmem:[%s6438_s0 + $0x9c] sm:$0x4]   ;;  %v143_v46 = vsel %vm5_vm0, %v2830_v40, %v2829_v37  ;;  %v2869_v10 = vld [vmem:[%s6438_s0 + $0x138] sm:$0x10]   ;;  %v291_v17 = vsel %vm13_vm2, %v2868_v9, %v287_v14 }
   0xd   :  { %v2815_v31 = vld [vmem:[%s6438_s0 + $0x10b] sm:$0x10]   ;;  %v81_v39 = vsel %vm13_vm2, %v2814_v30, %v77_v34  ;;  %v2832_v42 = vld [vmem:[%s6438_s0 + $0xdb] sm:$0x8]   ;;  %v147_v50 = vsel %vm9_vm1, %v2831_v41, %v143_v46  ;;  %v2862_v13 = vld [vmem:[%s6438_s0 + $0x1b6] sm:$0x40]   ;;  %v295_v21 = vsel %vm17_vm3, %v2869_v10, %v291_v17 }
   0xe   :  { %v2816_v35 = vld [vmem:[%s6438_s0 + $0x14a] sm:$0x20]   ;;  %v85_v44 = vsel %vm17_vm3, %v2815_v31, %v81_v39  ;;  %v2833_v47 = vld [vmem:[%s6438_s0 + $0x11a] sm:$0x10]   ;;  %v151_v55 = vsel %vm13_vm2, %v2832_v42, %v147_v50  ;;  %v2870_v15 = vld [vmem:[%s6438_s0 + $0x177] sm:$0x20]   ;;  %v268_v26 = vsel %vm25_vm5, %v2862_v13, %v264_v12 }
   0xf   :  { %v2817_v36 = vld [vmem:[%s6438_s0 + $0x189] sm:$0x40]   ;;  %v2834_v48 = vld [vmem:[%s6438_s0 + $0x159] sm:$0x20]   ;;  %v89_v49 = vsel %vm21_vm4, %v2816_v35, %v85_v44  ;;  %v155_v60 = vsel %vm17_vm3, %v2833_v47, %v151_v55  ;;  %v2863_v16 = vld [vmem:[%s6438_s0 + $0x1f5] sm:$0x80]   ;;  %v299_v27 = vsel %vm21_vm4, %v2870_v15, %v295_v21 }
  0x10   :  { %v2818_v45 = vld [vmem:[%s6438_s0 + $0x1c8] sm:$0x80]   ;;  %v2835_v51 = vld [vmem:[%s6438_s0 + $0x198] sm:$0x40]   ;;  %v93_v54 = vsel %vm25_vm5, %v2817_v36, %v89_v49  ;;  %v159_v1 = vsel %vm21_vm4, %v2834_v48, %v155_v60  ;;  %v2883_v18 = vld [vmem:[%s6438_s0 + $0xb] sm:$0x1]   ;;  %v272_v41 = vsel %vm29_vm6, %v2863_v16, %v268_v26 }
  0x11   :  { %v2836_v61 = vld [vmem:[%s6438_s0 + $0x1d7] sm:$0x80]   ;;  %v97_v0 = vsel %vm29_vm6, %v2818_v45, %v93_v54  ;;  %v163_v6 = vsel %vm25_vm5, %v2835_v51, %v159_v1  ;;  %v2884_v19 = vld [vmem:[%s6438_s0 + $0x4a] sm:$0x2]   ;;  %v2871_v22 = vld [vmem:[%s6438_s0 + $0x1b6] sm:$0x40]  }
  0x12   :  { %v167_v11 = vsel %vm29_vm6, %v2836_v61, %v163_v6  ;;  %98 = vrot.lane.b32.xlu0 %v97_v0, %s3573_s25  ;;  %v2885_v20 = vld [vmem:[%s6438_s0 + $0x89] sm:$0x4]   ;;  %v353_v23 = vsel %vm5_vm0, %v2884_v19, %v2883_v18  ;;  %v2872_v28 = vld [vmem:[%s6438_s0 + $0x1f5] sm:$0x80]   ;;  %v2838_v30 = vld [vmem:[%s6438_s0 + $0x2d] sm:$0x1]   ;;  %v303_v35 = vsel %vm25_vm5, %v2871_v22, %v299_v27 }
  0x13   :  { %v2886_v24 = vld [vmem:[%s6438_s0 + $0xc8] sm:$0x8]   ;;  %168 = vrot.lane.b32.xlu1 %v167_v11, %s3574_s9  ;;  %v357_v29 = vsel %vm9_vm1, %v2885_v20, %v353_v23  ;;  %v2839_v32 = vld [vmem:[%s6438_s0 + $0x6c] sm:$0x2]   ;;  %v2892_v44 = vld [vmem:[%s6438_s0 + $0x1a] sm:$0x1]   ;;  %v307_v51 = vsel %vm29_vm6, %v2872_v28, %v303_v35 }
  0x14   :  { %v2887_v25 = vld [vmem:[%s6438_s0 + $0x107] sm:$0x10]   ;;  %v361_v31 = vsel %vm13_vm2, %v2886_v24, %v357_v29  ;;  %v2840_v33 = vld [vmem:[%s6438_s0 + $0xab] sm:$0x4]   ;;  %v178_v38 = vsel %vm5_vm0, %v2839_v32, %v2838_v30  ;;  %v2893_v45 = vld [vmem:[%s6438_s0 + $0x59] sm:$0x2]  }
  0x15   :  { %v2841_v34 = vld [vmem:[%s6438_s0 + $0xea] sm:$0x8]   ;;  %v365_v36 = vsel %vm17_vm3, %v2887_v25, %v361_v31  ;;  %v2888_v37 = vld [vmem:[%s6438_s0 + $0x146] sm:$0x20]   ;;  %v182_v42 = vsel %vm9_vm1, %v2840_v33, %v178_v38  ;;  %v388_v47 = vsel %vm5_vm0, %v2893_v45, %v2892_v44  ;;  %v2894_v48 = vld [vmem:[%s6438_s0 + $0x98] sm:$0x4]  }
  0x16   :  { %v2842_v39 = vld [vmem:[%s6438_s0 + $0x129] sm:$0x10]   ;;  %v186_v46 = vsel %vm13_vm2, %v2841_v34, %v182_v42  ;;  %v2895_v49 = vld [vmem:[%s6438_s0 + $0xd7] sm:$0x8]   ;;  %v369_v52 = vsel %vm21_vm4, %v2888_v37, %v365_v36  ;;  %v2889_v53 = vld [vmem:[%s6438_s0 + $0x185] sm:$0x40]   ;;  %v392_v56 = vsel %vm9_vm1, %v2894_v48, %v388_v47 }
  0x17   :  { %v2843_v40 = vld [vmem:[%s6438_s0 + $0x168] sm:$0x20]   ;;  %v2896_v50 = vld [vmem:[%s6438_s0 + $0x116] sm:$0x10]   ;;  %v190_v54 = vsel %vm17_vm3, %v2842_v39, %v186_v46  ;;  %v396_v59 = vsel %vm13_vm2, %v2895_v49, %v392_v56  ;;  %v2910_v61 = vld [vmem:[%s6438_s0 + $0x29] sm:$0x1]   ;;  %v373_v5 = vsel %vm25_vm5, %v2889_v53, %v369_v52 }
  0x18   :  { %v2844_v43 = vld [vmem:[%s6438_s0 + $0x1a7] sm:$0x40]   ;;  %v2897_v57 = vld [vmem:[%s6438_s0 + $0x155] sm:$0x20]   ;;  %v194_v58 = vsel %vm21_vm4, %v2843_v40, %v190_v54  ;;  %v2911_v62 = vld [vmem:[%s6438_s0 + $0x68] sm:$0x2]   ;;  %v400_v0 = vsel %vm17_vm3, %v2896_v50, %v396_v59 }
  0x19   :  { %v2845_v55 = vld [vmem:[%s6438_s0 + $0x1e6] sm:$0x80]   ;;  %v2898_v60 = vld [vmem:[%s6438_s0 + $0x194] sm:$0x40]   ;;  %v198_v63 = vsel %vm25_vm5, %v2844_v43, %v194_v58  ;;  %v458_v1 = vsel %vm5_vm0, %v2911_v62, %v2910_v61  ;;  %v2912_v2 = vld [vmem:[%s6438_s0 + $0xa7] sm:$0x4]   ;;  %v404_v8 = vsel %vm21_vm4, %v2897_v57, %v400_v0 }
  0x1a   :  { %273 = vrot.lane.b32.xlu0 %v272_v41, %s3575_s2  ;;  %v2913_v3 = vld [vmem:[%s6438_s0 + $0xe6] sm:$0x8]   ;;  %v2890_v6 = vld [vmem:[%s6438_s0 + $0x1c4] sm:$0x80]   ;;  %v202_v7 = vsel %vm29_vm6, %v2845_v55, %v198_v63  ;;  %v2899_v9 = vld [vmem:[%s6438_s0 + $0x1d3] sm:$0x80]   ;;  %v462_v10 = vsel %vm9_vm1, %v2912_v2, %v458_v1  ;;  %v408_v15 = vsel %vm25_vm5, %v2898_v60, %v404_v8 }
  0x1b   :  { %v2914_v4 = vld [vmem:[%s6438_s0 + $0x125] sm:$0x10]   ;;  %308 = vrot.lane.b32.xlu1 %v307_v51, %s3575_s2  ;;  %s3576_s19 = smov 122   ;;  %v466_v11 = vsel %vm13_vm2, %v2913_v3, %v462_v10  ;;  %v2847_v12 = vld [vmem:[%s6438_s0 + $0x2d] sm:$0x1]   ;;  %v377_v21 = vsel %vm29_vm6, %v2890_v6, %v373_v5  ;;  %v412_v30 = vsel %vm29_vm6, %v2899_v9, %v408_v15  ;;  %s3577_s22 = smov 118  }
  0x1c   :  { %203 = vrot.lane.b32.xlu2 %v202_v7, %s3576_s19  ;;  %v2848_v13 = vld [vmem:[%s6438_s0 + $0x6c] sm:$0x2]   ;;  %v470_v16 = vsel %vm17_vm3, %v2914_v4, %v466_v11  ;;  %v2915_v17 = vld [vmem:[%s6438_s0 + $0x164] sm:$0x20]   ;;  %v2937_v41 = vld [vmem:[%s6438_s0 + $0x38] sm:$0x1]  }
  0x1d   :  { %v2849_v14 = vld [vmem:[%s6438_s0 + $0xab] sm:$0x4]   ;;  %v213_v18 = vsel %vm5_vm0, %v2848_v13, %v2847_v12  ;;  %v2919_v25 = vld [vmem:[%s6438_s0 + $0x29] sm:$0x1]   ;;  %v474_v31 = vsel %vm21_vm4, %v2915_v17, %v470_v16  ;;  %v2938_v44 = vld [vmem:[%s6438_s0 + $0x77] sm:$0x2]  }
  0x1e   :  { %v2850_v19 = vld [vmem:[%s6438_s0 + $0xea] sm:$0x8]   ;;  %v217_v22 = vsel %vm9_vm1, %v2849_v14, %v213_v18  ;;  %v2920_v27 = vld [vmem:[%s6438_s0 + $0x68] sm:$0x2]   ;;  %v2939_v45 = vld [vmem:[%s6438_s0 + $0xb6] sm:$0x4]   ;;  %v563_v52 = vsel %vm5_vm0, %v2938_v44, %v2937_v41 }
  0x1f   :  { %v2851_v20 = vld [vmem:[%s6438_s0 + $0x129] sm:$0x10]   ;;  %v221_v26 = vsel %vm13_vm2, %v2850_v19, %v217_v22  ;;  %v2921_v28 = vld [vmem:[%s6438_s0 + $0xa7] sm:$0x4]   ;;  %v493_v35 = vsel %vm5_vm0, %v2920_v27, %v2919_v25  ;;  %v2940_v46 = vld [vmem:[%s6438_s0 + $0xf5] sm:$0x8]   ;;  %v567_v55 = vsel %vm9_vm1, %v2939_v45, %v563_v52 }
  0x20   :  { %v2852_v23 = vld [vmem:[%s6438_s0 + $0x168] sm:$0x20]   ;;  %v2922_v29 = vld [vmem:[%s6438_s0 + $0xe6] sm:$0x8]   ;;  %v225_v33 = vsel %vm17_vm3, %v2851_v20, %v221_v26  ;;  %v497_v38 = vsel %vm9_vm1, %v2921_v28, %v493_v35  ;;  %s3578_s6 = smov 116   ;;  %v571_v60 = vsel %vm13_vm2, %v2940_v46, %v567_v55  ;;  %s3579_s15 = smov 114  }
  0x21   :  { %v2853_v24 = vld [vmem:[%s6438_s0 + $0x1a7] sm:$0x40]   ;;  %v2916_v32 = vld [vmem:[%s6438_s0 + $0x1a3] sm:$0x40]   ;;  %v229_v37 = vsel %vm21_vm4, %v2852_v23, %v225_v33  ;;  %v501_v43 = vsel %vm13_vm2, %v2922_v29, %v497_v38  ;;  %v2941_v53 = vld [vmem:[%s6438_s0 + $0x134] sm:$0x10]  }
  0x22   :  { %v2854_v34 = vld [vmem:[%s6438_s0 + $0x1e6] sm:$0x80]   ;;  %v2923_v36 = vld [vmem:[%s6438_s0 + $0x125] sm:$0x10]   ;;  %378 = vrot.lane.b32.xlu0 %v377_v21, %s3577_s22  ;;  %v233_v42 = vsel %vm25_vm5, %v2853_v24, %v229_v37  ;;  %v478_v47 = vsel %vm25_vm5, %v2916_v32, %v474_v31  ;;  %v2942_v56 = vld [vmem:[%s6438_s0 + $0x173] sm:$0x20]   ;;  %v575_v2 = vsel %vm17_vm3, %v2941_v53, %v571_v60 }
  0x23   :  { %v2924_v39 = vld [vmem:[%s6438_s0 + $0x164] sm:$0x20]   ;;  %413 = vrot.lane.b32.xlu1 %v412_v30, %s3578_s6  ;;  %v237_v49 = vsel %vm29_vm6, %v2854_v34, %v233_v42  ;;  %v505_v50 = vsel %vm17_vm3, %v2923_v36, %v501_v43  ;;  %v2874_v57 = vld [vmem:[%s6438_s0 + $0xb] sm:$0x1]   ;;  %v2943_v3 = vld [vmem:[%s6438_s0 + $0x1b2] sm:$0x40]   ;;  %v579_v12 = vsel %vm21_vm4, %v2942_v56, %v575_v2 }
  0x24   :  { %v2925_v40 = vld [vmem:[%s6438_s0 + $0x1a3] sm:$0x40]   ;;  %238 = vrot.lane.b32.xlu2 %v237_v49, %s3576_s19  ;;  %v509_v54 = vsel %vm21_vm4, %v2924_v39, %v505_v50  ;;  %v2875_v58 = vld [vmem:[%s6438_s0 + $0x4a] sm:$0x2]   ;;  %v2946_v8 = vld [vmem:[%s6438_s0 + $0x7] sm:$0x1]   ;;  %v583_v28 = vsel %vm25_vm5, %v2943_v3, %v579_v12 }
  0x25   :  { %v2917_v48 = vld [vmem:[%s6438_s0 + $0x1e2] sm:$0x80]   ;;  %v513_v59 = vsel %vm25_vm5, %v2925_v40, %v509_v54  ;;  %v318_v61 = vsel %vm5_vm0, %v2875_v58, %v2874_v57  ;;  %v2876_v62 = vld [vmem:[%s6438_s0 + $0x89] sm:$0x4]   ;;  %v2947_v9 = vld [vmem:[%s6438_s0 + $0x46] sm:$0x2]  }
  0x26   :  { %v2926_v51 = vld [vmem:[%s6438_s0 + $0x1e2] sm:$0x80]   ;;  %v2877_v63 = vld [vmem:[%s6438_s0 + $0xc8] sm:$0x8]   ;;  %v482_v1 = vsel %vm29_vm6, %v2917_v48, %v478_v47  ;;  %v322_v4 = vsel %vm9_vm1, %v2876_v62, %v318_v61  ;;  %v2948_v10 = vld [vmem:[%s6438_s0 + $0x85] sm:$0x4]   ;;  %v598_v15 = vsel %vm5_vm0, %v2947_v9, %v2946_v8 }
  0x27   :  { %v2878_v0 = vld [vmem:[%s6438_s0 + $0x107] sm:$0x10]   ;;  %v326_v7 = vsel %vm13_vm2, %v2877_v63, %v322_v4  ;;  %v517_v11 = vsel %vm29_vm6, %v2926_v51, %v513_v59  ;;  %v2949_v16 = vld [vmem:[%s6438_s0 + $0xc4] sm:$0x8]   ;;  %v602_v19 = vsel %vm9_vm1, %v2948_v10, %v598_v15  ;;  %v2964_v22 = vld [vmem:[%s6438_s0 + $0x16] sm:$0x1]  }
  0x28   :  { %v2879_v5 = vld [vmem:[%s6438_s0 + $0x146] sm:$0x20]   ;;  %v330_v13 = vsel %vm17_vm3, %v2878_v0, %v326_v7  ;;  %v2950_v17 = vld [vmem:[%s6438_s0 + $0x103] sm:$0x10]   ;;  %v606_v24 = vsel %vm13_vm2, %v2949_v16, %v602_v19  ;;  %v2965_v25 = vld [vmem:[%s6438_s0 + $0x55] sm:$0x2]  }
  0x29   :  { %v2880_v6 = vld [vmem:[%s6438_s0 + $0x185] sm:$0x40]   ;;  %v334_v18 = vsel %vm21_vm4, %v2879_v5, %v330_v13  ;;  %v2951_v20 = vld [vmem:[%s6438_s0 + $0x142] sm:$0x20]   ;;  %v2966_v26 = vld [vmem:[%s6438_s0 + $0x94] sm:$0x4]   ;;  %v610_v31 = vsel %vm17_vm3, %v2950_v17, %v606_v24  ;;  %v668_v32 = vsel %vm5_vm0, %v2965_v25, %v2964_v22 }
  0x2a   :  { %v2881_v14 = vld [vmem:[%s6438_s0 + $0x1c4] sm:$0x80]   ;;  %483 = vrot.lane.b32.xlu0 %v482_v1, %s3579_s15  ;;  %v2952_v21 = vld [vmem:[%s6438_s0 + $0x181] sm:$0x40]   ;;  %v338_v23 = vsel %vm25_vm5, %v2880_v6, %v334_v18  ;;  %v2967_v27 = vld [vmem:[%s6438_s0 + $0xd3] sm:$0x8]   ;;  %v614_v34 = vsel %vm21_vm4, %v2951_v20, %v610_v31  ;;  %v672_v36 = vsel %vm9_vm1, %v2966_v26, %v668_v32 }
  0x2b   :  { %518 = vrot.lane.b32.xlu1 %v517_v11, %s3579_s15  ;;  %v2944_v29 = vld [vmem:[%s6438_s0 + $0x1f1] sm:$0x80]   ;;  %v342_v30 = vsel %vm29_vm6, %v2881_v14, %v338_v23  ;;  %v2968_v33 = vld [vmem:[%s6438_s0 + $0x112] sm:$0x10]   ;;  %v2953_v35 = vld [vmem:[%s6438_s0 + $0x1c0] sm:$0x80]   ;;  %v618_v39 = vsel %vm25_vm5, %v2952_v21, %v614_v34  ;;  %v676_v40 = vsel %vm13_vm2, %v2967_v27, %v672_v36 }
  0x2c   :  { %343 = vrot.lane.b32.xlu2 %v342_v30, %s3577_s22  ;;  %v2969_v37 = vld [vmem:[%s6438_s0 + $0x151] sm:$0x20]   ;;  %v2901_v38 = vld [vmem:[%s6438_s0 + $0x1a] sm:$0x1]   ;;  %v587_v44 = vsel %vm29_vm6, %v2944_v29, %v583_v28  ;;  %v680_v45 = vsel %vm17_vm3, %v2968_v33, %v676_v40  ;;  %v622_v54 = vsel %vm29_vm6, %v2953_v35, %v618_v39  ;;  %s3580_s7 = smov 112   ;;  %s3581_s23 = smov 110  }
  0x2d   :  { %v2902_v41 = vld [vmem:[%s6438_s0 + $0x59] sm:$0x2]   ;;  %v2970_v46 = vld [vmem:[%s6438_s0 + $0x190] sm:$0x40]   ;;  %v684_v55 = vsel %vm21_vm4, %v2969_v37, %v680_v45  ;;  %v2991_v5 = vld [vmem:[%s6438_s0 + $0x25] sm:$0x1]  }
  0x2e   :  { %v2903_v42 = vld [vmem:[%s6438_s0 + $0x98] sm:$0x4]   ;;  %v423_v47 = vsel %vm5_vm0, %v2902_v41, %v2901_v38  ;;  %v2973_v52 = vld [vmem:[%s6438_s0 + $0x16] sm:$0x1]   ;;  %v2992_v6 = vld [vmem:[%s6438_s0 + $0x64] sm:$0x2]   ;;  %v688_v8 = vsel %vm25_vm5, %v2970_v46, %v684_v55 }
  0x2f   :  { %v2904_v43 = vld [vmem:[%s6438_s0 + $0xd7] sm:$0x8]   ;;  %v427_v50 = vsel %vm9_vm1, %v2903_v42, %v423_v47  ;;  %v2974_v53 = vld [vmem:[%s6438_s0 + $0x55] sm:$0x2]   ;;  %v2993_v7 = vld [vmem:[%s6438_s0 + $0xa3] sm:$0x4]   ;;  %v773_v11 = vsel %vm5_vm0, %v2992_v6, %v2991_v5 }
  0x30   :  { %v2905_v48 = vld [vmem:[%s6438_s0 + $0x116] sm:$0x10]   ;;  %v431_v56 = vsel %vm13_vm2, %v2904_v43, %v427_v50  ;;  %v703_v57 = vsel %vm5_vm0, %v2974_v53, %v2973_v52  ;;  %v2975_v58 = vld [vmem:[%s6438_s0 + $0x94] sm:$0x4]   ;;  %v2994_v12 = vld [vmem:[%s6438_s0 + $0xe2] sm:$0x8]   ;;  %v777_v17 = vsel %vm9_vm1, %v2993_v7, %v773_v11 }
  0x31   :  { %v2906_v49 = vld [vmem:[%s6438_s0 + $0x155] sm:$0x20]   ;;  %v2976_v59 = vld [vmem:[%s6438_s0 + $0xd3] sm:$0x8]   ;;  %v435_v62 = vsel %vm17_vm3, %v2905_v48, %v431_v56  ;;  %v707_v0 = vsel %vm9_vm1, %v2975_v58, %v703_v57  ;;  %v2995_v13 = vld [vmem:[%s6438_s0 + $0x121] sm:$0x10]   ;;  %v781_v21 = vsel %vm13_vm2, %v2994_v12, %v777_v17 }
  0x32   :  { %v2907_v51 = vld [vmem:[%s6438_s0 + $0x194] sm:$0x40]   ;;  %v2977_v60 = vld [vmem:[%s6438_s0 + $0x112] sm:$0x10]   ;;  %588 = vrot.lane.b32.xlu0 %v587_v44, %s3580_s7  ;;  %v439_v3 = vsel %vm21_vm4, %v2906_v49, %v435_v62  ;;  %v711_v4 = vsel %vm13_vm2, %v2976_v59, %v707_v0  ;;  %v2996_v18 = vld [vmem:[%s6438_s0 + $0x160] sm:$0x20]   ;;  %v785_v26 = vsel %vm17_vm3, %v2995_v13, %v781_v21 }
  0x33   :  { %v2971_v61 = vld [vmem:[%s6438_s0 + $0x1cf] sm:$0x80]   ;;  %v2908_v63 = vld [vmem:[%s6438_s0 + $0x1d3] sm:$0x80]   ;;  %623 = vrot.lane.b32.xlu1 %v622_v54, %s3581_s23  ;;  %v443_v9 = vsel %vm25_vm5, %v2907_v51, %v439_v3  ;;  %v715_v10 = vsel %vm17_vm3, %v2977_v60, %v711_v4  ;;  %v2928_v19 = vld [vmem:[%s6438_s0 + $0x38] sm:$0x1]   ;;  %v789_v36 = vsel %vm21_vm4, %v2996_v18, %v785_v26 }
  0x34   :  { %v2978_v1 = vld [vmem:[%s6438_s0 + $0x151] sm:$0x20]   ;;  %v447_v14 = vsel %vm29_vm6, %v2908_v63, %v443_v9  ;;  %v2929_v22 = vld [vmem:[%s6438_s0 + $0x77] sm:$0x2]   ;;  %v692_v25 = vsel %vm29_vm6, %v2971_v61, %v688_v8  ;;  %v2997_v27 = vld [vmem:[%s6438_s0 + $0x19f] sm:$0x40]  }
  0x35   :  { %v2979_v2 = vld [vmem:[%s6438_s0 + $0x190] sm:$0x40]   ;;  %v719_v15 = vsel %vm21_vm4, %v2978_v1, %v715_v10  ;;  %448 = vrot.lane.b32.xlu2 %v447_v14, %s3578_s6  ;;  %v2930_v23 = vld [vmem:[%s6438_s0 + $0xb6] sm:$0x4]   ;;  %v528_v28 = vsel %vm5_vm0, %v2929_v22, %v2928_v19  ;;  %v3000_v33 = vld [vmem:[%s6438_s0 + $0x34] sm:$0x1]   ;;  %v793_v52 = vsel %vm25_vm5, %v2997_v27, %v789_v36 }
  0x36   :  { %v2980_v16 = vld [vmem:[%s6438_s0 + $0x1cf] sm:$0x80]   ;;  %v723_v20 = vsel %vm25_vm5, %v2979_v2, %v719_v15  ;;  %v2931_v24 = vld [vmem:[%s6438_s0 + $0xf5] sm:$0x8]   ;;  %v532_v31 = vsel %vm9_vm1, %v2930_v23, %v528_v28  ;;  %v3001_v34 = vld [vmem:[%s6438_s0 + $0x73] sm:$0x2]  }
  0x37   :  { %v2932_v29 = vld [vmem:[%s6438_s0 + $0x134] sm:$0x10]   ;;  %v727_v35 = vsel %vm29_vm6, %v2980_v16, %v723_v20  ;;  %v536_v37 = vsel %vm13_vm2, %v2931_v24, %v532_v31  ;;  %v808_v38 = vsel %vm5_vm0, %v3001_v34, %v3000_v33  ;;  %v3002_v39 = vld [vmem:[%s6438_s0 + $0xb2] sm:$0x4]   ;;  %s3582_s2 = smov 108   ;;  %s3583_s21 = smov 106  }
  0x38   :  { %v2933_v30 = vld [vmem:[%s6438_s0 + $0x173] sm:$0x20]   ;;  %v3003_v40 = vld [vmem:[%s6438_s0 + $0xf1] sm:$0x8]   ;;  %v2998_v42 = vld [vmem:[%s6438_s0 + $0x1de] sm:$0x80]   ;;  %v540_v43 = vsel %vm17_vm3, %v2932_v29, %v536_v37  ;;  %v812_v45 = vsel %vm9_vm1, %v3002_v39, %v808_v38 }
  0x39   :  { %v2934_v32 = vld [vmem:[%s6438_s0 + $0x1b2] sm:$0x40]   ;;  %v3004_v41 = vld [vmem:[%s6438_s0 + $0x130] sm:$0x10]   ;;  %v544_v47 = vsel %vm21_vm4, %v2933_v30, %v540_v43  ;;  %v816_v48 = vsel %vm13_vm2, %v3003_v40, %v812_v45  ;;  %v3018_v50 = vld [vmem:[%s6438_s0 + $0x3] sm:$0x1]   ;;  %v797_v5 = vsel %vm29_vm6, %v2998_v42, %v793_v52 }
  0x3a   :  { %693 = vrot.lane.b32.xlu0 %v692_v25, %s3582_s2  ;;  %v2935_v44 = vld [vmem:[%s6438_s0 + $0x1f1] sm:$0x80]   ;;  %v3005_v46 = vld [vmem:[%s6438_s0 + $0x16f] sm:$0x20]   ;;  %v3019_v51 = vld [vmem:[%s6438_s0 + $0x42] sm:$0x2]   ;;  %v548_v53 = vsel %vm25_vm5, %v2934_v32, %v544_v47  ;;  %v820_v54 = vsel %vm17_vm3, %v3004_v41, %v816_v48 }
  0x3b   :  { %v3006_v49 = vld [vmem:[%s6438_s0 + $0x1ae] sm:$0x40]   ;;  %728 = vrot.lane.b32.xlu1 %v727_v35, %s3582_s2  ;;  %v878_v55 = vsel %vm5_vm0, %v3019_v51, %v3018_v50  ;;  %v3020_v56 = vld [vmem:[%s6438_s0 + $0x81] sm:$0x4]   ;;  %v552_v59 = vsel %vm29_vm6, %v2935_v44, %v548_v53  ;;  %v824_v60 = vsel %vm21_vm4, %v3005_v46, %v820_v54  ;;  %v2955_v2 = vld [vmem:[%s6438_s0 + $0x7] sm:$0x1]  }
  0x3c   :  { %v3021_v57 = vld [vmem:[%s6438_s0 + $0xc0] sm:$0x8]   ;;  %v3007_v61 = vld [vmem:[%s6438_s0 + $0x1ed] sm:$0x80]   ;;  %v882_v62 = vsel %vm9_vm1, %v3020_v56, %v878_v55  ;;  %v828_v0 = vsel %vm25_vm5, %v3006_v49, %v824_v60  ;;  %v2956_v3 = vld [vmem:[%s6438_s0 + $0x46] sm:$0x2]  }
  0x3d   :  { %v3022_v58 = vld [vmem:[%s6438_s0 + $0xff] sm:$0x10]   ;;  %553 = vrot.lane.b32.xlu2 %v552_v59, %s3580_s7  ;;  %v886_v1 = vsel %vm13_vm2, %v3021_v57, %v882_v62  ;;  %v2957_v4 = vld [vmem:[%s6438_s0 + $0x85] sm:$0x4]   ;;  %v633_v8 = vsel %vm5_vm0, %v2956_v3, %v2955_v2  ;;  %v832_v15 = vsel %vm29_vm6, %v3007_v61, %v828_v0  ;;  %v3044_v30 = vld [vmem:[%s6438_s0 + $0x12] sm:$0x1]  }
  0x3e   :  { %v3023_v63 = vld [vmem:[%s6438_s0 + $0x13e] sm:$0x20]   ;;  %v890_v6 = vsel %vm17_vm3, %v3022_v58, %v886_v1  ;;  %v2958_v9 = vld [vmem:[%s6438_s0 + $0xc4] sm:$0x8]   ;;  %v637_v11 = vsel %vm9_vm1, %v2957_v4, %v633_v8  ;;  %s3584_s22 = smov 104   ;;  %s3585_s13 = smov 102  }
  0x3f   :  { %v3024_v7 = vld [vmem:[%s6438_s0 + $0x17d] sm:$0x40]   ;;  %v2959_v10 = vld [vmem:[%s6438_s0 + $0x103] sm:$0x10]   ;;  %v894_v16 = vsel %vm21_vm4, %v3023_v63, %v890_v6  ;;  %v641_v17 = vsel %vm13_vm2, %v2958_v9, %v637_v11  ;;  %v3045_v34 = vld [vmem:[%s6438_s0 + $0x51] sm:$0x2]  }
  0x40   :  { %v2960_v12 = vld [vmem:[%s6438_s0 + $0x142] sm:$0x20]   ;;  %v3027_v14 = vld [vmem:[%s6438_s0 + $0x3] sm:$0x1]   ;;  %v645_v22 = vsel %vm17_vm3, %v2959_v10, %v641_v17  ;;  %v898_v31 = vsel %vm25_vm5, %v3024_v7, %v894_v16  ;;  %v3046_v35 = vld [vmem:[%s6438_s0 + $0x90] sm:$0x4]   ;;  %v982_v40 = vsel %vm5_vm0, %v3045_v34, %v3044_v30 }
  0x41   :  { %v2961_v13 = vld [vmem:[%s6438_s0 + $0x181] sm:$0x40]   ;;  %v3028_v18 = vld [vmem:[%s6438_s0 + $0x42] sm:$0x2]   ;;  %v649_v26 = vsel %vm21_vm4, %v2960_v12, %v645_v22  ;;  %v3047_v36 = vld [vmem:[%s6438_s0 + $0xcf] sm:$0x8]   ;;  %v986_v43 = vsel %vm9_vm1, %v3046_v35, %v982_v40 }
  0x42   :  { %v3029_v19 = vld [vmem:[%s6438_s0 + $0x81] sm:$0x4]   ;;  %798 = vrot.lane.b32.xlu0 %v797_v5, %s3583_s21  ;;  %v2962_v23 = vld [vmem:[%s6438_s0 + $0x1c0] sm:$0x80]   ;;  %v913_v24 = vsel %vm5_vm0, %v3028_v18, %v3027_v14  ;;  %v653_v32 = vsel %vm25_vm5, %v2961_v13, %v649_v26  ;;  %v3048_v41 = vld [vmem:[%s6438_s0 + $0x10e] sm:$0x10]   ;;  %v990_v49 = vsel %vm13_vm2, %v3047_v36, %v986_v43 }
  0x43   :  { %v3030_v20 = vld [vmem:[%s6438_s0 + $0xc0] sm:$0x8]   ;;  %v917_v27 = vsel %vm9_vm1, %v3029_v19, %v913_v24  ;;  %833 = vrot.lane.b32.xlu1 %v832_v15, %s3584_s22  ;;  %v657_v37 = vsel %vm29_vm6, %v2962_v23, %v653_v32  ;;  %v3049_v44 = vld [vmem:[%s6438_s0 + $0x14d] sm:$0x20]   ;;  %v2982_v45 = vld [vmem:[%s6438_s0 + $0x25] sm:$0x1]   ;;  %v994_v54 = vsel %vm17_vm3, %v3048_v41, %v990_v49 }
  0x44   :  { %v3025_v21 = vld [vmem:[%s6438_s0 + $0x1bc] sm:$0x80]   ;;  %v921_v33 = vsel %vm13_vm2, %v3030_v20, %v917_v27  ;;  %v2983_v46 = vld [vmem:[%s6438_s0 + $0x64] sm:$0x2]   ;;  %v3050_v55 = vld [vmem:[%s6438_s0 + $0x18c] sm:$0x40]   ;;  %v998_v60 = vsel %vm21_vm4, %v3049_v44, %v994_v54 }
  0x45   :  { %v3031_v25 = vld [vmem:[%s6438_s0 + $0xff] sm:$0x10]   ;;  %658 = vrot.lane.b32.xlu2 %v657_v37, %s3581_s23  ;;  %v902_v47 = vsel %vm29_vm6, %v3025_v21, %v898_v31  ;;  %v738_v50 = vsel %vm5_vm0, %v2983_v46, %v2982_v45  ;;  %v2984_v51 = vld [vmem:[%s6438_s0 + $0xa3] sm:$0x4]   ;;  %v3053_v62 = vld [vmem:[%s6438_s0 + $0x21] sm:$0x1]   ;;  %v1002_v12 = vsel %vm25_vm5, %v3050_v55, %v998_v60 }
  0x46   :  { %v3032_v28 = vld [vmem:[%s6438_s0 + $0x13e] sm:$0x20]   ;;  %v925_v38 = vsel %vm17_vm3, %v3031_v25, %v921_v33  ;;  %v2985_v52 = vld [vmem:[%s6438_s0 + $0xe2] sm:$0x8]   ;;  %v742_v56 = vsel %vm9_vm1, %v2984_v51, %v738_v50  ;;  %v3054_v63 = vld [vmem:[%s6438_s0 + $0x60] sm:$0x2]  }
  0x47   :  { %v3033_v29 = vld [vmem:[%s6438_s0 + $0x17d] sm:$0x40]   ;;  %v929_v42 = vsel %vm21_vm4, %v3032_v28, %v925_v38  ;;  %v2986_v53 = vld [vmem:[%s6438_s0 + $0x121] sm:$0x10]   ;;  %v746_v61 = vsel %vm13_vm2, %v2985_v52, %v742_v56  ;;  %v3055_v0 = vld [vmem:[%s6438_s0 + $0x9f] sm:$0x4]   ;;  %v1017_v4 = vsel %vm5_vm0, %v3054_v63, %v3053_v62 }
  0x48   :  { %v3034_v39 = vld [vmem:[%s6438_s0 + $0x1bc] sm:$0x80]   ;;  %v933_v48 = vsel %vm25_vm5, %v3033_v29, %v929_v42  ;;  %v2987_v57 = vld [vmem:[%s6438_s0 + $0x160] sm:$0x20]   ;;  %v3051_v1 = vld [vmem:[%s6438_s0 + $0x1cb] sm:$0x80]   ;;  %v750_v2 = vsel %vm17_vm3, %v2986_v53, %v746_v61  ;;  %v1021_v8 = vsel %vm9_vm1, %v3055_v0, %v1017_v4 }
  0x49   :  { %v2988_v58 = vld [vmem:[%s6438_s0 + $0x19f] sm:$0x40]   ;;  %v937_v59 = vsel %vm29_vm6, %v3034_v39, %v933_v48  ;;  %v3056_v5 = vld [vmem:[%s6438_s0 + $0xde] sm:$0x8]   ;;  %v754_v7 = vsel %vm21_vm4, %v2987_v57, %v750_v2  ;;  %v3071_v11 = vld [vmem:[%s6438_s0 + $0x30] sm:$0x1]   ;;  %v1006_v27 = vsel %vm29_vm6, %v3051_v1, %v1002_v12 }
  0x4a   :  { %903 = vrot.lane.b32.xlu0 %v902_v47, %s3585_s13  ;;  %v2989_v3 = vld [vmem:[%s6438_s0 + $0x1de] sm:$0x80]   ;;  %v3057_v6 = vld [vmem:[%s6438_s0 + $0x11d] sm:$0x10]   ;;  %v758_v13 = vsel %vm25_vm5, %v2988_v58, %v754_v7  ;;  %v1025_v14 = vsel %vm13_vm2, %v3056_v5, %v1021_v8  ;;  %v3072_v15 = vld [vmem:[%s6438_s0 + $0x6f] sm:$0x2]  }
  0x4b   :  { %v3058_v9 = vld [vmem:[%s6438_s0 + $0x15c] sm:$0x20]   ;;  %938 = vrot.lane.b32.xlu1 %v937_v59, %s3585_s13  ;;  %v3073_v16 = vld [vmem:[%s6438_s0 + $0xae] sm:$0x4]   ;;  %v762_v18 = vsel %vm29_vm6, %v2989_v3, %v758_v13  ;;  %v1029_v19 = vsel %vm17_vm3, %v3057_v6, %v1025_v14  ;;  %v1087_v20 = vsel %vm5_vm0, %v3072_v15, %v3071_v11  ;;  %v3009_v26 = vld [vmem:[%s6438_s0 + $0x34] sm:$0x1]  }
  0x4c   :  { %v3059_v10 = vld [vmem:[%s6438_s0 + $0x19b] sm:$0x40]   ;;  %v3074_v17 = vld [vmem:[%s6438_s0 + $0xed] sm:$0x8]   ;;  %v1033_v22 = vsel %vm21_vm4, %v3058_v9, %v1029_v19  ;;  %v1091_v24 = vsel %vm9_vm1, %v3073_v16, %v1087_v20  ;;  %v3010_v30 = vld [vmem:[%s6438_s0 + $0x73] sm:$0x2]  }
  0x4d   :  { %v3075_v21 = vld [vmem:[%s6438_s0 + $0x12c] sm:$0x10]   ;;  %763 = vrot.lane.b32.xlu2 %v762_v18, %s3583_s21  ;;  %v3060_v23 = vld [vmem:[%s6438_s0 + $0x1da] sm:$0x80]   ;;  %v1037_v28 = vsel %vm25_vm5, %v3059_v10, %v1033_v22  ;;  %v1095_v29 = vsel %vm13_vm2, %v3074_v17, %v1091_v24  ;;  %v3011_v31 = vld [vmem:[%s6438_s0 + $0xb2] sm:$0x4]   ;;  %v843_v35 = vsel %vm5_vm0, %v3010_v30, %v3009_v26 }
  0x4e   :  { %v3076_v25 = vld [vmem:[%s6438_s0 + $0x16b] sm:$0x20]   ;;  %v3012_v32 = vld [vmem:[%s6438_s0 + $0xf1] sm:$0x8]   ;;  %v1099_v33 = vsel %vm17_vm3, %v3075_v21, %v1095_v29  ;;  %v1041_v38 = vsel %vm29_vm6, %v3060_v23, %v1037_v28  ;;  %v847_v40 = vsel %vm9_vm1, %v3011_v31, %v843_v35  ;;  %s3586_s6 = smov 100   ;;  %s3587_s18 = smov 98  }
  0x4f   :  { %v3077_v34 = vld [vmem:[%s6438_s0 + $0x1aa] sm:$0x40]   ;;  %v3013_v36 = vld [vmem:[%s6438_s0 + $0x130] sm:$0x10]   ;;  %v1103_v39 = vsel %vm21_vm4, %v3076_v25, %v1099_v33  ;;  %v851_v45 = vsel %vm13_vm2, %v3012_v32, %v847_v40  ;;  %v3098_v58 = vld [vmem:[%s6438_s0 + $0xe] sm:$0x1]  }
  0x50   :  { %v3014_v37 = vld [vmem:[%s6438_s0 + $0x16f] sm:$0x20]   ;;  %v3080_v42 = vld [vmem:[%s6438_s0 + $0x30] sm:$0x1]   ;;  %v855_v50 = vsel %vm17_vm3, %v3013_v36, %v851_v45  ;;  %v1107_v55 = vsel %vm25_vm5, %v3077_v34, %v1103_v39  ;;  %v3099_v59 = vld [vmem:[%s6438_s0 + $0x4d] sm:$0x2]  }
  0x51   :  { %v3015_v41 = vld [vmem:[%s6438_s0 + $0x1ae] sm:$0x40]   ;;  %v3081_v43 = vld [vmem:[%s6438_s0 + $0x6f] sm:$0x2]   ;;  %v859_v56 = vsel %vm21_vm4, %v3014_v37, %v855_v50  ;;  %v3100_v60 = vld [vmem:[%s6438_s0 + $0x8c] sm:$0x4]   ;;  %v1192_v63 = vsel %vm5_vm0, %v3099_v59, %v3098_v58 }
  0x52   :  { %1007 = vrot.lane.b32.xlu0 %v1006_v27, %s3586_s6  ;;  %v3078_v44 = vld [vmem:[%s6438_s0 + $0x1e9] sm:$0x80]   ;;  %v1122_v46 = vsel %vm5_vm0, %v3081_v43, %v3080_v42  ;;  %v3016_v51 = vld [vmem:[%s6438_s0 + $0x1ed] sm:$0x80]   ;;  %v863_v61 = vsel %vm25_vm5, %v3015_v41, %v859_v56  ;;  %v3101_v0 = vld [vmem:[%s6438_s0 + $0xcb] sm:$0x8]   ;;  %v1196_v5 = vsel %vm9_vm1, %v3100_v60, %v1192_v63 }
  0x53   :  { %v3082_v47 = vld [vmem:[%s6438_s0 + $0xae] sm:$0x4]   ;;  %1042 = vrot.lane.b32.xlu1 %v1041_v38, %s3587_s18  ;;  %v3102_v1 = vld [vmem:[%s6438_s0 + $0x10a] sm:$0x10]   ;;  %v867_v2 = vsel %vm29_vm6, %v3016_v51, %v863_v61  ;;  %v3035_v7 = vld [vmem:[%s6438_s0 + $0x12] sm:$0x1]   ;;  %v1111_v8 = vsel %vm29_vm6, %v3078_v44, %v1107_v55  ;;  %v1200_v10 = vsel %vm13_vm2, %v3101_v0, %v1196_v5 }
  0x54   :  { %v3083_v48 = vld [vmem:[%s6438_s0 + $0xed] sm:$0x8]   ;;  %v1126_v52 = vsel %vm9_vm1, %v3082_v47, %v1122_v46  ;;  %v3103_v6 = vld [vmem:[%s6438_s0 + $0x149] sm:$0x20]   ;;  %v3036_v11 = vld [vmem:[%s6438_s0 + $0x51] sm:$0x2]   ;;  %v1204_v14 = vsel %vm17_vm3, %v3102_v1, %v1200_v10 }
  0x55   :  { %v3084_v49 = vld [vmem:[%s6438_s0 + $0x12c] sm:$0x10]   ;;  %v1130_v57 = vsel %vm13_vm2, %v3083_v48, %v1126_v52  ;;  %868 = vrot.lane.b32.xlu2 %v867_v2, %s3584_s22  ;;  %v3037_v12 = vld [vmem:[%s6438_s0 + $0x90] sm:$0x4]   ;;  %v3104_v15 = vld [vmem:[%s6438_s0 + $0x188] sm:$0x40]   ;;  %v947_v16 = vsel %vm5_vm0, %v3036_v11, %v3035_v7  ;;  %v1208_v20 = vsel %vm21_vm4, %v3103_v6, %v1204_v14 }
  0x56   :  { %v3085_v53 = vld [vmem:[%s6438_s0 + $0x16b] sm:$0x20]   ;;  %v1134_v62 = vsel %vm17_vm3, %v3084_v49, %v1130_v57  ;;  %v3038_v13 = vld [vmem:[%s6438_s0 + $0xcf] sm:$0x8]   ;;  %v951_v21 = vsel %vm9_vm1, %v3037_v12, %v947_v16  ;;  %v3107_v23 = vld [vmem:[%s6438_s0 + $0x1d] sm:$0x1]   ;;  %v1212_v35 = vsel %vm25_vm5, %v3104_v15, %v1208_v20 }
  0x57   :  { %v3086_v54 = vld [vmem:[%s6438_s0 + $0x1aa] sm:$0x40]   ;;  %v1138_v3 = vsel %vm21_vm4, %v3085_v53, %v1134_v62  ;;  %v3039_v17 = vld [vmem:[%s6438_s0 + $0x10e] sm:$0x10]   ;;  %v3108_v24 = vld [vmem:[%s6438_s0 + $0x5c] sm:$0x2]   ;;  %v955_v25 = vsel %vm13_vm2, %v3038_v13, %v951_v21 }
  0x58   :  { %v3087_v4 = vld [vmem:[%s6438_s0 + $0x1e9] sm:$0x80]   ;;  %v1142_v9 = vsel %vm25_vm5, %v3086_v54, %v1138_v3  ;;  %v3040_v18 = vld [vmem:[%s6438_s0 + $0x14d] sm:$0x20]   ;;  %s3588_s29 = smov 96   ;;  %v1227_v26 = vsel %vm5_vm0, %v3108_v24, %v3107_v23  ;;  %v959_v31 = vsel %vm17_vm3, %v3039_v17, %v955_v25  ;;  %s3589_s17 = smov 92  }
  0x59   :  { %v1146_v19 = vsel %vm29_vm6, %v3087_v4, %v1142_v9  ;;  %v3041_v22 = vld [vmem:[%s6438_s0 + $0x18c] sm:$0x40]   ;;  %v3109_v27 = vld [vmem:[%s6438_s0 + $0x9b] sm:$0x4]   ;;  %v3105_v30 = vld [vmem:[%s6438_s0 + $0x1c7] sm:$0x80]   ;;  %v963_v36 = vsel %vm21_vm4, %v3040_v18, %v959_v31 }
  0x5a   :  { %1112 = vrot.lane.b32.xlu0 %v1111_v8, %s3588_s29  ;;  %v3110_v28 = vld [vmem:[%s6438_s0 + $0xda] sm:$0x8]   ;;  %v3042_v32 = vld [vmem:[%s6438_s0 + $0x1cb] sm:$0x80]   ;;  %v1231_v33 = vsel %vm9_vm1, %v3109_v27, %v1227_v26  ;;  %v3125_v39 = vld [vmem:[%s6438_s0 + $0x3b] sm:$0x1]   ;;  %v967_v41 = vsel %vm25_vm5, %v3041_v22, %v963_v36  ;;  %v1216_v52 = vsel %vm29_vm6, %v3105_v30, %v1212_v35 }
  0x5b   :  { %v3111_v29 = vld [vmem:[%s6438_s0 + $0x119] sm:$0x10]   ;;  %1147 = vrot.lane.b32.xlu1 %v1146_v19, %s3588_s29  ;;  %v1235_v37 = vsel %vm13_vm2, %v3110_v28, %v1231_v33  ;;  %v3126_v40 = vld [vmem:[%s6438_s0 + $0x7a] sm:$0x2]   ;;  %v971_v47 = vsel %vm29_vm6, %v3042_v32, %v967_v41  ;;  %v3062_v55 = vld [vmem:[%s6438_s0 + $0x21] sm:$0x1]  }
  0x5c   :  { %v3112_v34 = vld [vmem:[%s6438_s0 + $0x158] sm:$0x20]   ;;  %v1239_v42 = vsel %vm17_vm3, %v3111_v29, %v1235_v37  ;;  %v1297_v43 = vsel %vm5_vm0, %v3126_v40, %v3125_v39  ;;  %v3127_v44 = vld [vmem:[%s6438_s0 + $0xb9] sm:$0x4]   ;;  %v3063_v56 = vld [vmem:[%s6438_s0 + $0x60] sm:$0x2]  }
  0x5d   :  { %v3113_v38 = vld [vmem:[%s6438_s0 + $0x197] sm:$0x40]   ;;  %v3128_v45 = vld [vmem:[%s6438_s0 + $0xf8] sm:$0x8]   ;;  %v1243_v48 = vsel %vm21_vm4, %v3112_v34, %v1239_v42  ;;  %v1301_v50 = vsel %vm9_vm1, %v3127_v44, %v1297_v43  ;;  %972 = vrot.lane.b32.xlu2 %v971_v47, %s3586_s6  ;;  %v3064_v57 = vld [vmem:[%s6438_s0 + $0x9f] sm:$0x4]   ;;  %v1052_v60 = vsel %vm5_vm0, %v3063_v56, %v3062_v55 }
  0x5e   :  { %v3129_v46 = vld [vmem:[%s6438_s0 + $0x137] sm:$0x10]   ;;  %v3114_v49 = vld [vmem:[%s6438_s0 + $0x1d6] sm:$0x80]   ;;  %v1247_v53 = vsel %vm25_vm5, %v3113_v38, %v1243_v48  ;;  %v1305_v54 = vsel %vm13_vm2, %v3128_v45, %v1301_v50  ;;  %v3065_v61 = vld [vmem:[%s6438_s0 + $0xde] sm:$0x8]   ;;  %v1056_v1 = vsel %vm9_vm1, %v3064_v57, %v1052_v60 }
  0x5f   :  { %v3130_v51 = vld [vmem:[%s6438_s0 + $0x176] sm:$0x20]   ;;  %v1309_v58 = vsel %vm17_vm3, %v3129_v46, %v1305_v54  ;;  %v3066_v62 = vld [vmem:[%s6438_s0 + $0x11d] sm:$0x10]   ;;  %v1251_v63 = vsel %vm29_vm6, %v3114_v49, %v1247_v53  ;;  %v3134_v4 = vld [vmem:[%s6438_s0 + $0xa] sm:$0x1]   ;;  %v1060_v5 = vsel %vm13_vm2, %v3065_v61, %v1056_v1 }
  0x60   :  { %v3131_v59 = vld [vmem:[%s6438_s0 + $0x1b5] sm:$0x40]   ;;  %v1313_v0 = vsel %vm21_vm4, %v3130_v51, %v1309_v58  ;;  %v3067_v2 = vld [vmem:[%s6438_s0 + $0x15c] sm:$0x20]   ;;  %v3135_v6 = vld [vmem:[%s6438_s0 + $0x49] sm:$0x2]   ;;  %v1064_v10 = vsel %vm17_vm3, %v3066_v62, %v1060_v5 }
  0x61   :  { %v3068_v3 = vld [vmem:[%s6438_s0 + $0x19b] sm:$0x40]   ;;  %v3136_v7 = vld [vmem:[%s6438_s0 + $0x88] sm:$0x4]   ;;  %v3132_v9 = vld [vmem:[%s6438_s0 + $0x1f4] sm:$0x80]   ;;  %v1332_v12 = vsel %vm5_vm0, %v3135_v6, %v3134_v4  ;;  %v1317_v14 = vsel %vm25_vm5, %v3131_v59, %v1313_v0  ;;  %v1068_v15 = vsel %vm21_vm4, %v3067_v2, %v1064_v10 }
  0x62   :  { %1217 = vrot.lane.b32.xlu0 %v1216_v52, %s3589_s17  ;;  %v3137_v8 = vld [vmem:[%s6438_s0 + $0xc7] sm:$0x8]   ;;  %v3069_v11 = vld [vmem:[%s6438_s0 + $0x1da] sm:$0x80]   ;;  %s3590_s4 = smov 90   ;;  %v1336_v16 = vsel %vm9_vm1, %v3136_v7, %v1332_v12  ;;  %v1072_v20 = vsel %vm25_vm5, %v3068_v3, %v1068_v15  ;;  %v1321_v30 = vsel %vm29_vm6, %v3132_v9, %v1317_v14  ;;  %s3591_s11 = smov 86  }
  0x63   :  { %v3138_v13 = vld [vmem:[%s6438_s0 + $0x106] sm:$0x10]   ;;  %1252 = vrot.lane.b32.xlu1 %v1251_v63, %s3590_s4  ;;  %v3152_v19 = vld [vmem:[%s6438_s0 + $0x28] sm:$0x1]   ;;  %v1340_v21 = vsel %vm13_vm2, %v3137_v8, %v1336_v16  ;;  %v1076_v25 = vsel %vm29_vm6, %v3069_v11, %v1072_v20  ;;  %v3089_v34 = vld [vmem:[%s6438_s0 + $0x3f] sm:$0x1]  }
  0x64   :  { %v3139_v17 = vld [vmem:[%s6438_s0 + $0x145] sm:$0x20]   ;;  %v3153_v22 = vld [vmem:[%s6438_s0 + $0x67] sm:$0x2]   ;;  %v1344_v26 = vsel %vm17_vm3, %v3138_v13, %v1340_v21  ;;  %v3090_v35 = vld [vmem:[%s6438_s0 + $0x7e] sm:$0x2]  }
  0x65   :  { %v3140_v18 = vld [vmem:[%s6438_s0 + $0x184] sm:$0x40]   ;;  %v3154_v23 = vld [vmem:[%s6438_s0 + $0xa6] sm:$0x4]   ;;  %v1402_v28 = vsel %vm5_vm0, %v3153_v22, %v3152_v19  ;;  %1077 = vrot.lane.b32.xlu2 %v1076_v25, %s3587_s18  ;;  %v1348_v31 = vsel %vm21_vm4, %v3139_v17, %v1344_v26  ;;  %v1157_v38 = vsel %vm5_vm0, %v3090_v35, %v3089_v34  ;;  %v3091_v39 = vld [vmem:[%s6438_s0 + $0xbd] sm:$0x4]  }
  0x66   :  { %v3155_v24 = vld [vmem:[%s6438_s0 + $0xe5] sm:$0x8]   ;;  %v3141_v27 = vld [vmem:[%s6438_s0 + $0x1c3] sm:$0x80]   ;;  %v1406_v32 = vsel %vm9_vm1, %v3154_v23, %v1402_v28  ;;  %v1352_v36 = vsel %vm25_vm5, %v3140_v18, %v1348_v31  ;;  %v3092_v40 = vld [vmem:[%s6438_s0 + $0xfc] sm:$0x8]   ;;  %v1161_v45 = vsel %vm9_vm1, %v3091_v39, %v1157_v38 }
  0x67   :  { %v3156_v29 = vld [vmem:[%s6438_s0 + $0x124] sm:$0x10]   ;;  %v1410_v37 = vsel %vm13_vm2, %v3155_v24, %v1406_v32  ;;  %v3093_v41 = vld [vmem:[%s6438_s0 + $0x13b] sm:$0x10]   ;;  %v1356_v42 = vsel %vm29_vm6, %v3141_v27, %v1352_v36  ;;  %v1165_v50 = vsel %vm13_vm2, %v3092_v40, %v1161_v45  ;;  %v3161_v52 = vld [vmem:[%s6438_s0 + $0x37] sm:$0x1]  }
  0x68   :  { %v3157_v33 = vld [vmem:[%s6438_s0 + $0x163] sm:$0x20]   ;;  %v1414_v43 = vsel %vm17_vm3, %v3156_v29, %v1410_v37  ;;  %v3094_v46 = vld [vmem:[%s6438_s0 + $0x17a] sm:$0x20]   ;;  %v3162_v53 = vld [vmem:[%s6438_s0 + $0x76] sm:$0x2]   ;;  %v1169_v54 = vsel %vm17_vm3, %v3093_v41, %v1165_v50 }
  0x69   :  { %v3158_v44 = vld [vmem:[%s6438_s0 + $0x1a2] sm:$0x40]   ;;  %v3095_v47 = vld [vmem:[%s6438_s0 + $0x1b9] sm:$0x40]   ;;  %v1418_v48 = vsel %vm21_vm4, %v3157_v33, %v1414_v43  ;;  %v1437_v55 = vsel %vm5_vm0, %v3162_v53, %v3161_v52  ;;  %v3163_v56 = vld [vmem:[%s6438_s0 + $0xb5] sm:$0x4]   ;;  %v1173_v60 = vsel %vm21_vm4, %v3094_v46, %v1169_v54 }
  0x6a   :  { %1322 = vrot.lane.b32.xlu0 %v1321_v30, %s3591_s11  ;;  %v3159_v49 = vld [vmem:[%s6438_s0 + $0x1e1] sm:$0x80]   ;;  %v3096_v51 = vld [vmem:[%s6438_s0 + $0x1f8] sm:$0x80]   ;;  %v3164_v57 = vld [vmem:[%s6438_s0 + $0xf4] sm:$0x8]   ;;  %v1422_v59 = vsel %vm25_vm5, %v3158_v44, %v1418_v48  ;;  %v1441_v61 = vsel %vm9_vm1, %v3163_v56, %v1437_v55  ;;  %v1177_v0 = vsel %vm25_vm5, %v3095_v47, %v1173_v60 }
  0x6b   :  { %v3165_v58 = vld [vmem:[%s6438_s0 + $0x133] sm:$0x10]   ;;  %s3592_s7 = smov 84   ;;  %v1445_v1 = vsel %vm13_vm2, %v3164_v57, %v1441_v61  ;;  %v3179_v2 = vld [vmem:[%s6438_s0 + $0x15] sm:$0x1]   ;;  %v1181_v5 = vsel %vm29_vm6, %v3096_v51, %v1177_v0  ;;  %v1426_v11 = vsel %vm29_vm6, %v3159_v49, %v1422_v59  ;;  %s3593_s19 = smov 94  }
  0x6c   :  { %1357 = vrot.lane.b32.xlu1 %v1356_v42, %s3592_s7  ;;  %v3166_v62 = vld [vmem:[%s6438_s0 + $0x172] sm:$0x20]   ;;  %v3180_v3 = vld [vmem:[%s6438_s0 + $0x54] sm:$0x2]   ;;  %v1449_v6 = vsel %vm17_vm3, %v3165_v58, %v1445_v1  ;;  %v3116_v17 = vld [vmem:[%s6438_s0 + $0x2c] sm:$0x1]  }
  0x6d   :  { %v3167_v63 = vld [vmem:[%s6438_s0 + $0x1b1] sm:$0x40]   ;;  %v3181_v4 = vld [vmem:[%s6438_s0 + $0x93] sm:$0x4]   ;;  %v1507_v8 = vsel %vm5_vm0, %v3180_v3, %v3179_v2  ;;  %1182 = vrot.lane.b32.xlu2 %v1181_v5, %s3593_s19  ;;  %v1453_v12 = vsel %vm21_vm4, %v3166_v62, %v1449_v6  ;;  %v3117_v18 = vld [vmem:[%s6438_s0 + $0x6b] sm:$0x2]  }
  0x6e   :  { %v3168_v7 = vld [vmem:[%s6438_s0 + $0x1f0] sm:$0x80]   ;;  %v3182_v9 = vld [vmem:[%s6438_s0 + $0xd2] sm:$0x8]   ;;  %v1511_v13 = vsel %vm9_vm1, %v3181_v4, %v1507_v8  ;;  %v1457_v15 = vsel %vm25_vm5, %v3167_v63, %v1453_v12  ;;  %v3118_v19 = vld [vmem:[%s6438_s0 + $0xaa] sm:$0x4]   ;;  %v1262_v23 = vsel %vm5_vm0, %v3117_v18, %v3116_v17 }
  0x6f   :  { %v3183_v10 = vld [vmem:[%s6438_s0 + $0x111] sm:$0x10]   ;;  %v1515_v16 = vsel %vm13_vm2, %v3182_v9, %v1511_v13  ;;  %v1461_v20 = vsel %vm29_vm6, %v3168_v7, %v1457_v15  ;;  %v3119_v24 = vld [vmem:[%s6438_s0 + $0xe9] sm:$0x8]   ;;  %s3594_s29 = smov 80   ;;  %v1266_v28 = vsel %vm9_vm1, %v3118_v19, %v1262_v23  ;;  %s3595_s13 = smov 78  }
  0x70   :  { %v3184_v14 = vld [vmem:[%s6438_s0 + $0x150] sm:$0x20]   ;;  %v1519_v21 = vsel %vm17_vm3, %v3183_v10, %v1515_v16  ;;  %v3120_v25 = vld [vmem:[%s6438_s0 + $0x128] sm:$0x10]   ;;  %v1270_v32 = vsel %vm13_vm2, %v3119_v24, %v1266_v28  ;;  %v3188_v33 = vld [vmem:[%s6438_s0 + $0x24] sm:$0x1]  }
  0x71   :  { %v3185_v22 = vld [vmem:[%s6438_s0 + $0x18f] sm:$0x40]   ;;  %v1523_v26 = vsel %vm21_vm4, %v3184_v14, %v1519_v21  ;;  %v3121_v29 = vld [vmem:[%s6438_s0 + $0x167] sm:$0x20]   ;;  %v3189_v34 = vld [vmem:[%s6438_s0 + $0x63] sm:$0x2]   ;;  %v1274_v37 = vsel %vm17_vm3, %v3120_v25, %v1270_v32 }
  0x72   :  { %1427 = vrot.lane.b32.xlu0 %v1426_v11, %s3594_s29  ;;  %v3186_v27 = vld [vmem:[%s6438_s0 + $0x1ce] sm:$0x80]   ;;  %v3122_v30 = vld [vmem:[%s6438_s0 + $0x1a6] sm:$0x40]   ;;  %v3190_v35 = vld [vmem:[%s6438_s0 + $0xa2] sm:$0x4]   ;;  %v1527_v36 = vsel %vm25_vm5, %v3185_v22, %v1523_v26  ;;  %v1542_v38 = vsel %vm5_vm0, %v3189_v34, %v3188_v33  ;;  %v1278_v41 = vsel %vm21_vm4, %v3121_v29, %v1274_v37 }
  0x73   :  { %v3123_v31 = vld [vmem:[%s6438_s0 + $0x1e5] sm:$0x80]   ;;  %vm65_vm7 = vcmask 261120   ;;  %v3191_v39 = vld [vmem:[%s6438_s0 + $0xe1] sm:$0x8]   ;;  %v1546_v42 = vsel %vm9_vm1, %v3190_v35, %v1542_v38  ;;  %v1282_v46 = vsel %vm25_vm5, %v3122_v30, %v1278_v41  ;;  %v1531_v51 = vsel %vm29_vm6, %v3186_v27, %v1527_v36  ;;  %s3596_s8 = smov 88  }
  0x74   :  { %1462 = vrot.lane.b32.xlu1 %v1461_v20, %s3595_s13  ;;  %v3192_v40 = vld [vmem:[%s6438_s0 + $0x120] sm:$0x10]   ;;  %v3206_v45 = vld [vmem:[%s6438_s0 + $0x2] sm:$0x1]   ;;  %v1550_v47 = vsel %vm13_vm2, %v3191_v39, %v1546_v42  ;;  %v1286_v52 = vsel %vm29_vm6, %v3123_v31, %v1282_v46  ;;  %vm205_vm8 = vcmask 228352   ;;  %vm135_vm9 = vcmask 244736  }
  0x75   :  { %v3193_v43 = vld [vmem:[%s6438_s0 + $0x15f] sm:$0x20]   ;;  %v3207_v48 = vld [vmem:[%s6438_s0 + $0x41] sm:$0x2]   ;;  %v1554_v53 = vsel %vm17_vm3, %v3192_v40, %v1550_v47  ;;  %1287 = vrot.lane.b32.xlu2 %v1286_v52, %s3596_s8  ;;  %v3143_v0 = vld [vmem:[%s6438_s0 + $0x19] sm:$0x1]  }
  0x76   :  { %v3194_v44 = vld [vmem:[%s6438_s0 + $0x19e] sm:$0x40]   ;;  %v3208_v49 = vld [vmem:[%s6438_s0 + $0x80] sm:$0x4]   ;;  %v1612_v55 = vsel %vm5_vm0, %v3207_v48, %v3206_v45  ;;  %v204_v57 = vpop.permute.xlu2 %203   ;;  %v1558_v58 = vsel %vm21_vm4, %v3193_v43, %v1554_v53  ;;  %v3144_v1 = vld [vmem:[%s6438_s0 + $0x58] sm:$0x2]  }
  0x77   :  { %v3209_v50 = vld [vmem:[%s6438_s0 + $0xbf] sm:$0x8]   ;;  %v3195_v54 = vld [vmem:[%s6438_s0 + $0x1dd] sm:$0x80]   ;;  %v1616_v59 = vsel %vm9_vm1, %v3208_v49, %v1612_v55  ;;  %v1562_v62 = vsel %vm25_vm5, %v3194_v44, %v1558_v58  ;;  %2846 = vst.msk [vmem:[%s6439_s1 + $0x60] sm:$0xff] %vm205_vm8, %v204_v57   ;;  %s3597_s23 = smov 74   ;;  %v1367_v5 = vsel %vm5_vm0, %v3144_v1, %v3143_v0 }
  0x78   :  { %v3210_v56 = vld [vmem:[%s6438_s0 + $0xfe] sm:$0x10]   ;;  %v1620_v63 = vsel %vm13_vm2, %v3209_v50, %v1616_v59  ;;  %v1566_v2 = vsel %vm29_vm6, %v3195_v54, %v1562_v62  ;;  %v3145_v6 = vld [vmem:[%s6438_s0 + $0x97] sm:$0x4]   ;;  %s3598_s3 = smov 72   ;;  %vm100_vm10 = vcmask 1048560  }
  0x79   :  { %v3211_v60 = vld [vmem:[%s6438_s0 + $0x13d] sm:$0x20]   ;;  %v1624_v3 = vsel %vm17_vm3, %v3210_v56, %v1620_v63  ;;  %v3146_v7 = vld [vmem:[%s6438_s0 + $0xd6] sm:$0x8]   ;;  %v1371_v10 = vsel %vm9_vm1, %v3145_v6, %v1367_v5  ;;  %v3214_v17 = vld [vmem:[%s6438_s0 + $0x11] sm:$0x1]  }
  0x7a   :  { %v3212_v61 = vld [vmem:[%s6438_s0 + $0x17c] sm:$0x40]   ;;  %1532 = vrot.lane.b32.xlu0 %v1531_v51, %s3597_s23  ;;  %v3147_v8 = vld [vmem:[%s6438_s0 + $0x115] sm:$0x10]   ;;  %v1628_v9 = vsel %vm21_vm4, %v3211_v60, %v1624_v3  ;;  %v1375_v16 = vsel %vm13_vm2, %v3146_v7, %v1371_v10  ;;  %v3215_v18 = vld [vmem:[%s6438_s0 + $0x50] sm:$0x2]  }
  0x7b   :  { %v3213_v4 = vld [vmem:[%s6438_s0 + $0x1bb] sm:$0x80]   ;;  %v3148_v11 = vld [vmem:[%s6438_s0 + $0x154] sm:$0x20]   ;;  %v1632_v15 = vsel %vm25_vm5, %v3212_v61, %v1628_v9  ;;  %v3216_v19 = vld [vmem:[%s6438_s0 + $0x8f] sm:$0x4]   ;;  %v1379_v20 = vsel %vm17_vm3, %v3147_v8, %v1375_v16  ;;  %v1646_v21 = vsel %vm5_vm0, %v3215_v18, %v3214_v17 }
  0x7c   :  { %v3149_v12 = vld [vmem:[%s6438_s0 + $0x193] sm:$0x40]   ;;  %v64_v14 = vpop.permute.xlu0 %63   ;;  %1567 = vrot.lane.b32.xlu1 %v1566_v2, %s3598_s3  ;;  %v3217_v22 = vld [vmem:[%s6438_s0 + $0xce] sm:$0x8]   ;;  %v1383_v25 = vsel %vm21_vm4, %v3148_v11, %v1379_v20  ;;  %v1650_v26 = vsel %vm9_vm1, %v3216_v19, %v1646_v21  ;;  %v1636_v30 = vsel %vm29_vm6, %v3213_v4, %v1632_v15  ;;  %v3232_v33 = vld [vmem:[%s6438_s0 + $0x2f] sm:$0x1]  }
  0x7d   :  { %v3150_v13 = vld [vmem:[%s6438_s0 + $0x1d2] sm:$0x80]   ;;  %2810 = vst.msk [vmem:[%s6439_s1 + $0x20] sm:$0xff] %vm65_vm7, %v64_v14   ;;  %v3218_v23 = vld [vmem:[%s6438_s0 + $0x10d] sm:$0x10]   ;;  %v134_v24 = vpop.permute.xlu1 %133   ;;  %v1387_v31 = vsel %vm25_vm5, %v3149_v12, %v1383_v25  ;;  %v1654_v32 = vsel %vm13_vm2, %v3217_v22, %v1650_v26  ;;  %s3599_s5 = smov 82  }
  0x7e   :  { %v3219_v27 = vld [vmem:[%s6438_s0 + $0x14c] sm:$0x20]   ;;  %2828 = vst.msk [vmem:[%s6439_s1 + $0x40] sm:$0xff] %vm135_vm9, %v134_v24   ;;  %v3233_v34 = vld [vmem:[%s6438_s0 + $0x6e] sm:$0x2]   ;;  %v239_v35 = vpop.permute.xlu2 %238   ;;  %v1391_v36 = vsel %vm29_vm6, %v3150_v13, %v1387_v31  ;;  %v1658_v37 = vsel %vm17_vm3, %v3218_v23, %v1654_v32  ;;  %s3600_s11 = smov 68  }
  0x7f   :  { %v3220_v28 = vld [vmem:[%s6438_s0 + $0x18b] sm:$0x40]   ;;  %v1716_v38 = vsel %vm5_vm0, %v3233_v34, %v3232_v33  ;;  %v3234_v39 = vld [vmem:[%s6438_s0 + $0xad] sm:$0x4]   ;;  %1392 = vrot.lane.b32.xlu2 %v1391_v36, %s3599_s5  ;;  %v1662_v42 = vsel %vm21_vm4, %v3219_v27, %v1658_v37  ;;  %vm240_vm11 = vcmask 1048528   ;;  %vm170_vm12 = vcmask 1048544  }
  0x80   :  { %v3221_v29 = vld [vmem:[%s6438_s0 + $0x1ca] sm:$0x80]   ;;  %v3235_v40 = vld [vmem:[%s6438_s0 + $0xec] sm:$0x8]   ;;  %v1720_v43 = vsel %vm9_vm1, %v3234_v39, %v1716_v38  ;;  %v1666_v46 = vsel %vm25_vm5, %v3220_v28, %v1662_v42  ;;  %v3170_v49 = vld [vmem:[%s6438_s0 + $0x6] sm:$0x1]  }
  0x81   :  { %v3236_v41 = vld [vmem:[%s6438_s0 + $0x12b] sm:$0x10]   ;;  %v1724_v47 = vsel %vm13_vm2, %v3235_v40, %v1720_v43  ;;  %v3171_v50 = vld [vmem:[%s6438_s0 + $0x45] sm:$0x2]   ;;  %v1670_v51 = vsel %vm29_vm6, %v3221_v29, %v1666_v46  ;;  %2855 = vst.msk [vmem:[%s6439_s1 + $0x58] sm:$0xff] %vm240_vm11, %v239_v35   ;;  %vm275_vm13 = vcmask 211968  }
  0x82   :  { %v3237_v44 = vld [vmem:[%s6438_s0 + $0x16a] sm:$0x20]   ;;  %1637 = vrot.lane.b32.xlu0 %v1636_v30, %s3600_s11  ;;  %v1728_v52 = vsel %vm17_vm3, %v3236_v41, %v1724_v47  ;;  %v1472_v53 = vsel %vm5_vm0, %v3171_v50, %v3170_v49  ;;  %v3172_v54 = vld [vmem:[%s6438_s0 + $0x84] sm:$0x4]   ;;  %s3601_s26 = smov 66   ;;  %s3602_s2 = smov 62  }
  0x83   :  { %v3238_v45 = vld [vmem:[%s6438_s0 + $0x1a9] sm:$0x40]   ;;  %v3173_v55 = vld [vmem:[%s6438_s0 + $0xc3] sm:$0x8]   ;;  %v1732_v57 = vsel %vm21_vm4, %v3237_v44, %v1728_v52  ;;  %v1476_v58 = vsel %vm9_vm1, %v3172_v54, %v1472_v53  ;;  %v3241_v1 = vld [vmem:[%s6438_s0 + $0x3e] sm:$0x1]  }
  0x84   :  { %v3239_v48 = vld [vmem:[%s6438_s0 + $0x1e8] sm:$0x80]   ;;  %v99_v56 = vpop.permute.xlu0 %98   ;;  %1671 = vrot.lane.b32.xlu1 %v1670_v51, %s3601_s26  ;;  %v3174_v59 = vld [vmem:[%s6438_s0 + $0x102] sm:$0x10]   ;;  %v1736_v62 = vsel %vm25_vm5, %v3238_v45, %v1732_v57  ;;  %v1480_v63 = vsel %vm13_vm2, %v3173_v55, %v1476_v58  ;;  %v3242_v4 = vld [vmem:[%s6438_s0 + $0x7d] sm:$0x2]  }
  0x85   :  { %v3175_v60 = vld [vmem:[%s6438_s0 + $0x141] sm:$0x20]   ;;  %2819 = vst.msk [vmem:[%s6439_s1 + $0x18] sm:$0xff] %vm100_vm10, %v99_v56   ;;  %v169_v2 = vpop.permute.xlu1 %168   ;;  %v1484_v3 = vsel %vm17_vm3, %v3174_v59, %v1480_v63  ;;  %v3243_v5 = vld [vmem:[%s6438_s0 + $0xbc] sm:$0x4]   ;;  %v1740_v7 = vsel %vm29_vm6, %v3239_v48, %v1736_v62  ;;  %v1751_v9 = vsel %vm5_vm0, %v3242_v4, %v3241_v1  ;;  %s3603_s3 = smov 76  }
  0x86   :  { %v3176_v61 = vld [vmem:[%s6438_s0 + $0x180] sm:$0x40]   ;;  %v3244_v6 = vld [vmem:[%s6438_s0 + $0xfb] sm:$0x8]   ;;  %2837 = vst.msk [vmem:[%s6439_s1 + $0x38] sm:$0xff] %vm170_vm12, %v169_v2   ;;  %v1488_v8 = vsel %vm21_vm4, %v3175_v60, %v1484_v3  ;;  %v344_v12 = vpop.permute.xlu2 %343   ;;  %v1755_v14 = vsel %vm9_vm1, %v3243_v5, %v1751_v9  ;;  %vm345_vm14 = vcmask 195584  }
  0x87   :  { %v3177_v0 = vld [vmem:[%s6438_s0 + $0x1bf] sm:$0x80]   ;;  %v3245_v10 = vld [vmem:[%s6438_s0 + $0x13a] sm:$0x10]   ;;  %v1492_v13 = vsel %vm25_vm5, %v3176_v61, %v1488_v8  ;;  %v3259_v17 = vld [vmem:[%s6438_s0 + $0x1c] sm:$0x1]   ;;  %v1759_v19 = vsel %vm13_vm2, %v3244_v6, %v1755_v14 }
  0x88   :  { %v3246_v11 = vld [vmem:[%s6438_s0 + $0x179] sm:$0x20]   ;;  %v1496_v18 = vsel %vm29_vm6, %v3177_v0, %v1492_v13  ;;  %v3260_v20 = vld [vmem:[%s6438_s0 + $0x5b] sm:$0x2]   ;;  %v1763_v23 = vsel %vm17_vm3, %v3245_v10, %v1759_v19  ;;  %2882 = vst.msk [vmem:[%s6439_s1 + $0x18] sm:$0xff] %vm345_vm14, %v344_v12   ;;  %vm310_vm15 = vcmask 1048512  }
  0x89   :  { %v3247_v15 = vld [vmem:[%s6438_s0 + $0x1b8] sm:$0x40]   ;;  %v3261_v21 = vld [vmem:[%s6438_s0 + $0x9a] sm:$0x4]   ;;  %1497 = vrot.lane.b32.xlu2 %v1496_v18, %s3603_s3  ;;  %v1821_v24 = vsel %vm5_vm0, %v3260_v20, %v3259_v17  ;;  %v1767_v27 = vsel %vm21_vm4, %v3246_v11, %v1763_v23  ;;  %vm380_vm7 = vcmask 1048496   ;;  %s3604_s9 = smov 60  }
  0x8a   :  { %v3248_v16 = vld [vmem:[%s6438_s0 + $0x1f7] sm:$0x80]   ;;  %v3262_v22 = vld [vmem:[%s6438_s0 + $0xd9] sm:$0x8]   ;;  %1741 = vrot.lane.b32.xlu0 %v1740_v7, %s3602_s2  ;;  %v1825_v28 = vsel %vm9_vm1, %v3261_v21, %v1821_v24  ;;  %v1771_v32 = vsel %vm25_vm5, %v3247_v15, %v1767_v27  ;;  %v3197_v34 = vld [vmem:[%s6438_s0 + $0x33] sm:$0x1]  }
  0x8b   :  { %v3263_v25 = vld [vmem:[%s6438_s0 + $0x118] sm:$0x10]   ;;  %v1829_v33 = vsel %vm13_vm2, %v3262_v22, %v1825_v28  ;;  %v3198_v35 = vld [vmem:[%s6438_s0 + $0x72] sm:$0x2]   ;;  %v1775_v36 = vsel %vm29_vm6, %v3248_v16, %v1771_v32  ;;  %v3268_v50 = vld [vmem:[%s6438_s0 + $0x2b] sm:$0x1]  }
  0x8c   :  { %v3264_v26 = vld [vmem:[%s6438_s0 + $0x157] sm:$0x20]   ;;  %v274_v31 = vpop.permute.xlu0 %273   ;;  %v1833_v37 = vsel %vm17_vm3, %v3263_v25, %v1829_v33  ;;  %v1577_v38 = vsel %vm5_vm0, %v3198_v35, %v3197_v34  ;;  %v3199_v39 = vld [vmem:[%s6438_s0 + $0xb1] sm:$0x4]   ;;  %1776 = vrot.lane.b32.xlu1 %v1775_v36, %s3604_s9  ;;  %v3269_v53 = vld [vmem:[%s6438_s0 + $0x6a] sm:$0x2]  }
  0x8d   :  { %v3265_v29 = vld [vmem:[%s6438_s0 + $0x196] sm:$0x40]   ;;  %2864 = vst.msk [vmem:[%s6439_s1 + $0x80] sm:$0xff] %vm275_vm13, %v274_v31   ;;  %v3200_v40 = vld [vmem:[%s6438_s0 + $0xf0] sm:$0x8]   ;;  %v1837_v41 = vsel %vm21_vm4, %v3264_v26, %v1833_v37  ;;  %v309_v42 = vpop.permute.xlu1 %308   ;;  %v1581_v43 = vsel %vm9_vm1, %v3199_v39, %v1577_v38  ;;  %v1856_v58 = vsel %vm5_vm0, %v3269_v53, %v3268_v50  ;;  %s3605_s20 = smov 56  }
  0x8e   :  { %v3266_v30 = vld [vmem:[%s6438_s0 + $0x1d5] sm:$0x80]   ;;  %v3201_v44 = vld [vmem:[%s6438_s0 + $0x12f] sm:$0x10]   ;;  %v1841_v47 = vsel %vm25_vm5, %v3265_v29, %v1837_v41  ;;  %2873 = vst.msk [vmem:[%s6439_s1 + $0x78] sm:$0xff] %vm310_vm15, %v309_v42   ;;  %v1585_v48 = vsel %vm13_vm2, %v3200_v40, %v1581_v43  ;;  %s3606_s4 = smov 70  }
  0x8f   :  { %v3202_v45 = vld [vmem:[%s6438_s0 + $0x16e] sm:$0x20]   ;;  %v1845_v51 = vsel %vm29_vm6, %v3266_v30, %v1841_v47  ;;  %v1589_v52 = vsel %vm17_vm3, %v3201_v44, %v1585_v48  ;;  %v3270_v54 = vld [vmem:[%s6438_s0 + $0xa9] sm:$0x4]   ;;  %v449_v56 = vpop.permute.xlu2 %448   ;;  %v3286_v1 = vld [vmem:[%s6438_s0 + $0x9] sm:$0x1]  }
  0x90   :  { %v3203_v46 = vld [vmem:[%s6438_s0 + $0x1ad] sm:$0x40]   ;;  %v3271_v55 = vld [vmem:[%s6438_s0 + $0xe8] sm:$0x8]   ;;  %v1593_v57 = vsel %vm21_vm4, %v3202_v45, %v1589_v52  ;;  %v1860_v63 = vsel %vm9_vm1, %v3270_v54, %v1856_v58  ;;  %v3287_v2 = vld [vmem:[%s6438_s0 + $0x48] sm:$0x2]  }
  0x91   :  { %v3204_v49 = vld [vmem:[%s6438_s0 + $0x1ec] sm:$0x80]   ;;  %v3272_v59 = vld [vmem:[%s6438_s0 + $0x127] sm:$0x10]   ;;  %v1597_v62 = vsel %vm25_vm5, %v3203_v46, %v1593_v57  ;;  %v1864_v4 = vsel %vm13_vm2, %v3271_v55, %v1860_v63  ;;  %v1926_v5 = vsel %vm5_vm0, %v3287_v2, %v3286_v1  ;;  %v3288_v6 = vld [vmem:[%s6438_s0 + $0x87] sm:$0x4]  }
  0x92   :  { %v3273_v60 = vld [vmem:[%s6438_s0 + $0x166] sm:$0x20]   ;;  %1846 = vrot.lane.b32.xlu0 %v1845_v51, %s3605_s20  ;;  %v1601_v3 = vsel %vm29_vm6, %v3204_v49, %v1597_v62  ;;  %v3289_v7 = vld [vmem:[%s6438_s0 + $0xc6] sm:$0x8]   ;;  %v1868_v10 = vsel %vm17_vm3, %v3272_v59, %v1864_v4  ;;  %v1930_v11 = vsel %vm9_vm1, %v3288_v6, %v1926_v5  ;;  %vm450_vm8 = vcmask 1048480   ;;  %s3607_s28 = smov 54  }
  0x93   :  { %v3274_v61 = vld [vmem:[%s6438_s0 + $0x1a5] sm:$0x40]   ;;  %v3290_v8 = vld [vmem:[%s6438_s0 + $0x105] sm:$0x10]   ;;  %1602 = vrot.lane.b32.xlu2 %v1601_v3, %s3606_s4  ;;  %v1872_v15 = vsel %vm21_vm4, %v3273_v60, %v1868_v10  ;;  %v1934_v16 = vsel %vm13_vm2, %v3289_v7, %v1930_v11  ;;  %vm415_vm9 = vcmask 179200   ;;  %2909 = vst.msk [vmem:[%s6439_s1 + $0x30] sm:$0xff] %vm450_vm8, %v449_v56  }
  0x94   :  { %v3275_v0 = vld [vmem:[%s6438_s0 + $0x1e4] sm:$0x80]   ;;  %v379_v9 = vpop.permute.xlu0 %378   ;;  %v3291_v12 = vld [vmem:[%s6438_s0 + $0x144] sm:$0x20]   ;;  %v3223_v17 = vld [vmem:[%s6438_s0 + $0x20] sm:$0x1]   ;;  %v1876_v18 = vsel %vm25_vm5, %v3274_v61, %v1872_v15  ;;  %v1938_v19 = vsel %vm17_vm3, %v3290_v8, %v1934_v16 }
  0x95   :  { %v3292_v13 = vld [vmem:[%s6438_s0 + $0x183] sm:$0x40]   ;;  %2891 = vst.msk [vmem:[%s6439_s1 + $0x10] sm:$0xff] %vm380_vm7, %v379_v9   ;;  %v414_v20 = vpop.permute.xlu1 %413   ;;  %vm485_vm10 = vcmask 162816   ;;  %v3224_v21 = vld [vmem:[%s6438_s0 + $0x5f] sm:$0x2]   ;;  %v1880_v23 = vsel %vm29_vm6, %v3275_v0, %v1876_v18  ;;  %v1942_v24 = vsel %vm21_vm4, %v3291_v12, %v1938_v19 }
  0x96   :  { %v3293_v14 = vld [vmem:[%s6438_s0 + $0x1c2] sm:$0x80]   ;;  %v3225_v22 = vld [vmem:[%s6438_s0 + $0x9e] sm:$0x4]   ;;  %2900 = vst.msk [vmem:[%s6439_s1 + $0x38] sm:$0xff] %vm415_vm9, %v414_v20   ;;  %v1681_v25 = vsel %vm5_vm0, %v3224_v21, %v3223_v17  ;;  %1881 = vrot.lane.b32.xlu1 %v1880_v23, %s3607_s28  ;;  %v1946_v28 = vsel %vm25_vm5, %v3292_v13, %v1942_v24  ;;  %s3608_s12 = smov 50  }
  0x97   :  { %v3226_v26 = vld [vmem:[%s6438_s0 + $0xdd] sm:$0x8]   ;;  %v1685_v29 = vsel %vm9_vm1, %v3225_v22, %v1681_v25  ;;  %v554_v33 = vpop.permute.xlu2 %553   ;;  %v1950_v34 = vsel %vm29_vm6, %v3293_v14, %v1946_v28  ;;  %v3295_v36 = vld [vmem:[%s6438_s0 + $0x18] sm:$0x1]   ;;  %v3313_v48 = vld [vmem:[%s6438_s0 + $0x36] sm:$0x1]  }
  0x98   :  { %v3227_v27 = vld [vmem:[%s6438_s0 + $0x11c] sm:$0x10]   ;;  %v1689_v35 = vsel %vm13_vm2, %v3226_v26, %v1685_v29  ;;  %v3296_v37 = vld [vmem:[%s6438_s0 + $0x57] sm:$0x2]   ;;  %v3314_v52 = vld [vmem:[%s6438_s0 + $0x75] sm:$0x2]  }
  0x99   :  { %v3228_v30 = vld [vmem:[%s6438_s0 + $0x15b] sm:$0x20]   ;;  %v3297_v38 = vld [vmem:[%s6438_s0 + $0x96] sm:$0x4]   ;;  %v1693_v39 = vsel %vm17_vm3, %v3227_v27, %v1689_v35  ;;  %v1961_v40 = vsel %vm5_vm0, %v3296_v37, %v3295_v36  ;;  %v3315_v53 = vld [vmem:[%s6438_s0 + $0xb4] sm:$0x4]   ;;  %v2031_v57 = vsel %vm5_vm0, %v3314_v52, %v3313_v48 }
  0x9a   :  { %v3229_v31 = vld [vmem:[%s6438_s0 + $0x19a] sm:$0x40]   ;;  %1951 = vrot.lane.b32.xlu0 %v1950_v34, %s3608_s12  ;;  %v3298_v41 = vld [vmem:[%s6438_s0 + $0xd5] sm:$0x8]   ;;  %v1697_v44 = vsel %vm21_vm4, %v3228_v30, %v1693_v39  ;;  %v1965_v45 = vsel %vm9_vm1, %v3297_v38, %v1961_v40  ;;  %v3316_v54 = vld [vmem:[%s6438_s0 + $0xf3] sm:$0x8]   ;;  %v2035_v61 = vsel %vm9_vm1, %v3315_v53, %v2031_v57 }
  0x9b   :  { %v3230_v32 = vld [vmem:[%s6438_s0 + $0x1d9] sm:$0x80]   ;;  %v3299_v42 = vld [vmem:[%s6438_s0 + $0x114] sm:$0x10]   ;;  %v1701_v50 = vsel %vm25_vm5, %v3229_v31, %v1697_v44  ;;  %v1969_v51 = vsel %vm13_vm2, %v3298_v41, %v1965_v45  ;;  %v3317_v58 = vld [vmem:[%s6438_s0 + $0x132] sm:$0x10]   ;;  %v2039_v2 = vsel %vm13_vm2, %v3316_v54, %v2035_v61 }
  0x9c   :  { %v3300_v43 = vld [vmem:[%s6438_s0 + $0x153] sm:$0x20]   ;;  %v484_v49 = vpop.permute.xlu0 %483   ;;  %v1705_v55 = vsel %vm29_vm6, %v3230_v32, %v1701_v50  ;;  %v1973_v56 = vsel %vm17_vm3, %v3299_v42, %v1969_v51  ;;  %v3318_v59 = vld [vmem:[%s6438_s0 + $0x171] sm:$0x20]   ;;  %s3609_s10 = smov 64   ;;  %vm555_vm11 = vcmask 146432   ;;  %v2043_v6 = vsel %vm17_vm3, %v3317_v58, %v2039_v2 }
  0x9d   :  { %v3301_v46 = vld [vmem:[%s6438_s0 + $0x192] sm:$0x40]   ;;  %2918 = vst.msk [vmem:[%s6439_s1 + $0x58] sm:$0xff] %vm485_vm10, %v484_v49   ;;  %1706 = vrot.lane.b32.xlu2 %v1705_v55, %s3609_s10  ;;  %v1977_v60 = vsel %vm21_vm4, %v3300_v43, %v1973_v56  ;;  %v3319_v62 = vld [vmem:[%s6438_s0 + $0x1b0] sm:$0x40]   ;;  %vm520_vm12 = vcmask 1048464   ;;  %v519_v0 = vpop.permute.xlu1 %518   ;;  %v2047_v11 = vsel %vm21_vm4, %v3318_v59, %v2043_v6 }
  0x9e   :  { %v3302_v47 = vld [vmem:[%s6438_s0 + $0x1d1] sm:$0x80]   ;;  %v3320_v63 = vld [vmem:[%s6438_s0 + $0x1ef] sm:$0x80]   ;;  %v1981_v1 = vsel %vm25_vm5, %v3301_v46, %v1977_v60  ;;  %2936 = vst.msk [vmem:[%s6439_s1 + $0x78] sm:$0xff] %vm555_vm11, %v554_v33   ;;  %vm590_vm13 = vcmask 1048448   ;;  %v2051_v16 = vsel %vm25_vm5, %v3319_v62, %v2047_v11 }
  0x9f   :  { %v3250_v3 = vld [vmem:[%s6438_s0 + $0xd] sm:$0x1]   ;;  %v1985_v5 = vsel %vm29_vm6, %v3302_v47, %v1981_v1  ;;  %2927 = vst.msk [vmem:[%s6439_s1 + $0x50] sm:$0xff] %vm520_vm12, %v519_v0   ;;  %v659_v10 = vpop.permute.xlu2 %658   ;;  %s3610_s9 = smov 48   ;;  %v3322_v19 = vld [vmem:[%s6438_s0 + $0x5] sm:$0x1]   ;;  %v2055_v21 = vsel %vm29_vm6, %v3320_v63, %v2051_v16 }
  0xa0   :  { %v3251_v4 = vld [vmem:[%s6438_s0 + $0x4c] sm:$0x2]   ;;  %1986 = vrot.lane.b32.xlu1 %v1985_v5, %s3610_s9  ;;  %v3323_v20 = vld [vmem:[%s6438_s0 + $0x44] sm:$0x2]   ;;  %s3611_s13 = smov 44   ;;  %s3612_s4 = smov 58  }
  0xa1   :  { %v1786_v7 = vsel %vm5_vm0, %v3251_v4, %v3250_v3  ;;  %v3252_v8 = vld [vmem:[%s6438_s0 + $0x8b] sm:$0x4]   ;;  %v2066_v23 = vsel %vm5_vm0, %v3323_v20, %v3322_v19  ;;  %v3324_v24 = vld [vmem:[%s6438_s0 + $0x83] sm:$0x4]   ;;  %v3340_v35 = vld [vmem:[%s6438_s0 + $0x23] sm:$0x1]  }
  0xa2   :  { %v3253_v9 = vld [vmem:[%s6438_s0 + $0xca] sm:$0x8]   ;;  %v1790_v12 = vsel %vm9_vm1, %v3252_v8, %v1786_v7  ;;  %v3325_v25 = vld [vmem:[%s6438_s0 + $0xc2] sm:$0x8]   ;;  %2056 = vrot.lane.b32.xlu0 %v2055_v21, %s3611_s13  ;;  %v2070_v29 = vsel %vm9_vm1, %v3324_v24, %v2066_v23  ;;  %v3341_v36 = vld [vmem:[%s6438_s0 + $0x62] sm:$0x2]  }
  0xa3   :  { %v3254_v13 = vld [vmem:[%s6438_s0 + $0x109] sm:$0x10]   ;;  %v1794_v17 = vsel %vm13_vm2, %v3253_v9, %v1790_v12  ;;  %v3326_v26 = vld [vmem:[%s6438_s0 + $0x101] sm:$0x10]   ;;  %v2074_v34 = vsel %vm13_vm2, %v3325_v25, %v2070_v29  ;;  %v2136_v39 = vsel %vm5_vm0, %v3341_v36, %v3340_v35  ;;  %v3342_v40 = vld [vmem:[%s6438_s0 + $0xa1] sm:$0x4]  }
  0xa4   :  { %v3255_v14 = vld [vmem:[%s6438_s0 + $0x148] sm:$0x20]   ;;  %v1798_v22 = vsel %vm17_vm3, %v3254_v13, %v1794_v17  ;;  %v589_v27 = vpop.permute.xlu0 %588   ;;  %v3327_v30 = vld [vmem:[%s6438_s0 + $0x140] sm:$0x20]   ;;  %v2078_v38 = vsel %vm17_vm3, %v3326_v26, %v2074_v34  ;;  %v3343_v41 = vld [vmem:[%s6438_s0 + $0xe0] sm:$0x8]   ;;  %v2140_v45 = vsel %vm9_vm1, %v3342_v40, %v2136_v39 }
  0xa5   :  { %v3256_v15 = vld [vmem:[%s6438_s0 + $0x187] sm:$0x40]   ;;  %v1802_v28 = vsel %vm21_vm4, %v3255_v14, %v1798_v22  ;;  %v3328_v31 = vld [vmem:[%s6438_s0 + $0x17f] sm:$0x40]   ;;  %2945 = vst.msk [vmem:[%s6439_s1 + $0x70] sm:$0xff] %vm590_vm13, %v589_v27   ;;  %v624_v43 = vpop.permute.xlu1 %623   ;;  %v2082_v44 = vsel %vm21_vm4, %v3327_v30, %v2078_v38  ;;  %v2144_v50 = vsel %vm13_vm2, %v3343_v41, %v2140_v45  ;;  %vm660_vm14 = vcmask 1048432  }
  0xa6   :  { %v3257_v18 = vld [vmem:[%s6438_s0 + $0x1c6] sm:$0x80]   ;;  %v3329_v32 = vld [vmem:[%s6438_s0 + $0x1be] sm:$0x80]   ;;  %v1806_v33 = vsel %vm25_vm5, %v3256_v15, %v1802_v28  ;;  %v3344_v42 = vld [vmem:[%s6438_s0 + $0x11f] sm:$0x10]   ;;  %v2086_v49 = vsel %vm25_vm5, %v3328_v31, %v2082_v44 }
  0xa7   :  { %v1810_v37 = vsel %vm29_vm6, %v3257_v18, %v1806_v33  ;;  %v3345_v46 = vld [vmem:[%s6438_s0 + $0x15e] sm:$0x20]   ;;  %vm625_vm15 = vcmask 130048   ;;  %v3277_v51 = vld [vmem:[%s6438_s0 + $0x3a] sm:$0x1]   ;;  %v764_v52 = vpop.permute.xlu2 %763   ;;  %v2090_v53 = vsel %vm29_vm6, %v3329_v32, %v2086_v49  ;;  %v2148_v54 = vsel %vm17_vm3, %v3344_v42, %v2144_v50  ;;  %2963 = vst.msk [vmem:[%s6439_s1 + $0x8] sm:$0xff] %vm660_vm14, %v659_v10  }
  0xa8   :  { %1811 = vrot.lane.b32.xlu2 %v1810_v37, %s3612_s4  ;;  %v3346_v47 = vld [vmem:[%s6438_s0 + $0x19d] sm:$0x40]   ;;  %v3278_v55 = vld [vmem:[%s6438_s0 + $0x79] sm:$0x2]   ;;  %s3613_s17 = smov 42   ;;  %v2152_v57 = vsel %vm21_vm4, %v3345_v46, %v2148_v54  ;;  %2954 = vst.msk [vmem:[%s6439_s1 + $0x10] sm:$0xff] %vm625_vm15, %v624_v43  }
  0xa9   :  { %v3347_v48 = vld [vmem:[%s6438_s0 + $0x1dc] sm:$0x80]   ;;  %v3279_v56 = vld [vmem:[%s6438_s0 + $0xb8] sm:$0x4]   ;;  %2091 = vrot.lane.b32.xlu1 %v2090_v53, %s3613_s17  ;;  %vm695_vm7 = vcmask 113664   ;;  %v1891_v58 = vsel %vm5_vm0, %v3278_v55, %v3277_v51  ;;  %v2156_v61 = vsel %vm25_vm5, %v3346_v47, %v2152_v57  ;;  %s3614_s22 = smov 38  }
  0xaa   :  { %v3280_v59 = vld [vmem:[%s6438_s0 + $0xf7] sm:$0x8]   ;;  %v1895_v62 = vsel %vm9_vm1, %v3279_v56, %v1891_v58  ;;  %v2160_v2 = vsel %vm29_vm6, %v3347_v48, %v2156_v61  ;;  %v3349_v5 = vld [vmem:[%s6438_s0 + $0x32] sm:$0x1]   ;;  %v3366_v20 = vld [vmem:[%s6438_s0 + $0x10] sm:$0x1]  }
  0xab   :  { %v3281_v60 = vld [vmem:[%s6438_s0 + $0x136] sm:$0x10]   ;;  %v1899_v4 = vsel %vm13_vm2, %v3280_v59, %v1895_v62  ;;  %v3350_v6 = vld [vmem:[%s6438_s0 + $0x71] sm:$0x2]   ;;  %2161 = vrot.lane.b32.xlu0 %v2160_v2, %s3614_s22  ;;  %v3367_v21 = vld [vmem:[%s6438_s0 + $0x4f] sm:$0x2]  }
  0xac   :  { %v3282_v63 = vld [vmem:[%s6438_s0 + $0x175] sm:$0x20]   ;;  %v694_v3 = vpop.permute.xlu0 %693   ;;  %v3351_v7 = vld [vmem:[%s6438_s0 + $0xb0] sm:$0x4]   ;;  %v1903_v8 = vsel %vm17_vm3, %v3281_v60, %v1899_v4  ;;  %v2171_v9 = vsel %vm5_vm0, %v3350_v6, %v3349_v5  ;;  %v3368_v22 = vld [vmem:[%s6438_s0 + $0x8e] sm:$0x4]   ;;  %v2240_v25 = vsel %vm5_vm0, %v3367_v21, %v3366_v20 }
  0xad   :  { %v3283_v0 = vld [vmem:[%s6438_s0 + $0x1b4] sm:$0x40]   ;;  %2972 = vst.msk [vmem:[%s6439_s1 + $0x30] sm:$0xff] %vm695_vm7, %v694_v3   ;;  %v3352_v10 = vld [vmem:[%s6438_s0 + $0xef] sm:$0x8]   ;;  %v1907_v12 = vsel %vm21_vm4, %v3282_v63, %v1903_v8  ;;  %v2175_v13 = vsel %vm9_vm1, %v3351_v7, %v2171_v9  ;;  %v729_v17 = vpop.permute.xlu1 %728   ;;  %s3615_s5 = smov 52   ;;  %v2244_v30 = vsel %vm9_vm1, %v3368_v22, %v2240_v25 }
  0xae   :  { %v3284_v1 = vld [vmem:[%s6438_s0 + $0x1f3] sm:$0x80]   ;;  %v3353_v11 = vld [vmem:[%s6438_s0 + $0x12e] sm:$0x10]   ;;  %v1911_v18 = vsel %vm25_vm5, %v3283_v0, %v1907_v12  ;;  %v2179_v19 = vsel %vm13_vm2, %v3352_v10, %v2175_v13  ;;  %v3369_v26 = vld [vmem:[%s6438_s0 + $0xcd] sm:$0x8]  }
  0xaf   :  { %v3354_v14 = vld [vmem:[%s6438_s0 + $0x16d] sm:$0x20]   ;;  %v1915_v23 = vsel %vm29_vm6, %v3284_v1, %v1911_v18  ;;  %v2183_v24 = vsel %vm17_vm3, %v3353_v11, %v2179_v19  ;;  %v3370_v27 = vld [vmem:[%s6438_s0 + $0x10c] sm:$0x10]   ;;  %vm765_vm8 = vcmask 97280   ;;  %vm730_vm9 = vcmask 1048416   ;;  %v5619_v33 = vpop.permute.xlu2 %868  }
  0xb0   :  { %v3355_v15 = vld [vmem:[%s6438_s0 + $0x1ac] sm:$0x40]   ;;  %v3371_v28 = vld [vmem:[%s6438_s0 + $0x14b] sm:$0x20]   ;;  %1916 = vrot.lane.b32.xlu2 %v1915_v23, %s3615_s5  ;;  %v2187_v29 = vsel %vm21_vm4, %v3354_v14, %v2183_v24  ;;  %v2248_v35 = vsel %vm13_vm2, %v3369_v26, %v2244_v30  ;;  %2990 = vst.msk [vmem:[%s6439_s1 + $0x50] sm:$0xff] %vm765_vm8, %v764_v52   ;;  %vm800_vm10 = vcmask 1048400  }
  0xb1   :  { %v3356_v16 = vld [vmem:[%s6438_s0 + $0x1eb] sm:$0x80]   ;;  %v3372_v31 = vld [vmem:[%s6438_s0 + $0x18a] sm:$0x40]   ;;  %v2191_v34 = vsel %vm25_vm5, %v3355_v15, %v2187_v29  ;;  %v3304_v36 = vld [vmem:[%s6438_s0 + $0x27] sm:$0x1]   ;;  %v2252_v39 = vsel %vm17_vm3, %v3370_v27, %v2248_v35 }
  0xb2   :  { %v3373_v32 = vld [vmem:[%s6438_s0 + $0x1c9] sm:$0x80]   ;;  %v3305_v37 = vld [vmem:[%s6438_s0 + $0x66] sm:$0x2]   ;;  %v2195_v38 = vsel %vm29_vm6, %v3356_v16, %v2191_v34  ;;  %2981 = vst.msk [vmem:[%s6439_s1 + $0x28] sm:$0xff] %vm730_vm9, %v729_v17   ;;  %s3616_s24 = smov 36   ;;  %v2256_v43 = vsel %vm21_vm4, %v3371_v28, %v2252_v39 }
  0xb3   :  { %v1996_v40 = vsel %vm5_vm0, %v3305_v37, %v3304_v36  ;;  %v3306_v41 = vld [vmem:[%s6438_s0 + $0xa5] sm:$0x4]   ;;  %2196 = vrot.lane.b32.xlu1 %v2195_v38, %s3616_s24  ;;  %v2260_v49 = vsel %vm25_vm5, %v3372_v31, %v2256_v43  ;;  %v3375_v52 = vld [vmem:[%s6438_s0 + $0x1f] sm:$0x1]   ;;  %s3617_s25 = smov 32   ;;  %s3618_s2 = smov 46  }
  0xb4   :  { %v3307_v42 = vld [vmem:[%s6438_s0 + $0xe4] sm:$0x8]   ;;  %v799_v44 = vpop.permute.xlu0 %798   ;;  %v2000_v45 = vsel %vm9_vm1, %v3306_v41, %v1996_v40  ;;  %v2264_v53 = vsel %vm29_vm6, %v3373_v32, %v2260_v49  ;;  %v3376_v55 = vld [vmem:[%s6438_s0 + $0x5e] sm:$0x2]   ;;  %v3393_v3 = vld [vmem:[%s6438_s0 + $0x3d] sm:$0x1]  }
  0xb5   :  { %v3308_v46 = vld [vmem:[%s6438_s0 + $0x123] sm:$0x10]   ;;  %2999 = vst.msk [vmem:[%s6439_s1 + $0x48] sm:$0xff] %vm800_vm10, %v799_v44   ;;  %v2004_v50 = vsel %vm13_vm2, %v3307_v42, %v2000_v45  ;;  %v3377_v56 = vld [vmem:[%s6438_s0 + $0x9d] sm:$0x4]   ;;  %v834_v58 = vpop.permute.xlu1 %833   ;;  %2265 = vrot.lane.b32.xlu0 %v2264_v53, %s3617_s25  ;;  %v2275_v60 = vsel %vm5_vm0, %v3376_v55, %v3375_v52  ;;  %vm870_vm11 = vcmask 1048384  }
  0xb6   :  { %v3309_v47 = vld [vmem:[%s6438_s0 + $0x162] sm:$0x20]   ;;  %v2008_v54 = vsel %vm17_vm3, %v3308_v46, %v2004_v50  ;;  %v3378_v57 = vld [vmem:[%s6438_s0 + $0xdc] sm:$0x8]   ;;  %v2279_v1 = vsel %vm9_vm1, %v3377_v56, %v2275_v60  ;;  %v3394_v4 = vld [vmem:[%s6438_s0 + $0x7c] sm:$0x2]  }
  0xb7   :  { %v3310_v48 = vld [vmem:[%s6438_s0 + $0x1a1] sm:$0x40]   ;;  %v2012_v59 = vsel %vm21_vm4, %v3309_v47, %v2008_v54  ;;  %v3379_v61 = vld [vmem:[%s6438_s0 + $0x11b] sm:$0x10]   ;;  %v2283_v6 = vsel %vm13_vm2, %v3378_v57, %v2279_v1  ;;  %v2345_v7 = vsel %vm5_vm0, %v3394_v4, %v3393_v3  ;;  %v3395_v8 = vld [vmem:[%s6438_s0 + $0xbb] sm:$0x4]   ;;  %v5712_v11 = vpop.permute.xlu2 %972  }
  0xb8   :  { %v3311_v51 = vld [vmem:[%s6438_s0 + $0x1e0] sm:$0x80]   ;;  %v3380_v62 = vld [vmem:[%s6438_s0 + $0x15a] sm:$0x20]   ;;  %v2016_v0 = vsel %vm25_vm5, %v3310_v48, %v2012_v59  ;;  %v3396_v9 = vld [vmem:[%s6438_s0 + $0xfa] sm:$0x8]   ;;  %v2287_v12 = vsel %vm17_vm3, %v3379_v61, %v2283_v6  ;;  %v2349_v13 = vsel %vm9_vm1, %v3395_v8, %v2345_v7 }
  0xb9   :  { %v3381_v63 = vld [vmem:[%s6438_s0 + $0x199] sm:$0x40]   ;;  %v2020_v5 = vsel %vm29_vm6, %v3311_v51, %v2016_v0  ;;  %v3397_v10 = vld [vmem:[%s6438_s0 + $0x139] sm:$0x10]   ;;  %v2291_v17 = vsel %vm21_vm4, %v3380_v62, %v2287_v12  ;;  %v2353_v18 = vsel %vm13_vm2, %v3396_v9, %v2349_v13  ;;  %vm835_vm12 = vcmask 80896   ;;  %3017 = vst.msk [vmem:[%s6439_s1 + $0x68] sm:$0xff] %vm870_vm11, %v5619_v33  }
  0xba   :  { %v3382_v2 = vld [vmem:[%s6438_s0 + $0x1d8] sm:$0x80]   ;;  %2021 = vrot.lane.b32.xlu2 %v2020_v5, %s3618_s2  ;;  %v3398_v14 = vld [vmem:[%s6438_s0 + $0x178] sm:$0x20]   ;;  %v3331_v19 = vld [vmem:[%s6438_s0 + $0x14] sm:$0x1]   ;;  %v2295_v20 = vsel %vm25_vm5, %v3381_v63, %v2291_v17  ;;  %v2357_v21 = vsel %vm17_vm3, %v3397_v10, %v2353_v18 }
  0xbb   :  { %v3399_v15 = vld [vmem:[%s6438_s0 + $0x1b7] sm:$0x40]   ;;  %vm905_vm13 = vcmask 64512   ;;  %v3332_v23 = vld [vmem:[%s6438_s0 + $0x53] sm:$0x2]   ;;  %v2299_v25 = vsel %vm29_vm6, %v3382_v2, %v2295_v20  ;;  %v2361_v26 = vsel %vm21_vm4, %v3398_v14, %v2357_v21  ;;  %3008 = vst.msk [vmem:[%s6439_s1 + $0x70] sm:$0xff] %vm835_vm12, %v834_v58  }
  0xbc   :  { %v3400_v16 = vld [vmem:[%s6438_s0 + $0x1f6] sm:$0x80]   ;;  %v904_v22 = vpop.permute.xlu0 %903   ;;  %v3333_v24 = vld [vmem:[%s6438_s0 + $0x92] sm:$0x4]   ;;  %v2101_v27 = vsel %vm5_vm0, %v3332_v23, %v3331_v19  ;;  %s3619_s26 = smov 30   ;;  %v2365_v30 = vsel %vm25_vm5, %v3399_v15, %v2361_v26  ;;  %s3620_s10 = smov 26  }
  0xbd   :  { %v3334_v28 = vld [vmem:[%s6438_s0 + $0xd1] sm:$0x8]   ;;  %2300 = vrot.lane.b32.xlu1 %v2299_v25, %s3619_s26  ;;  %3026 = vst.msk [vmem:[%s6439_s1 + $0x8] sm:$0xff] %vm905_vm13, %v904_v22   ;;  %v2105_v31 = vsel %vm9_vm1, %v3333_v24, %v2101_v27  ;;  %v5765_v34 = vpop.permute.xlu1 %938   ;;  %v2369_v35 = vsel %vm29_vm6, %v3400_v16, %v2365_v30  ;;  %v3402_v38 = vld [vmem:[%s6438_s0 + $0xc] sm:$0x1]   ;;  %s3621_s3 = smov 40  }
  0xbe   :  { %v3335_v29 = vld [vmem:[%s6438_s0 + $0x110] sm:$0x10]   ;;  %v2109_v36 = vsel %vm13_vm2, %v3334_v28, %v2105_v31  ;;  %v3403_v39 = vld [vmem:[%s6438_s0 + $0x4b] sm:$0x2]   ;;  %2370 = vrot.lane.b32.xlu0 %v2369_v35, %s3620_s10  ;;  %v3420_v53 = vld [vmem:[%s6438_s0 + $0x2a] sm:$0x1]  }
  0xbf   :  { %v3336_v32 = vld [vmem:[%s6438_s0 + $0x14f] sm:$0x20]   ;;  %v2113_v40 = vsel %vm17_vm3, %v3335_v29, %v2109_v36  ;;  %v2380_v41 = vsel %vm5_vm0, %v3403_v39, %v3402_v38  ;;  %v3404_v42 = vld [vmem:[%s6438_s0 + $0x8a] sm:$0x4]   ;;  %v5800_v50 = vpop.permute.xlu2 %1077   ;;  %v3421_v54 = vld [vmem:[%s6438_s0 + $0x69] sm:$0x2]  }
  0xc0   :  { %v3337_v33 = vld [vmem:[%s6438_s0 + $0x18e] sm:$0x40]   ;;  %v3405_v43 = vld [vmem:[%s6438_s0 + $0xc9] sm:$0x8]   ;;  %v2117_v45 = vsel %vm21_vm4, %v3336_v32, %v2113_v40  ;;  %v2384_v46 = vsel %vm9_vm1, %v3404_v42, %v2380_v41  ;;  %v3422_v55 = vld [vmem:[%s6438_s0 + $0xa8] sm:$0x4]   ;;  %v2450_v58 = vsel %vm5_vm0, %v3421_v54, %v3420_v53 }
  0xc1   :  { %v3338_v37 = vld [vmem:[%s6438_s0 + $0x1cd] sm:$0x80]   ;;  %v3406_v44 = vld [vmem:[%s6438_s0 + $0x108] sm:$0x10]   ;;  %v2121_v51 = vsel %vm25_vm5, %v3337_v33, %v2117_v45  ;;  %v2388_v52 = vsel %vm13_vm2, %v3405_v43, %v2384_v46  ;;  %v3423_v59 = vld [vmem:[%s6438_s0 + $0xe7] sm:$0x8]   ;;  %v2454_v63 = vsel %vm9_vm1, %v3422_v55, %v2450_v58 }
  0xc2   :  { %v3407_v47 = vld [vmem:[%s6438_s0 + $0x147] sm:$0x20]   ;;  %v2125_v56 = vsel %vm29_vm6, %v3338_v37, %v2121_v51  ;;  %v2392_v57 = vsel %vm17_vm3, %v3406_v44, %v2388_v52  ;;  %v3424_v60 = vld [vmem:[%s6438_s0 + $0x126] sm:$0x10]   ;;  %vm974_vm14 = vcmask 48128   ;;  %v2458_v4 = vsel %vm13_vm2, %v3423_v59, %v2454_v63  ;;  %s3622_s20 = smov 24  }
  0xc3   :  { %v3408_v48 = vld [vmem:[%s6438_s0 + $0x186] sm:$0x40]   ;;  %v3425_v61 = vld [vmem:[%s6438_s0 + $0x165] sm:$0x20]   ;;  %2126 = vrot.lane.b32.xlu2 %v2125_v56, %s3621_s3  ;;  %v2396_v62 = vsel %vm21_vm4, %v3407_v47, %v2392_v57  ;;  %3043 = vst.msk [vmem:[%s6439_s1 + $0x28] sm:$0xff] %vm974_vm14, %v5712_v11   ;;  %vm31_vm15 = vcmask 277504   ;;  %v2462_v8 = vsel %vm17_vm3, %v3424_v60, %v2458_v4 }
  0xc4   :  { %v3409_v49 = vld [vmem:[%s6438_s0 + $0x1c5] sm:$0x80]   ;;  %v3426_v0 = vld [vmem:[%s6438_s0 + $0x1a4] sm:$0x40]   ;;  %v1008_v2 = vpop.permute.xlu0 %1007   ;;  %v2400_v3 = vsel %vm25_vm5, %v3408_v48, %v2396_v62  ;;  %v2_v5 = vld [vmem:[%s6438_s0] sm:$0x1]   ;;  %v2466_v14 = vsel %vm21_vm4, %v3425_v61, %v2462_v8 }
  0xc5   :  { %v3427_v1 = vld [vmem:[%s6438_s0 + $0x1e3] sm:$0x80]   ;;  %v2795_v6 = vld [vmem:[%s6438_s0 + $0x3f] sm:$0x2]   ;;  %v2404_v7 = vsel %vm29_vm6, %v3409_v49, %v2400_v3  ;;  %v5857_v13 = vpop.permute.xlu1 %1042   ;;  %v2470_v19 = vsel %vm25_vm5, %v3426_v0, %v2466_v14  ;;  %vm940_vm7 = vcmask 1048368   ;;  %vm1009_vm8 = vcmask 1048352  }
  0xc6   :  { %v6_v9 = vsel %vm5_vm0, %v2795_v6, %v2_v5  ;;  %v2796_v10 = vld [vmem:[%s6438_s0 + $0x7e] sm:$0x4]   ;;  %2405 = vrot.lane.b32.xlu1 %v2404_v7, %s3622_s20  ;;  %v3358_v21 = vld [vmem:[%s6438_s0 + $0x1] sm:$0x1]   ;;  %v2474_v23 = vsel %vm29_vm6, %v3427_v1, %v2470_v19  ;;  %3052 = vst.msk [vmem:[%s6439_s1 + $0x20] sm:$0xff] %vm1009_vm8, %v1008_v2   ;;  %s3623_s21 = smov 20  }
  0xc7   :  { %v2797_v11 = vld [vmem:[%s6438_s0 + $0xbd] sm:$0x8]   ;;  %v10_v15 = vsel %vm9_vm1, %v2796_v10, %v6_v9  ;;  %v3359_v22 = vld [vmem:[%s6438_s0 + $0x40] sm:$0x2]   ;;  %v5890_v28 = vpop.permute.xlu2 %1182   ;;  %2475 = vrot.lane.b32.xlu0 %v2474_v23, %s3623_s21  ;;  %v3429_v38 = vld [vmem:[%s6438_s0 + $0x39] sm:$0x1]  }
  0xc8   :  { %v2798_v12 = vld [vmem:[%s6438_s0 + $0xfc] sm:$0x10]   ;;  %v14_v20 = vsel %vm13_vm2, %v2797_v11, %v10_v15  ;;  %v2206_v25 = vsel %vm5_vm0, %v3359_v22, %v3358_v21  ;;  %v3360_v26 = vld [vmem:[%s6438_s0 + $0x7f] sm:$0x4]   ;;  %v3430_v39 = vld [vmem:[%s6438_s0 + $0x78] sm:$0x2]  }
  0xc9   :  { %v2799_v16 = vld [vmem:[%s6438_s0 + $0x13b] sm:$0x20]   ;;  %v18_v24 = vsel %vm17_vm3, %v2798_v12, %v14_v20  ;;  %v3361_v27 = vld [vmem:[%s6438_s0 + $0xbe] sm:$0x8]   ;;  %v2210_v30 = vsel %vm9_vm1, %v3360_v26, %v2206_v25  ;;  %v2485_v42 = vsel %vm5_vm0, %v3430_v39, %v3429_v38  ;;  %v3431_v43 = vld [vmem:[%s6438_s0 + $0xb7] sm:$0x4]  }
  0xca   :  { %v2800_v17 = vld [vmem:[%s6438_s0 + $0x17a] sm:$0x40]   ;;  %v22_v29 = vsel %vm21_vm4, %v2799_v16, %v18_v24  ;;  %v3362_v31 = vld [vmem:[%s6438_s0 + $0xfd] sm:$0x10]   ;;  %v2214_v36 = vsel %vm13_vm2, %v3361_v27, %v2210_v30  ;;  %v3432_v44 = vld [vmem:[%s6438_s0 + $0xf6] sm:$0x8]   ;;  %v2489_v48 = vsel %vm9_vm1, %v3431_v43, %v2485_v42 }
  0xcb   :  { %v2801_v18 = vld [vmem:[%s6438_s0 + $0x1b9] sm:$0x80]   ;;  %v3363_v32 = vld [vmem:[%s6438_s0 + $0x13c] sm:$0x20]   ;;  %v26_v35 = vsel %vm25_vm5, %v2800_v17, %v22_v29  ;;  %v2218_v41 = vsel %vm17_vm3, %v3362_v31, %v2214_v36  ;;  %v3433_v45 = vld [vmem:[%s6438_s0 + $0x135] sm:$0x10]   ;;  %v2493_v52 = vsel %vm13_vm2, %v3432_v44, %v2489_v48 }
  0xcc   :  { %v3364_v33 = vld [vmem:[%s6438_s0 + $0x17b] sm:$0x40]   ;;  %v30_v40 = vsel %vm29_vm6, %v2801_v18, %v26_v35  ;;  %v1113_v46 = vpop.permute.xlu0 %1112   ;;  %v2222_v47 = vsel %vm21_vm4, %v3363_v32, %v2218_v41  ;;  %v3434_v49 = vld [vmem:[%s6438_s0 + $0x174] sm:$0x20]   ;;  %v3447_v54 = vld [vmem:[%s6438_s0 + $0x17] sm:$0x1]   ;;  %v2497_v57 = vsel %vm17_vm3, %v3433_v45, %v2493_v52 }
  0xcd   :  { %v3365_v37 = vld [vmem:[%s6438_s0 + $0x1ba] sm:$0x80]   ;;  %32 = vst.msk [vmem:[%s6439_s1] sm:$0xff] %vm31_vm15, %v30_v40   ;;  %v3435_v51 = vld [vmem:[%s6438_s0 + $0x1b3] sm:$0x40]   ;;  %vm1079_vm9 = vcmask 1048336   ;;  %v5951_v55 = vpop.permute.xlu1 %1147   ;;  %v2501_v61 = vsel %vm21_vm4, %v3434_v49, %v2497_v57 }
  0xce   :  { %941 = vst.msk [vmem:[%s6439_s1] sm:$0xff] %vm940_vm7, %v5765_v34   ;;  %v2226_v34 = vsel %vm25_vm5, %v3364_v33, %v2222_v47  ;;  %v3436_v53 = vld [vmem:[%s6438_s0 + $0x1f2] sm:$0x80]   ;;  %v3448_v58 = vld [vmem:[%s6438_s0 + $0x56] sm:$0x2]   ;;  %s3624_s15 = smov 34   ;;  %v2505_v2 = vsel %vm25_vm5, %v3435_v51, %v2501_v61 }
  0xcf   :  { %v2230_v56 = vsel %vm29_vm6, %v3365_v37, %v2226_v34  ;;  %v3449_v59 = vld [vmem:[%s6438_s0 + $0x95] sm:$0x4]   ;;  %v2555_v62 = vsel %vm5_vm0, %v3448_v58, %v3447_v54  ;;  %3070 = vst.msk [vmem:[%s6439_s1 + $0x40] sm:$0xff] %vm1079_vm9, %v5800_v50   ;;  %vm1044_vm10 = vcmask 31744   ;;  %vm1114_vm11 = vcmask 15360   ;;  %v5997_v8 = vpop.permute.xlu2 %1287   ;;  %s3625_s4 = smov 18  }
  0xd0   :  { %v3450_v60 = vld [vmem:[%s6438_s0 + $0xd4] sm:$0x8]   ;;  %2231 = vrot.lane.b32.xlu2 %v2230_v56, %s3624_s15  ;;  %v2559_v3 = vsel %vm9_vm1, %v3449_v59, %v2555_v62  ;;  %v2509_v50 = vsel %vm29_vm6, %v3436_v53, %v2505_v2  ;;  %3061 = vst.msk [vmem:[%s6439_s1 + $0x48] sm:$0xff] %vm1044_vm10, %v5857_v13   ;;  %v3384_v6 = vld [vmem:[%s6438_s0 + $0x2e] sm:$0x1]   ;;  %s3626_s30 = smov 14  }
  0xd1   :  { %v3451_v63 = vld [vmem:[%s6438_s0 + $0x113] sm:$0x10]   ;;  %v2563_v5 = vsel %vm13_vm2, %v3450_v60, %v2559_v3  ;;  %v3385_v7 = vld [vmem:[%s6438_s0 + $0x6d] sm:$0x2]   ;;  %2510 = vrot.lane.b32.xlu1 %v2509_v50, %s3625_s4  ;;  %3079 = vst.msk [vmem:[%s6439_s1 + $0x68] sm:$0xff] %vm1114_vm11, %v1113_v46   ;;  %s3627_s17 = smov 28  }
  0xd2   :  { %v3452_v0 = vld [vmem:[%s6438_s0 + $0x152] sm:$0x20]   ;;  %v2567_v9 = vsel %vm17_vm3, %v3451_v63, %v2563_v5  ;;  %v2310_v10 = vsel %vm5_vm0, %v3385_v7, %v3384_v6  ;;  %v3386_v11 = vld [vmem:[%s6438_s0 + $0xac] sm:$0x4]   ;;  %v3456_v22 = vld [vmem:[%s6438_s0 + $0x26] sm:$0x1]  }
  0xd3   :  { %v3453_v1 = vld [vmem:[%s6438_s0 + $0x191] sm:$0x40]   ;;  %v3387_v12 = vld [vmem:[%s6438_s0 + $0xeb] sm:$0x8]   ;;  %v2571_v13 = vsel %vm21_vm4, %v3452_v0, %v2567_v9  ;;  %v2314_v14 = vsel %vm9_vm1, %v3386_v11, %v2310_v10  ;;  %v3457_v23 = vld [vmem:[%s6438_s0 + $0x65] sm:$0x2]  }
  0xd4   :  { %v3454_v4 = vld [vmem:[%s6438_s0 + $0x1d0] sm:$0x80]   ;;  %v3388_v15 = vld [vmem:[%s6438_s0 + $0x12a] sm:$0x10]   ;;  %v1218_v18 = vpop.permute.xlu0 %1217   ;;  %v2575_v19 = vsel %vm25_vm5, %v3453_v1, %v2571_v13  ;;  %v2318_v20 = vsel %vm13_vm2, %v3387_v12, %v2314_v14  ;;  %v2590_v26 = vsel %vm5_vm0, %v3457_v23, %v3456_v22  ;;  %v3458_v27 = vld [vmem:[%s6438_s0 + $0xa4] sm:$0x4]  }
  0xd5   :  { %v3389_v16 = vld [vmem:[%s6438_s0 + $0x169] sm:$0x20]   ;;  %v2579_v24 = vsel %vm29_vm6, %v3454_v4, %v2575_v19  ;;  %v2322_v25 = vsel %vm17_vm3, %v3388_v15, %v2318_v20  ;;  %v3459_v29 = vld [vmem:[%s6438_s0 + $0xe3] sm:$0x8]   ;;  %v6044_v31 = vpop.permute.xlu1 %1252   ;;  %v2594_v33 = vsel %vm9_vm1, %v3458_v27, %v2590_v26  ;;  %v3474_v40 = vld [vmem:[%s6438_s0 + $0x4] sm:$0x1]  }
  0xd6   :  { %v3390_v17 = vld [vmem:[%s6438_s0 + $0x1a8] sm:$0x40]   ;;  %v3460_v30 = vld [vmem:[%s6438_s0 + $0x122] sm:$0x10]   ;;  %2580 = vrot.lane.b32.xlu0 %v2579_v24, %s3626_s30  ;;  %v2326_v32 = vsel %vm21_vm4, %v3389_v16, %v2322_v25  ;;  %v2598_v39 = vsel %vm13_vm2, %v3459_v29, %v2594_v33  ;;  %v3475_v41 = vld [vmem:[%s6438_s0 + $0x43] sm:$0x2]  }
  0xd7   :  { %v3391_v21 = vld [vmem:[%s6438_s0 + $0x1e7] sm:$0x80]   ;;  %v3461_v35 = vld [vmem:[%s6438_s0 + $0x161] sm:$0x20]   ;;  %v2330_v38 = vsel %vm25_vm5, %v3390_v17, %v2326_v32  ;;  %v3476_v42 = vld [vmem:[%s6438_s0 + $0x82] sm:$0x4]   ;;  %v2602_v44 = vsel %vm17_vm3, %v3460_v30, %v2598_v39  ;;  %v2660_v45 = vsel %vm5_vm0, %v3475_v41, %v3474_v40 }
  0xd8   :  { %v3462_v36 = vld [vmem:[%s6438_s0 + $0x1a0] sm:$0x40]   ;;  %v2334_v43 = vsel %vm29_vm6, %v3391_v21, %v2330_v38  ;;  %v3477_v46 = vld [vmem:[%s6438_s0 + $0xc1] sm:$0x8]   ;;  %v2606_v49 = vsel %vm21_vm4, %v3461_v35, %v2602_v44  ;;  %v2664_v51 = vsel %vm9_vm1, %v3476_v42, %v2660_v45  ;;  %vm1184_vm12 = vcmask 1048304   ;;  %s3628_s10 = smov 12  }
  0xd9   :  { %v3463_v37 = vld [vmem:[%s6438_s0 + $0x1df] sm:$0x80]   ;;  %v3478_v47 = vld [vmem:[%s6438_s0 + $0x100] sm:$0x10]   ;;  %2335 = vrot.lane.b32.xlu2 %v2334_v43, %s3627_s17  ;;  %vm1149_vm13 = vcmask 1048320   ;;  %v2610_v53 = vsel %vm25_vm5, %v3462_v36, %v2606_v49  ;;  %v2668_v54 = vsel %vm13_vm2, %v3477_v46, %v2664_v51  ;;  %3097 = vst.msk [vmem:[%s6439_s1 + $0x80] sm:$0xff] %vm1184_vm12, %v5890_v28   ;;  %v6100_v57 = vpop.permute.xlu2 %1392  }
  0xda   :  { %v3479_v48 = vld [vmem:[%s6438_s0 + $0x13f] sm:$0x20]   ;;  %vm1219_vm14 = vcmask 1031904   ;;  %v3411_v28 = vld [vmem:[%s6438_s0 + $0x1b] sm:$0x1]   ;;  %v2614_v58 = vsel %vm29_vm6, %v3463_v37, %v2610_v53  ;;  %v2672_v59 = vsel %vm17_vm3, %v3478_v47, %v2668_v54  ;;  %3088 = vst.msk [vmem:[%s6439_s1 + $0x60] sm:$0xff] %vm1149_vm13, %v5951_v55  }
  0xdb   :  { %v3480_v34 = vld [vmem:[%s6438_s0 + $0x17e] sm:$0x40]   ;;  %v3412_v56 = vld [vmem:[%s6438_s0 + $0x5a] sm:$0x2]   ;;  %2615 = vrot.lane.b32.xlu1 %v2614_v58, %s3628_s10  ;;  %v2676_v63 = vsel %vm21_vm4, %v3479_v48, %v2672_v59  ;;  %3106 = vst.msk [vmem:[%s6439_s1 + $0x18] sm:$0xff] %vm1219_vm14, %v1218_v18   ;;  %s3629_s27 = smov 8  }
  0xdc   :  { %v3481_v52 = vld [vmem:[%s6438_s0 + $0x1bd] sm:$0x80]   ;;  %v2415_v55 = vsel %vm5_vm0, %v3412_v56, %v3411_v28  ;;  %v3413_v60 = vld [vmem:[%s6438_s0 + $0x99] sm:$0x4]   ;;  %v6115_v62 = vpop.permute.xlu0 %1322   ;;  %v2680_v3 = vsel %vm25_vm5, %v3480_v34, %v2676_v63  ;;  %v3483_v6 = vld [vmem:[%s6438_s0 + $0x13] sm:$0x1]  }
  0xdd   :  { %v3414_v61 = vld [vmem:[%s6438_s0 + $0xd8] sm:$0x8]   ;;  %v2419_v0 = vsel %vm9_vm1, %v3413_v60, %v2415_v55  ;;  %v2684_v9 = vsel %vm29_vm6, %v3481_v52, %v2680_v3  ;;  %v3484_v11 = vld [vmem:[%s6438_s0 + $0x52] sm:$0x2]   ;;  %v3501_v22 = vld [vmem:[%s6438_s0 + $0x31] sm:$0x1]  }
  0xde   :  { %v3415_v1 = vld [vmem:[%s6438_s0 + $0x117] sm:$0x10]   ;;  %v2423_v4 = vsel %vm13_vm2, %v3414_v61, %v2419_v0  ;;  %v6139_v7 = vpop.permute.xlu1 %1357   ;;  %v3485_v12 = vld [vmem:[%s6438_s0 + $0x91] sm:$0x4]   ;;  %2685 = vrot.lane.b32.xlu0 %v2684_v9, %s3629_s27  ;;  %v2695_v15 = vsel %vm5_vm0, %v3484_v11, %v3483_v6  ;;  %v3502_v23 = vld [vmem:[%s6438_s0 + $0x70] sm:$0x2]  }
  0xdf   :  { %v3416_v2 = vld [vmem:[%s6438_s0 + $0x156] sm:$0x20]   ;;  %v2427_v10 = vsel %vm17_vm3, %v3415_v1, %v2423_v4  ;;  %v3486_v13 = vld [vmem:[%s6438_s0 + $0xd0] sm:$0x8]   ;;  %v2699_v20 = vsel %vm9_vm1, %v3485_v12, %v2695_v15  ;;  %v2765_v26 = vsel %vm5_vm0, %v3502_v23, %v3501_v22  ;;  %v3503_v27 = vld [vmem:[%s6438_s0 + $0xaf] sm:$0x4]  }
  0xe0   :  { %v3417_v50 = vld [vmem:[%s6438_s0 + $0x195] sm:$0x40]   ;;  %v2431_v14 = vsel %vm21_vm4, %v3416_v2, %v2427_v10  ;;  %v3487_v16 = vld [vmem:[%s6438_s0 + $0x10f] sm:$0x10]   ;;  %v2703_v25 = vsel %vm13_vm2, %v3486_v13, %v2699_v20  ;;  %v3504_v29 = vld [vmem:[%s6438_s0 + $0xee] sm:$0x8]   ;;  %v2769_v33 = vsel %vm9_vm1, %v3503_v27, %v2765_v26 }
  0xe1   :  { %v3418_v5 = vld [vmem:[%s6438_s0 + $0x1d4] sm:$0x80]   ;;  %v3488_v17 = vld [vmem:[%s6438_s0 + $0x14e] sm:$0x20]   ;;  %v2435_v19 = vsel %vm25_vm5, %v3417_v50, %v2431_v14  ;;  %v3505_v30 = vld [vmem:[%s6438_s0 + $0x12d] sm:$0x10]   ;;  %v2707_v32 = vsel %vm17_vm3, %v3487_v16, %v2703_v25  ;;  %v2773_v39 = vsel %vm13_vm2, %v3504_v29, %v2769_v33 }
  0xe2   :  { %v3489_v18 = vld [vmem:[%s6438_s0 + $0x18d] sm:$0x40]   ;;  %v2439_v24 = vsel %vm29_vm6, %v3418_v5, %v2435_v19  ;;  %s3630_s15 = smov 22   ;;  %v3506_v35 = vld [vmem:[%s6438_s0 + $0x16c] sm:$0x20]   ;;  %v2711_v38 = vsel %vm21_vm4, %v3488_v17, %v2707_v32  ;;  %vm1289_vm15 = vcmask 999104   ;;  %v2777_v44 = vsel %vm17_vm3, %v3505_v30, %v2773_v39 }
  0xe3   :  { %v3490_v21 = vld [vmem:[%s6438_s0 + $0x1cc] sm:$0x80]   ;;  %2440 = vrot.lane.b32.xlu2 %v2439_v24, %s3630_s15  ;;  %v3507_v36 = vld [vmem:[%s6438_s0 + $0x1ab] sm:$0x40]   ;;  %vm1254_vm7 = vcmask 1015504   ;;  %v1498_v42 = vpop.permute.xlu2 %1497   ;;  %v2715_v43 = vsel %vm25_vm5, %v3489_v18, %v2711_v38  ;;  %3124 = vst.msk [vmem:[%s6439_s1 + $0x58] sm:$0xff] %vm1289_vm15, %v5997_v8   ;;  %v2781_v47 = vsel %vm21_vm4, %v3506_v35, %v2777_v44 }
  0xe4   :  { %v3508_v37 = vld [vmem:[%s6438_s0 + $0x1ea] sm:$0x80]   ;;  %v3438_v40 = vld [vmem:[%s6438_s0 + $0x8] sm:$0x1]   ;;  %v1428_v41 = vpop.permute.xlu0 %1427   ;;  %vm1324_vm8 = vcmask 982704   ;;  %v2719_v46 = vsel %vm29_vm6, %v3490_v21, %v2715_v43  ;;  %3115 = vst.msk [vmem:[%s6439_s1 + $0x38] sm:$0xff] %vm1254_vm7, %v6044_v31   ;;  %v2785_v34 = vsel %vm25_vm5, %v3507_v36, %v2781_v47 }
  0xe5   :  { %v3439_v8 = vld [vmem:[%s6438_s0 + $0x47] sm:$0x2]   ;;  %vm1394_vm9 = vcmask 949904   ;;  %s3631_s21 = smov 6   ;;  %3133 = vst.msk [vmem:[%s6439_s1 + $0x78] sm:$0xff] %vm1324_vm8, %v6115_v62   ;;  %vm1359_vm10 = vcmask 966304   ;;  %v2789_v28 = vsel %vm29_vm6, %v3508_v37, %v2785_v34 }
  0xe6   :  { %v3440_v45 = vld [vmem:[%s6438_s0 + $0x86] sm:$0x4]   ;;  %v2520_v31 = vsel %vm5_vm0, %v3439_v8, %v3438_v40  ;;  %v1463_v51 = vpop.permute.xlu1 %1462   ;;  %2720 = vrot.lane.b32.xlu1 %v2719_v46, %s3631_s21  ;;  %3151 = vst.msk [vmem:[%s6439_s1 + $0x30] sm:$0xff] %vm1394_vm9, %v6100_v57   ;;  %vm1429_vm11 = vcmask 933504   ;;  %v3465_v57 = vld [vmem:[%s6438_s0 + $0x35] sm:$0x1]  }
  0xe7   :  { %v3441_v48 = vld [vmem:[%s6438_s0 + $0xc5] sm:$0x8]   ;;  %v2524_v52 = vsel %vm9_vm1, %v3440_v45, %v2520_v31  ;;  %s3632_s18 = smov 2   ;;  %3142 = vst.msk [vmem:[%s6439_s1 + $0x10] sm:$0xff] %vm1359_vm10, %v6139_v7   ;;  %v3466_v55 = vld [vmem:[%s6438_s0 + $0x74] sm:$0x2]  }
  0xe8   :  { %v3442_v49 = vld [vmem:[%s6438_s0 + $0x104] sm:$0x10]   ;;  %v2528_v56 = vsel %vm13_vm2, %v3441_v48, %v2524_v52  ;;  %2790 = vrot.lane.b32.xlu0 %v2789_v28, %s3632_s18  ;;  %v3467_v60 = vld [vmem:[%s6438_s0 + $0xb3] sm:$0x4]   ;;  %3160 = vst.msk [vmem:[%s6439_s1 + $0x50] sm:$0xff] %vm1429_vm11, %v1428_v41   ;;  %v2625_v62 = vsel %vm5_vm0, %v3466_v55, %v3465_v57  ;;  %vm1499_vm12 = vcmask 900704  }
  0xe9   :  { %v3443_v53 = vld [vmem:[%s6438_s0 + $0x143] sm:$0x20]   ;;  %v2532_v59 = vsel %vm17_vm3, %v3442_v49, %v2528_v56  ;;  %v3468_v63 = vld [vmem:[%s6438_s0 + $0xf2] sm:$0x8]   ;;  %v2629_v2 = vsel %vm9_vm1, %v3467_v60, %v2625_v62  ;;  %3178 = vst.msk [vmem:[%s6439_s1 + $0x8] sm:$0xff] %vm1499_vm12, %v1498_v42   ;;  %vm1464_vm13 = vcmask 917104  }
  0xea   :  { %v3444_v54 = vld [vmem:[%s6438_s0 + $0x182] sm:$0x40]   ;;  %v2536_v61 = vsel %vm21_vm4, %v3443_v53, %v2532_v59  ;;  %v3469_v0 = vld [vmem:[%s6438_s0 + $0x131] sm:$0x10]   ;;  %v2633_v5 = vsel %vm13_vm2, %v3468_v63, %v2629_v2  ;;  %vm1534_vm14 = vcmask 884304   ;;  %s3633_s19 = smov 16  }
  0xeb   :  { %v3445_v58 = vld [vmem:[%s6438_s0 + $0x1c1] sm:$0x80]   ;;  %v2540_v1 = vsel %vm25_vm5, %v3444_v54, %v2536_v61  ;;  %v3470_v3 = vld [vmem:[%s6438_s0 + $0x170] sm:$0x20]   ;;  %v3492_v7 = vld [vmem:[%s6438_s0 + $0x22] sm:$0x1]   ;;  %v2637_v9 = vsel %vm17_vm3, %v3469_v0, %v2633_v5 }
  0xec   :  { %v3471_v4 = vld [vmem:[%s6438_s0 + $0x1af] sm:$0x40]   ;;  %v2544_v50 = vsel %vm29_vm6, %v3445_v58, %v2540_v1  ;;  %v1533_v6 = vpop.permute.xlu0 %1532   ;;  %3169 = vst.msk [vmem:[%s6439_s1 + $0x70] sm:$0xff] %vm1464_vm13, %v1463_v51   ;;  %v3493_v10 = vld [vmem:[%s6438_s0 + $0x61] sm:$0x2]   ;;  %vm1604_vm15 = vcmask 851504   ;;  %v2641_v12 = vsel %vm21_vm4, %v3470_v3, %v2637_v9 }
  0xed   :  { %2545 = vrot.lane.b32.xlu2 %v2544_v50, %s3633_s19  ;;  %v3494_v11 = vld [vmem:[%s6438_s0 + $0xa0] sm:$0x4]   ;;  %3187 = vst.msk [vmem:[%s6439_s1 + $0x28] sm:$0xff] %vm1534_vm14, %v1533_v6   ;;  %v2730_v13 = vsel %vm5_vm0, %v3493_v10, %v3492_v7  ;;  %v1603_v16 = vpop.permute.xlu2 %1602   ;;  %vm1569_vm0 = vcmask 867904   ;;  %v2645_v18 = vsel %vm25_vm5, %v3471_v4, %v2641_v12  ;;  %v3472_v19 = vld [vmem:[%s6438_s0 + $0x1ee] sm:$0x80]  }
  0xee   :  { %v3495_v14 = vld [vmem:[%s6438_s0 + $0xdf] sm:$0x8]   ;;  %v1568_v17 = vpop.permute.xlu1 %1567   ;;  %v2734_v20 = vsel %vm9_vm1, %v3494_v11, %v2730_v13  ;;  %3205 = vst.msk [vmem:[%s6439_s1 + $0x68] sm:$0xff] %vm1604_vm15, %v1603_v16   ;;  %v2649_v24 = vsel %vm29_vm6, %v3472_v19, %v2645_v18  ;;  %vm1639_vm1 = vcmask 835104   ;;  %s3634_s10 = smov 10   ;;  %s3635_s14 = smov 4  }
  0xef   :  { %v3496_v15 = vld [vmem:[%s6438_s0 + $0x11e] sm:$0x10]   ;;  %v2738_v21 = vsel %vm13_vm2, %v3495_v14, %v2734_v20  ;;  %3196 = vst.msk [vmem:[%s6439_s1 + $0x48] sm:$0xff] %vm1569_vm0, %v1568_v17   ;;  %vm1673_vm2 = vcmask 818704   ;;  %vm1848_vm7 = vcmask 736704   ;;  %vm1883_vm8 = vcmask 720304  }
  0xf0   :  { %v2742_v22 = vsel %vm17_vm3, %v3496_v15, %v2738_v21  ;;  %v3497_v23 = vld [vmem:[%s6438_s0 + $0x15d] sm:$0x20]   ;;  %vm1708_vm3 = vcmask 802304   ;;  %vm1918_vm9 = vcmask 703904   ;;  %vm1953_vm10 = vcmask 687504  }
  0xf1   :  { %v2746_v25 = vsel %vm21_vm4, %v3497_v23, %v2742_v22  ;;  %v3498_v26 = vld [vmem:[%s6438_s0 + $0x19c] sm:$0x40]   ;;  %vm1743_vm4 = vcmask 785904   ;;  %vm1988_vm11 = vcmask 671104   ;;  %vm2023_vm12 = vcmask 654704  }
  0xf2   :  { %v2750_v30 = vsel %vm25_vm5, %v3498_v26, %v2746_v25  ;;  %v3499_v32 = vld [vmem:[%s6438_s0 + $0x1db] sm:$0x80]   ;;  %vm1778_vm5 = vcmask 769504   ;;  %vm2058_vm13 = vcmask 638304   ;;  %vm2093_vm14 = vcmask 621904  }
  0xf3   :  { %v2754_v35 = vsel %vm29_vm6, %v3499_v32, %v2750_v30  ;;  %vm1813_vm6 = vcmask 753104   ;;  %vm2128_vm15 = vcmask 605504   ;;  %vm2163_vm0 = vcmask 589104  }
  0xf4   :  { %v1638_v27 = vpop.permute.xlu0 %1637  }
  0xf5   :  { %2650 = vrot.lane.b32.xlu2 %v2649_v24, %s3634_s10  ;;  %1640 = vst.msk [vmem:[%s6439_s1] sm:$0xff] %vm1639_vm1, %v1638_v27   ;;  %vm2198_vm1 = vcmask 572704  }
  0xf6   :  { %v1672_v29 = vpop.permute.xlu1 %1671  }
  0xf7   :  { %3222 = vst.msk [vmem:[%s6439_s1 + $0x20] sm:$0xff] %vm1673_vm2, %v1672_v29   ;;  %v1707_v33 = vpop.permute.xlu2 %1706   ;;  %vm2267_vm2 = vcmask 539904  }
  0xf8   :  { %3231 = vst.msk [vmem:[%s6439_s1 + $0x40] sm:$0xff] %vm1708_vm3, %v1707_v33   ;;  %vm2233_vm3 = vcmask 556304  }
  0xfc   :  { %v1742_v36 = vpop.permute.xlu0 %1741  }
  0xfd   :  { %2755 = vrot.lane.b32.xlu2 %v2754_v35, %s3635_s14  ;;  %3240 = vst.msk [vmem:[%s6439_s1 + $0x60] sm:$0xff] %vm1743_vm4, %v1742_v36   ;;  %vm2302_vm4 = vcmask 523504  }
  0xfe   :  { %v1777_v37 = vpop.permute.xlu1 %1776  }
  0xff   :  { %3249 = vst.msk [vmem:[%s6439_s1 + $0x80] sm:$0xff] %vm1778_vm5, %v1777_v37   ;;  %vm2372_vm5 = vcmask 490704  }
 0x102   :  { %v1812_v38 = vpop.permute.xlu2 %1811  }
 0x103   :  { %3258 = vst.msk [vmem:[%s6439_s1 + $0x18] sm:$0xff] %vm1813_vm6, %v1812_v38   ;;  %vm2337_vm6 = vcmask 507104  }
 0x104   :  { %v1847_v39 = vpop.permute.xlu0 %1846  }
 0x105   :  { %3267 = vst.msk [vmem:[%s6439_s1 + $0x38] sm:$0xff] %vm1848_vm7, %v1847_v39   ;;  %vm2407_vm7 = vcmask 474304  }
 0x108   :  { %v1882_v40 = vpop.permute.xlu1 %1881  }
 0x109   :  { %3276 = vst.msk [vmem:[%s6439_s1 + $0x58] sm:$0xff] %vm1883_vm8, %v1882_v40   ;;  %vm2477_vm8 = vcmask 441504  }
 0x10a   :  { %v1917_v41 = vpop.permute.xlu2 %1916  }
 0x10b   :  { %3285 = vst.msk [vmem:[%s6439_s1 + $0x78] sm:$0xff] %vm1918_vm9, %v1917_v41   ;;  %vm2442_vm9 = vcmask 457904  }
 0x10c   :  { %v1952_v42 = vpop.permute.xlu0 %1951  }
 0x10d   :  { %3294 = vst.msk [vmem:[%s6439_s1 + $0x10] sm:$0xff] %vm1953_vm10, %v1952_v42   ;;  %vm2512_vm10 = vcmask 425104  }
 0x112   :  { %v1987_v43 = vpop.permute.xlu1 %1986  }
 0x113   :  { %3303 = vst.msk [vmem:[%s6439_s1 + $0x30] sm:$0xff] %vm1988_vm11, %v1987_v43   ;;  %vm2547_vm11 = vcmask 408704  }
 0x114   :  { %v2022_v44 = vpop.permute.xlu2 %2021   ;;  %v2057_v8 = vpop.permute.xlu0 %2056  }
 0x115   :  { %3312 = vst.msk [vmem:[%s6439_s1 + $0x50] sm:$0xff] %vm2023_vm12, %v2022_v44   ;;  %vm2582_vm12 = vcmask 392304  }
 0x116   :  { %3321 = vst.msk [vmem:[%s6439_s1 + $0x70] sm:$0xff] %vm2058_vm13, %v2057_v8   ;;  %vm2652_vm13 = vcmask 359504  }
 0x11b   :  { %v2092_v45 = vpop.permute.xlu1 %2091  }
 0x11c   :  { %3330 = vst.msk [vmem:[%s6439_s1 + $0x8] sm:$0xff] %vm2093_vm14, %v2092_v45   ;;  %vm2617_vm14 = vcmask 375904  }
 0x11d   :  { %v2127_v46 = vpop.permute.xlu2 %2126   ;;  %v2162_v47 = vpop.permute.xlu0 %2161  }
 0x11e   :  { %3339 = vst.msk [vmem:[%s6439_s1 + $0x28] sm:$0xff] %vm2128_vm15, %v2127_v46   ;;  %vm2687_vm15 = vcmask 343104  }
 0x11f   :  { %3348 = vst.msk [vmem:[%s6439_s1 + $0x48] sm:$0xff] %vm2163_vm0, %v2162_v47   ;;  %vm2757_vm0 = vcmask 310304  }
 0x125   :  { %v2197_v31 = vpop.permute.xlu1 %2196  }
 0x126   :  { %3357 = vst.msk [vmem:[%s6439_s1 + $0x68] sm:$0xff] %vm2198_vm1, %v2197_v31   ;;  %vm2722_vm1 = vcmask 326704  }
 0x127   :  { %v2266_v48 = vpop.permute.xlu0 %2265  }
 0x128   :  { %3374 = vst.msk [vmem:[%s6439_s1 + $0x20] sm:$0xff] %vm2267_vm2, %v2266_v48   ;;  %vm2792_vm2 = vcmask 293904  }
 0x12a   :  { %v2232_v49 = vpop.permute.xlu2 %2231  }
 0x12b   :  { %2234 = vst.msk [vmem:[%s6439_s1] sm:$0xff] %vm2233_vm3, %v2232_v49  }
 0x12f   :  { %v2301_v51 = vpop.permute.xlu1 %2300  }
 0x130   :  { %3383 = vst.msk [vmem:[%s6439_s1 + $0x40] sm:$0xff] %vm2302_vm4, %v2301_v51   ;;  %v2371_v34 = vpop.permute.xlu0 %2370  }
 0x131   :  { %3401 = vst.msk [vmem:[%s6439_s1 + $0x80] sm:$0xff] %vm2372_vm5, %v2371_v34  }
 0x133   :  { %v2336_v52 = vpop.permute.xlu2 %2335  }
 0x134   :  { %3392 = vst.msk [vmem:[%s6439_s1 + $0x60] sm:$0xff] %vm2337_vm6, %v2336_v52  }
 0x138   :  { %v2406_v53 = vpop.permute.xlu1 %2405  }
 0x139   :  { %3410 = vst.msk [vmem:[%s6439_s1 + $0x18] sm:$0xff] %vm2407_vm7, %v2406_v53   ;;  %v2476_v54 = vpop.permute.xlu0 %2475  }
 0x13a   :  { %3428 = vst.msk [vmem:[%s6439_s1 + $0x58] sm:$0xff] %vm2477_vm8, %v2476_v54  }
 0x13d   :  { %v2441_v28 = vpop.permute.xlu2 %2440  }
 0x13e   :  { %3419 = vst.msk [vmem:[%s6439_s1 + $0x38] sm:$0xff] %vm2442_vm9, %v2441_v28  }
 0x143   :  { %v2511_v56 = vpop.permute.xlu1 %2510  }
 0x144   :  { %3437 = vst.msk [vmem:[%s6439_s1 + $0x78] sm:$0xff] %vm2512_vm10, %v2511_v56  }
 0x147   :  { %v2546_v58 = vpop.permute.xlu2 %2545  }
 0x148   :  { %3446 = vst.msk [vmem:[%s6439_s1 + $0x10] sm:$0xff] %vm2547_vm11, %v2546_v58   ;;  %v2581_v57 = vpop.permute.xlu0 %2580  }
 0x149   :  { %3455 = vst.msk [vmem:[%s6439_s1 + $0x30] sm:$0xff] %vm2582_vm12, %v2581_v57  }
 0x14d   :  { %v2616_v55 = vpop.permute.xlu1 %2615  }
 0x14e   :  { %3464 = vst.msk [vmem:[%s6439_s1 + $0x50] sm:$0xff] %vm2617_vm14, %v2616_v55  }
 0x14f   :  { %v2651_v59 = vpop.permute.xlu2 %2650  }
 0x150   :  { %3473 = vst.msk [vmem:[%s6439_s1 + $0x70] sm:$0xff] %vm2652_vm13, %v2651_v59   ;;  %v2686_v60 = vpop.permute.xlu0 %2685  }
 0x151   :  { %3482 = vst.msk [vmem:[%s6439_s1 + $0x8] sm:$0xff] %vm2687_vm15, %v2686_v60  }
 0x157   :  { %v2756_v61 = vpop.permute.xlu2 %2755  }
 0x158   :  { %3500 = vst.msk [vmem:[%s6439_s1 + $0x48] sm:$0xff] %vm2757_vm0, %v2756_v61   ;;  %v2721_v62 = vpop.permute.xlu1 %2720  }
 0x159   :  { %3491 = vst.msk [vmem:[%s6439_s1 + $0x28] sm:$0xff] %vm2722_vm1, %v2721_v62  }
 0x15a   :  { %v2791_v63 = vpop.permute.xlu0 %2790  }
 0x15b   :  { %3509 = vst.msk [vmem:[%s6439_s1 + $0x68] sm:$0xff] %vm2792_vm2, %v2791_v63  }

// kernel: eegnet_forward.1
= control target key start
LH: loop header
LB: loop body
LE: loop exit
PB: predicated region body
PF: predicated region fallthrough
CT: control target
= control target key end

     0   :  { %s4776_s18 = smov 0   ;;  %s4778_s19 = smov 0   ;;  %s5956_s0 = inlined_call_operand.vmem [shape: bf16[128,4352], index: 0, kind: input, shape index: {}]   ;;  %s5957_s1 = inlined_call_operand.vmem [shape: bf16[8,128], index: 1, kind: input, shape index: {}]   ;;  %s5958_s2 = inlined_call_operand.vmem [shape: f32[8,2176], index: 2, kind: input, shape index: {}]   ;;  %s5959_s3 = inlined_call_operand.vmem [shape: bf16[2176,128], index: 3, kind: input, shape index: {}]   ;;  %s5960_s4 = inlined_call_operand.vmem [shape: f32[8,32], index: 4, kind: input, shape index: {}]   ;;  %s5961_s5 = inlined_call_operand.vmem [shape: f32[2,2,64], index: 5, kind: output, shape index: {}]  }
   0x1   :  { %s4780_s20 = smov 0  }
   0x2 LB: > { %s3219_s21 = sadd.s32 4294967295, %s4737_s20   ;;  %s4793_s22 = sadd.s32 1, %s4737_s20   ;;  %s4737_s20 = sphi %s4780_s20, %s5964_s20   ;;  %s4733_s19 = sphi %s4778_s19, %s5963_s19   ;;  %s4729_s18 = sphi %s4776_s18, %s5962_s18  }
   0x3   : > { %s19_s23 = ssub.s32 %s4737_s20, %s4793_s22  ;;  %s22_s24 = sadd.s32 1, %s4733_s19 }
   0x4   : > { %p20_p0 = scmp.eq.s32.totalorder %s19_s23, 0  ;;  %p29_p1 = scmp.ne.s32.totalorder %s4733_s19, %s4729_s18 }
   0x5   : > { %p30_p2 = scmp.eq.s32.totalorder %s4737_s20, 0  ;;  %p3222_p4 = scmp.ge.s32.totalorder %s4737_s20, 2 }
   0x6   : > { %s4802_s25 = scalar_select %p20_p0, %s4733_s19, %s22_s24  }
   0x7   : > { %p31_p3 = por %p30_p2, %p29_p1  ;;  %177 = sbr.rel (%p3222_p4) target bundleno = 161 (0xa1), region = 32 }
   0xc   : > { %180 = sbr.rel (!%p31_p3) target bundleno = 161 (0xa1), region = 36  ;;  %s182_s26 = sand.u32 (%p31_p3), 1, %s4733_s19  }
   0xd   : > { %s4369_s27 = smul.u32 (%p31_p3), 68, %s4737_s20 }
   0xe   : > { %s4642_s28 = smul.u32 (%p31_p3), 1088, %s182_s26 }
   0xf   : > { %s4810_s6 = scalar_lea.vmem (%p31_p3), %s5956_s0, %s4369_s27 }
  0x10   : > { %v202_v0 = vld [vmem:[%s4810_s6] sm:$0xff] (%p31_p3)  ;;  %v204_v1 = vld [vmem:[%s4810_s6 + $0x8] sm:$0xff] (%p31_p3)  ;;  %v206_v2 = vld [vmem:[%s4810_s6 + $0x10] sm:$0xff] (%p31_p3)  ;;  %s4815_s7 = scalar_lea.vmem (%p31_p3), [#allocation2], %s4642_s28 }
  0x11   : > { %203 = vst [vmem:[%s4815_s7] sm:$0xff] %v202_v0  ;;  %v208_v3 = vld [vmem:[%s4810_s6 + $0x18] sm:$0xff]  ;;  %v210_v4 = vld [vmem:[%s4810_s6 + $0x20] sm:$0xff]  ;;  %v212_v5 = vld [vmem:[%s4810_s6 + $0x28] sm:$0xff] }
  0x12   : > { %205 = vst [vmem:[%s4815_s7 + $0x8] sm:$0xff] %v204_v1  ;;  %v214_v6 = vld [vmem:[%s4810_s6 + $0x30] sm:$0xff]  ;;  %v216_v7 = vld [vmem:[%s4810_s6 + $0x38] sm:$0xff]  ;;  %v218_v8 = vld [vmem:[%s4810_s6 + $0x88] sm:$0xff] }
  0x13   : > { %207 = vst [vmem:[%s4815_s7 + $0x10] sm:$0xff] %v206_v2  ;;  %v220_v9 = vld [vmem:[%s4810_s6 + $0x90] sm:$0xff]  ;;  %v222_v10 = vld [vmem:[%s4810_s6 + $0x98] sm:$0xff]  ;;  %v224_v11 = vld [vmem:[%s4810_s6 + $0xa0] sm:$0xff] }
  0x14   : > { %209 = vst [vmem:[%s4815_s7 + $0x18] sm:$0xff] %v208_v3  ;;  %v226_v12 = vld [vmem:[%s4810_s6 + $0xa8] sm:$0xff]  ;;  %v228_v13 = vld [vmem:[%s4810_s6 + $0xb0] sm:$0xff]  ;;  %v230_v14 = vld [vmem:[%s4810_s6 + $0xb8] sm:$0xff] }
  0x15   : > { %211 = vst [vmem:[%s4815_s7 + $0x20] sm:$0xff] %v210_v4  ;;  %v232_v15 = vld [vmem:[%s4810_s6 + $0xc0] sm:$0xff]  ;;  %v234_v16 = vld [vmem:[%s4810_s6 + $0x110] sm:$0xff]  ;;  %v236_v17 = vld [vmem:[%s4810_s6 + $0x118] sm:$0xff] }
  0x16   : > { %213 = vst [vmem:[%s4815_s7 + $0x28] sm:$0xff] %v212_v5  ;;  %v238_v18 = vld [vmem:[%s4810_s6 + $0x120] sm:$0xff]  ;;  %v240_v19 = vld [vmem:[%s4810_s6 + $0x128] sm:$0xff]  ;;  %v242_v20 = vld [vmem:[%s4810_s6 + $0x130] sm:$0xff] }
  0x17   : > { %215 = vst [vmem:[%s4815_s7 + $0x30] sm:$0xff] %v214_v6  ;;  %v244_v21 = vld [vmem:[%s4810_s6 + $0x138] sm:$0xff]  ;;  %v246_v22 = vld [vmem:[%s4810_s6 + $0x140] sm:$0xff]  ;;  %v248_v23 = vld [vmem:[%s4810_s6 + $0x148] sm:$0xff] }
  0x18   : > { %217 = vst [vmem:[%s4815_s7 + $0x38] sm:$0xff] %v216_v7  ;;  %v250_v24 = vld [vmem:[%s4810_s6 + $0x198] sm:$0xff]  ;;  %v252_v25 = vld [vmem:[%s4810_s6 + $0x1a0] sm:$0xff]  ;;  %v254_v26 = vld [vmem:[%s4810_s6 + $0x1a8] sm:$0xff] }
  0x19   : > { %219 = vst [vmem:[%s4815_s7 + $0x44] sm:$0xff] %v218_v8  ;;  %v256_v27 = vld [vmem:[%s4810_s6 + $0x1b0] sm:$0xff]  ;;  %v258_v28 = vld [vmem:[%s4810_s6 + $0x1b8] sm:$0xff]  ;;  %v260_v29 = vld [vmem:[%s4810_s6 + $0x1c0] sm:$0xff] }
  0x1a   : > { %221 = vst [vmem:[%s4815_s7 + $0x4c] sm:$0xff] %v220_v9  ;;  %v262_v30 = vld [vmem:[%s4810_s6 + $0x1c8] sm:$0xff]  ;;  %v264_v31 = vld [vmem:[%s4810_s6 + $0x1d0] sm:$0xff]  ;;  %v266_v32 = vld [vmem:[%s4810_s6 + $0x220] sm:$0xff] }
  0x1b   : > { %223 = vst [vmem:[%s4815_s7 + $0x54] sm:$0xff] %v222_v10  ;;  %v268_v33 = vld [vmem:[%s4810_s6 + $0x228] sm:$0xff]  ;;  %v270_v34 = vld [vmem:[%s4810_s6 + $0x230] sm:$0xff]  ;;  %v272_v35 = vld [vmem:[%s4810_s6 + $0x238] sm:$0xff] }
  0x1c   : > { %225 = vst [vmem:[%s4815_s7 + $0x5c] sm:$0xff] %v224_v11  ;;  %v274_v36 = vld [vmem:[%s4810_s6 + $0x240] sm:$0xff]  ;;  %v276_v37 = vld [vmem:[%s4810_s6 + $0x248] sm:$0xff]  ;;  %v278_v38 = vld [vmem:[%s4810_s6 + $0x250] sm:$0xff] }
  0x1d   : > { %227 = vst [vmem:[%s4815_s7 + $0x64] sm:$0xff] %v226_v12  ;;  %v280_v39 = vld [vmem:[%s4810_s6 + $0x258] sm:$0xff]  ;;  %v282_v40 = vld [vmem:[%s4810_s6 + $0x2a8] sm:$0xff]  ;;  %v284_v41 = vld [vmem:[%s4810_s6 + $0x2b0] sm:$0xff] }
  0x1e   : > { %229 = vst [vmem:[%s4815_s7 + $0x6c] sm:$0xff] %v228_v13  ;;  %v286_v42 = vld [vmem:[%s4810_s6 + $0x2b8] sm:$0xff]  ;;  %v288_v43 = vld [vmem:[%s4810_s6 + $0x2c0] sm:$0xff]  ;;  %v290_v44 = vld [vmem:[%s4810_s6 + $0x2c8] sm:$0xff] }
  0x1f   : > { %231 = vst [vmem:[%s4815_s7 + $0x74] sm:$0xff] %v230_v14  ;;  %v292_v45 = vld [vmem:[%s4810_s6 + $0x2d0] sm:$0xff]  ;;  %v294_v46 = vld [vmem:[%s4810_s6 + $0x2d8] sm:$0xff]  ;;  %v296_v47 = vld [vmem:[%s4810_s6 + $0x2e0] sm:$0xff] }
  0x20   : > { %233 = vst [vmem:[%s4815_s7 + $0x7c] sm:$0xff] %v232_v15  ;;  %v298_v48 = vld [vmem:[%s4810_s6 + $0x330] sm:$0xff]  ;;  %v300_v49 = vld [vmem:[%s4810_s6 + $0x338] sm:$0xff]  ;;  %v302_v50 = vld [vmem:[%s4810_s6 + $0x340] sm:$0xff] }
  0x21   : > { %235 = vst [vmem:[%s4815_s7 + $0x88] sm:$0xff] %v234_v16  ;;  %v304_v51 = vld [vmem:[%s4810_s6 + $0x348] sm:$0xff]  ;;  %v306_v52 = vld [vmem:[%s4810_s6 + $0x350] sm:$0xff]  ;;  %v308_v53 = vld [vmem:[%s4810_s6 + $0x358] sm:$0xff] }
  0x22   : > { %237 = vst [vmem:[%s4815_s7 + $0x90] sm:$0xff] %v236_v17  ;;  %v310_v54 = vld [vmem:[%s4810_s6 + $0x360] sm:$0xff]  ;;  %v312_v55 = vld [vmem:[%s4810_s6 + $0x368] sm:$0xff]  ;;  %v314_v56 = vld [vmem:[%s4810_s6 + $0x3b8] sm:$0xff] }
  0x23   : > { %239 = vst [vmem:[%s4815_s7 + $0x98] sm:$0xff] %v238_v18  ;;  %v316_v57 = vld [vmem:[%s4810_s6 + $0x3c0] sm:$0xff]  ;;  %v318_v58 = vld [vmem:[%s4810_s6 + $0x3c8] sm:$0xff]  ;;  %v320_v59 = vld [vmem:[%s4810_s6 + $0x3d0] sm:$0xff] }
  0x24   : > { %241 = vst [vmem:[%s4815_s7 + $0xa0] sm:$0xff] %v240_v19  ;;  %v322_v60 = vld [vmem:[%s4810_s6 + $0x3d8] sm:$0xff]  ;;  %v324_v61 = vld [vmem:[%s4810_s6 + $0x3e0] sm:$0xff]  ;;  %v326_v62 = vld [vmem:[%s4810_s6 + $0x3e8] sm:$0xff] }
  0x25   : > { %243 = vst [vmem:[%s4815_s7 + $0xa8] sm:$0xff] %v242_v20  ;;  %v328_v63 = vld [vmem:[%s4810_s6 + $0x3f0] sm:$0xff]  ;;  %v330_v0 = vld [vmem:[%s4810_s6 + $0x440] sm:$0xff]  ;;  %v332_v1 = vld [vmem:[%s4810_s6 + $0x448] sm:$0xff] }
  0x26   : > { %245 = vst [vmem:[%s4815_s7 + $0xb0] sm:$0xff] %v244_v21  ;;  %v334_v2 = vld [vmem:[%s4810_s6 + $0x450] sm:$0xff]  ;;  %v336_v3 = vld [vmem:[%s4810_s6 + $0x458] sm:$0xff]  ;;  %v338_v4 = vld [vmem:[%s4810_s6 + $0x460] sm:$0xff] }
  0x27   : > { %247 = vst [vmem:[%s4815_s7 + $0xb8] sm:$0xff] %v246_v22  ;;  %v340_v5 = vld [vmem:[%s4810_s6 + $0x468] sm:$0xff]  ;;  %v342_v6 = vld [vmem:[%s4810_s6 + $0x470] sm:$0xff]  ;;  %v344_v7 = vld [vmem:[%s4810_s6 + $0x478] sm:$0xff] }
  0x28   : > { %249 = vst [vmem:[%s4815_s7 + $0xc0] sm:$0xff] %v248_v23  ;;  %v346_v8 = vld [vmem:[%s4810_s6 + $0x4c8] sm:$0xff]  ;;  %v348_v9 = vld [vmem:[%s4810_s6 + $0x4d0] sm:$0xff]  ;;  %v350_v10 = vld [vmem:[%s4810_s6 + $0x4d8] sm:$0xff] }
  0x29   : > { %251 = vst [vmem:[%s4815_s7 + $0xcc] sm:$0xff] %v250_v24  ;;  %v352_v11 = vld [vmem:[%s4810_s6 + $0x4e0] sm:$0xff]  ;;  %v354_v12 = vld [vmem:[%s4810_s6 + $0x4e8] sm:$0xff]  ;;  %v356_v13 = vld [vmem:[%s4810_s6 + $0x4f0] sm:$0xff] }
  0x2a   : > { %253 = vst [vmem:[%s4815_s7 + $0xd4] sm:$0xff] %v252_v25  ;;  %v358_v14 = vld [vmem:[%s4810_s6 + $0x4f8] sm:$0xff]  ;;  %v360_v15 = vld [vmem:[%s4810_s6 + $0x500] sm:$0xff]  ;;  %v362_v16 = vld [vmem:[%s4810_s6 + $0x550] sm:$0xff] }
  0x2b   : > { %255 = vst [vmem:[%s4815_s7 + $0xdc] sm:$0xff] %v254_v26  ;;  %v364_v17 = vld [vmem:[%s4810_s6 + $0x558] sm:$0xff]  ;;  %v366_v18 = vld [vmem:[%s4810_s6 + $0x560] sm:$0xff]  ;;  %v368_v19 = vld [vmem:[%s4810_s6 + $0x568] sm:$0xff] }
  0x2c   : > { %257 = vst [vmem:[%s4815_s7 + $0xe4] sm:$0xff] %v256_v27  ;;  %v370_v20 = vld [vmem:[%s4810_s6 + $0x570] sm:$0xff]  ;;  %v372_v21 = vld [vmem:[%s4810_s6 + $0x578] sm:$0xff]  ;;  %v374_v22 = vld [vmem:[%s4810_s6 + $0x580] sm:$0xff] }
  0x2d   : > { %259 = vst [vmem:[%s4815_s7 + $0xec] sm:$0xff] %v258_v28  ;;  %v376_v23 = vld [vmem:[%s4810_s6 + $0x588] sm:$0xff]  ;;  %v378_v24 = vld [vmem:[%s4810_s6 + $0x5d8] sm:$0xff]  ;;  %v380_v25 = vld [vmem:[%s4810_s6 + $0x5e0] sm:$0xff] }
  0x2e   : > { %261 = vst [vmem:[%s4815_s7 + $0xf4] sm:$0xff] %v260_v29  ;;  %v382_v26 = vld [vmem:[%s4810_s6 + $0x5e8] sm:$0xff]  ;;  %v384_v27 = vld [vmem:[%s4810_s6 + $0x5f0] sm:$0xff]  ;;  %v386_v28 = vld [vmem:[%s4810_s6 + $0x5f8] sm:$0xff] }
  0x2f   : > { %263 = vst [vmem:[%s4815_s7 + $0xfc] sm:$0xff] %v262_v30  ;;  %v388_v29 = vld [vmem:[%s4810_s6 + $0x600] sm:$0xff]  ;;  %v390_v30 = vld [vmem:[%s4810_s6 + $0x608] sm:$0xff] }
  0x30   : > { %265 = vst [vmem:[%s4815_s7 + $0x104] sm:$0xff] %v264_v31  ;;  %v392_v31 = vld [vmem:[%s4810_s6 + $0x610] sm:$0xff] }
  0x31   : > { %267 = vst [vmem:[%s4815_s7 + $0x110] sm:$0xff] %v266_v32  ;;  %v394_v32 = vld [vmem:[%s4810_s6 + $0x660] sm:$0xff] }
  0x32   : > { %269 = vst [vmem:[%s4815_s7 + $0x118] sm:$0xff] %v268_v33  ;;  %v396_v33 = vld [vmem:[%s4810_s6 + $0x668] sm:$0xff] }
  0x33   : > { %271 = vst [vmem:[%s4815_s7 + $0x120] sm:$0xff] %v270_v34  ;;  %v398_v34 = vld [vmem:[%s4810_s6 + $0x670] sm:$0xff] }
  0x34   : > { %273 = vst [vmem:[%s4815_s7 + $0x128] sm:$0xff] %v272_v35  ;;  %v400_v35 = vld [vmem:[%s4810_s6 + $0x678] sm:$0xff] }
  0x35   : > { %275 = vst [vmem:[%s4815_s7 + $0x130] sm:$0xff] %v274_v36  ;;  %v402_v36 = vld [vmem:[%s4810_s6 + $0x680] sm:$0xff] }
  0x36   : > { %277 = vst [vmem:[%s4815_s7 + $0x138] sm:$0xff] %v276_v37  ;;  %v404_v37 = vld [vmem:[%s4810_s6 + $0x688] sm:$0xff] }
  0x37   : > { %279 = vst [vmem:[%s4815_s7 + $0x140] sm:$0xff] %v278_v38  ;;  %v406_v38 = vld [vmem:[%s4810_s6 + $0x690] sm:$0xff] }
  0x38   : > { %281 = vst [vmem:[%s4815_s7 + $0x148] sm:$0xff] %v280_v39  ;;  %v408_v39 = vld [vmem:[%s4810_s6 + $0x698] sm:$0xff] }
  0x39   : > { %283 = vst [vmem:[%s4815_s7 + $0x154] sm:$0xff] %v282_v40  ;;  %v410_v40 = vld [vmem:[%s4810_s6 + $0x6e8] sm:$0xff] }
  0x3a   : > { %285 = vst [vmem:[%s4815_s7 + $0x15c] sm:$0xff] %v284_v41  ;;  %v412_v41 = vld [vmem:[%s4810_s6 + $0x6f0] sm:$0xff] }
  0x3b   : > { %287 = vst [vmem:[%s4815_s7 + $0x164] sm:$0xff] %v286_v42  ;;  %v414_v42 = vld [vmem:[%s4810_s6 + $0x6f8] sm:$0xff] }
  0x3c   : > { %289 = vst [vmem:[%s4815_s7 + $0x16c] sm:$0xff] %v288_v43  ;;  %v416_v43 = vld [vmem:[%s4810_s6 + $0x700] sm:$0xff] }
  0x3d   : > { %291 = vst [vmem:[%s4815_s7 + $0x174] sm:$0xff] %v290_v44  ;;  %v418_v44 = vld [vmem:[%s4810_s6 + $0x708] sm:$0xff] }
  0x3e   : > { %293 = vst [vmem:[%s4815_s7 + $0x17c] sm:$0xff] %v292_v45  ;;  %v420_v45 = vld [vmem:[%s4810_s6 + $0x710] sm:$0xff] }
  0x3f   : > { %295 = vst [vmem:[%s4815_s7 + $0x184] sm:$0xff] %v294_v46  ;;  %v422_v46 = vld [vmem:[%s4810_s6 + $0x718] sm:$0xff] }
  0x40   : > { %297 = vst [vmem:[%s4815_s7 + $0x18c] sm:$0xff] %v296_v47  ;;  %v424_v47 = vld [vmem:[%s4810_s6 + $0x720] sm:$0xff] }
  0x41   : > { %299 = vst [vmem:[%s4815_s7 + $0x198] sm:$0xff] %v298_v48  ;;  %v426_v48 = vld [vmem:[%s4810_s6 + $0x770] sm:$0xff] }
  0x42   : > { %301 = vst [vmem:[%s4815_s7 + $0x1a0] sm:$0xff] %v300_v49  ;;  %v428_v49 = vld [vmem:[%s4810_s6 + $0x778] sm:$0xff] }
  0x43   : > { %303 = vst [vmem:[%s4815_s7 + $0x1a8] sm:$0xff] %v302_v50  ;;  %v430_v50 = vld [vmem:[%s4810_s6 + $0x780] sm:$0xff] }
  0x44   : > { %305 = vst [vmem:[%s4815_s7 + $0x1b0] sm:$0xff] %v304_v51  ;;  %v432_v51 = vld [vmem:[%s4810_s6 + $0x788] sm:$0xff] }
  0x45   : > { %307 = vst [vmem:[%s4815_s7 + $0x1b8] sm:$0xff] %v306_v52  ;;  %v434_v52 = vld [vmem:[%s4810_s6 + $0x790] sm:$0xff] }
  0x46   : > { %309 = vst [vmem:[%s4815_s7 + $0x1c0] sm:$0xff] %v308_v53  ;;  %v436_v53 = vld [vmem:[%s4810_s6 + $0x798] sm:$0xff] }
  0x47   : > { %311 = vst [vmem:[%s4815_s7 + $0x1c8] sm:$0xff] %v310_v54  ;;  %v438_v54 = vld [vmem:[%s4810_s6 + $0x7a0] sm:$0xff] }
  0x48   : > { %313 = vst [vmem:[%s4815_s7 + $0x1d0] sm:$0xff] %v312_v55  ;;  %v440_v55 = vld [vmem:[%s4810_s6 + $0x7a8] sm:$0xff] }
  0x49   : > { %315 = vst [vmem:[%s4815_s7 + $0x1dc] sm:$0xff] %v314_v56  ;;  %v442_v56 = vld [vmem:[%s4810_s6 + $0x7f8] sm:$0xff] }
  0x4a   : > { %317 = vst [vmem:[%s4815_s7 + $0x1e4] sm:$0xff] %v316_v57  ;;  %v444_v57 = vld [vmem:[%s4810_s6 + $0x800] sm:$0xff] }
  0x4b   : > { %319 = vst [vmem:[%s4815_s7 + $0x1ec] sm:$0xff] %v318_v58  ;;  %v446_v58 = vld [vmem:[%s4810_s6 + $0x808] sm:$0xff] }
  0x4c   : > { %321 = vst [vmem:[%s4815_s7 + $0x1f4] sm:$0xff] %v320_v59  ;;  %v448_v59 = vld [vmem:[%s4810_s6 + $0x810] sm:$0xff] }
  0x4d   : > { %323 = vst [vmem:[%s4815_s7 + $0x1fc] sm:$0xff] %v322_v60  ;;  %v450_v60 = vld [vmem:[%s4810_s6 + $0x818] sm:$0xff] }
  0x4e   : > { %325 = vst [vmem:[%s4815_s7 + $0x204] sm:$0xff] %v324_v61  ;;  %v452_v61 = vld [vmem:[%s4810_s6 + $0x820] sm:$0xff] }
  0x4f   : > { %327 = vst [vmem:[%s4815_s7 + $0x20c] sm:$0xff] %v326_v62  ;;  %v454_v62 = vld [vmem:[%s4810_s6 + $0x828] sm:$0xff] }
  0x50   : > { %329 = vst [vmem:[%s4815_s7 + $0x214] sm:$0xff] %v328_v63  ;;  %v456_v63 = vld [vmem:[%s4810_s6 + $0x830] sm:$0xff] }
  0x51   : > { %331 = vst [vmem:[%s4815_s7 + $0x220] sm:$0xff] %v330_v0  ;;  %v3224_v0 = vld [vmem:[%s4810_s6 + $0x40] sm:$0xf] }
  0x52   : > { %333 = vst [vmem:[%s4815_s7 + $0x228] sm:$0xff] %v332_v1  ;;  %v3226_v1 = vld [vmem:[%s4810_s6 + $0xc8] sm:$0xf] }
  0x53   : > { %335 = vst [vmem:[%s4815_s7 + $0x230] sm:$0xff] %v334_v2  ;;  %v3228_v2 = vld [vmem:[%s4810_s6 + $0x150] sm:$0xf] }
  0x54   : > { %337 = vst [vmem:[%s4815_s7 + $0x238] sm:$0xff] %v336_v3  ;;  %v3230_v3 = vld [vmem:[%s4810_s6 + $0x1d8] sm:$0xf] }
  0x55   : > { %339 = vst [vmem:[%s4815_s7 + $0x240] sm:$0xff] %v338_v4  ;;  %v3232_v4 = vld [vmem:[%s4810_s6 + $0x260] sm:$0xf] }
  0x56   : > { %341 = vst [vmem:[%s4815_s7 + $0x248] sm:$0xff] %v340_v5  ;;  %v3234_v5 = vld [vmem:[%s4810_s6 + $0x2e8] sm:$0xf] }
  0x57   : > { %343 = vst [vmem:[%s4815_s7 + $0x250] sm:$0xff] %v342_v6  ;;  %v3236_v6 = vld [vmem:[%s4810_s6 + $0x370] sm:$0xf] }
  0x58   : > { %345 = vst [vmem:[%s4815_s7 + $0x258] sm:$0xff] %v344_v7  ;;  %v3238_v7 = vld [vmem:[%s4810_s6 + $0x3f8] sm:$0xf] }
  0x59   : > { %347 = vst [vmem:[%s4815_s7 + $0x264] sm:$0xff] %v346_v8  ;;  %v3240_v8 = vld [vmem:[%s4810_s6 + $0x480] sm:$0xf] }
  0x5a   : > { %349 = vst [vmem:[%s4815_s7 + $0x26c] sm:$0xff] %v348_v9  ;;  %v3242_v9 = vld [vmem:[%s4810_s6 + $0x508] sm:$0xf] }
  0x5b   : > { %351 = vst [vmem:[%s4815_s7 + $0x274] sm:$0xff] %v350_v10  ;;  %v3244_v10 = vld [vmem:[%s4810_s6 + $0x590] sm:$0xf] }
  0x5c   : > { %353 = vst [vmem:[%s4815_s7 + $0x27c] sm:$0xff] %v352_v11  ;;  %v3246_v11 = vld [vmem:[%s4810_s6 + $0x618] sm:$0xf] }
  0x5d   : > { %355 = vst [vmem:[%s4815_s7 + $0x284] sm:$0xff] %v354_v12  ;;  %v3248_v12 = vld [vmem:[%s4810_s6 + $0x6a0] sm:$0xf] }
  0x5e   : > { %357 = vst [vmem:[%s4815_s7 + $0x28c] sm:$0xff] %v356_v13  ;;  %v3250_v13 = vld [vmem:[%s4810_s6 + $0x728] sm:$0xf] }
  0x5f   : > { %359 = vst [vmem:[%s4815_s7 + $0x294] sm:$0xff] %v358_v14  ;;  %v3252_v14 = vld [vmem:[%s4810_s6 + $0x7b0] sm:$0xf] }
  0x60   : > { %361 = vst [vmem:[%s4815_s7 + $0x29c] sm:$0xff] %v360_v15  ;;  %v3254_v15 = vld [vmem:[%s4810_s6 + $0x838] sm:$0xf] }
  0x61   : > { %363 = vst [vmem:[%s4815_s7 + $0x2a8] sm:$0xff] %v362_v16 }
  0x62   : > { %365 = vst [vmem:[%s4815_s7 + $0x2b0] sm:$0xff] %v364_v17 }
  0x63   : > { %367 = vst [vmem:[%s4815_s7 + $0x2b8] sm:$0xff] %v366_v18 }
  0x64   : > { %369 = vst [vmem:[%s4815_s7 + $0x2c0] sm:$0xff] %v368_v19 }
  0x65   : > { %371 = vst [vmem:[%s4815_s7 + $0x2c8] sm:$0xff] %v370_v20 }
  0x66   : > { %373 = vst [vmem:[%s4815_s7 + $0x2d0] sm:$0xff] %v372_v21 }
  0x67   : > { %375 = vst [vmem:[%s4815_s7 + $0x2d8] sm:$0xff] %v374_v22 }
  0x68   : > { %377 = vst [vmem:[%s4815_s7 + $0x2e0] sm:$0xff] %v376_v23 }
  0x69   : > { %379 = vst [vmem:[%s4815_s7 + $0x2ec] sm:$0xff] %v378_v24 }
  0x6a   : > { %381 = vst [vmem:[%s4815_s7 + $0x2f4] sm:$0xff] %v380_v25 }
  0x6b   : > { %383 = vst [vmem:[%s4815_s7 + $0x2fc] sm:$0xff] %v382_v26 }
  0x6c   : > { %385 = vst [vmem:[%s4815_s7 + $0x304] sm:$0xff] %v384_v27 }
  0x6d   : > { %387 = vst [vmem:[%s4815_s7 + $0x30c] sm:$0xff] %v386_v28 }
  0x6e   : > { %389 = vst [vmem:[%s4815_s7 + $0x314] sm:$0xff] %v388_v29 }
  0x6f   : > { %391 = vst [vmem:[%s4815_s7 + $0x31c] sm:$0xff] %v390_v30 }
  0x70   : > { %393 = vst [vmem:[%s4815_s7 + $0x324] sm:$0xff] %v392_v31 }
  0x71   : > { %395 = vst [vmem:[%s4815_s7 + $0x330] sm:$0xff] %v394_v32 }
  0x72   : > { %397 = vst [vmem:[%s4815_s7 + $0x338] sm:$0xff] %v396_v33 }
  0x73   : > { %399 = vst [vmem:[%s4815_s7 + $0x340] sm:$0xff] %v398_v34 }
  0x74   : > { %401 = vst [vmem:[%s4815_s7 + $0x348] sm:$0xff] %v400_v35 }
  0x75   : > { %403 = vst [vmem:[%s4815_s7 + $0x350] sm:$0xff] %v402_v36 }
  0x76   : > { %405 = vst [vmem:[%s4815_s7 + $0x358] sm:$0xff] %v404_v37 }
  0x77   : > { %407 = vst [vmem:[%s4815_s7 + $0x360] sm:$0xff] %v406_v38 }
  0x78   : > { %409 = vst [vmem:[%s4815_s7 + $0x368] sm:$0xff] %v408_v39 }
  0x79   : > { %411 = vst [vmem:[%s4815_s7 + $0x374] sm:$0xff] %v410_v40 }
  0x7a   : > { %413 = vst [vmem:[%s4815_s7 + $0x37c] sm:$0xff] %v412_v41 }
  0x7b   : > { %415 = vst [vmem:[%s4815_s7 + $0x384] sm:$0xff] %v414_v42 }
  0x7c   : > { %417 = vst [vmem:[%s4815_s7 + $0x38c] sm:$0xff] %v416_v43 }
  0x7d   : > { %419 = vst [vmem:[%s4815_s7 + $0x394] sm:$0xff] %v418_v44 }
  0x7e   : > { %421 = vst [vmem:[%s4815_s7 + $0x39c] sm:$0xff] %v420_v45 }
  0x7f   : > { %423 = vst [vmem:[%s4815_s7 + $0x3a4] sm:$0xff] %v422_v46 }
  0x80   : > { %425 = vst [vmem:[%s4815_s7 + $0x3ac] sm:$0xff] %v424_v47 }
  0x81   : > { %427 = vst [vmem:[%s4815_s7 + $0x3b8] sm:$0xff] %v426_v48 }
  0x82   : > { %429 = vst [vmem:[%s4815_s7 + $0x3c0] sm:$0xff] %v428_v49 }
  0x83   : > { %431 = vst [vmem:[%s4815_s7 + $0x3c8] sm:$0xff] %v430_v50 }
  0x84   : > { %433 = vst [vmem:[%s4815_s7 + $0x3d0] sm:$0xff] %v432_v51 }
  0x85   : > { %435 = vst [vmem:[%s4815_s7 + $0x3d8] sm:$0xff] %v434_v52 }
  0x86   : > { %437 = vst [vmem:[%s4815_s7 + $0x3e0] sm:$0xff] %v436_v53 }
  0x87   : > { %439 = vst [vmem:[%s4815_s7 + $0x3e8] sm:$0xff] %v438_v54 }
  0x88   : > { %441 = vst [vmem:[%s4815_s7 + $0x3f0] sm:$0xff] %v440_v55 }
  0x89   : > { %443 = vst [vmem:[%s4815_s7 + $0x3fc] sm:$0xff] %v442_v56 }
  0x8a   : > { %445 = vst [vmem:[%s4815_s7 + $0x404] sm:$0xff] %v444_v57 }
  0x8b   : > { %447 = vst [vmem:[%s4815_s7 + $0x40c] sm:$0xff] %v446_v58 }
  0x8c   : > { %449 = vst [vmem:[%s4815_s7 + $0x414] sm:$0xff] %v448_v59 }
  0x8d   : > { %451 = vst [vmem:[%s4815_s7 + $0x41c] sm:$0xff] %v450_v60 }
  0x8e   : > { %453 = vst [vmem:[%s4815_s7 + $0x424] sm:$0xff] %v452_v61 }
  0x8f   : > { %455 = vst [vmem:[%s4815_s7 + $0x42c] sm:$0xff] %v454_v62 }
  0x90   : > { %457 = vst [vmem:[%s4815_s7 + $0x434] sm:$0xff] %v456_v63 }
  0x91   : > { %3225 = vst [vmem:[%s4815_s7 + $0x40] sm:$0xf] %v3224_v0 }
  0x92   : > { %3227 = vst [vmem:[%s4815_s7 + $0x84] sm:$0xf] %v3226_v1 }
  0x93   : > { %3229 = vst [vmem:[%s4815_s7 + $0xc8] sm:$0xf] %v3228_v2 }
  0x94   : > { %3231 = vst [vmem:[%s4815_s7 + $0x10c] sm:$0xf] %v3230_v3 }
  0x95   : > { %3233 = vst [vmem:[%s4815_s7 + $0x150] sm:$0xf] %v3232_v4 }
  0x96   : > { %3235 = vst [vmem:[%s4815_s7 + $0x194] sm:$0xf] %v3234_v5 }
  0x97   : > { %3237 = vst [vmem:[%s4815_s7 + $0x1d8] sm:$0xf] %v3236_v6 }
  0x98   : > { %3239 = vst [vmem:[%s4815_s7 + $0x21c] sm:$0xf] %v3238_v7 }
  0x99   : > { %3241 = vst [vmem:[%s4815_s7 + $0x260] sm:$0xf] %v3240_v8 }
  0x9a   : > { %3243 = vst [vmem:[%s4815_s7 + $0x2a4] sm:$0xf] %v3242_v9 }
  0x9b   : > { %3245 = vst [vmem:[%s4815_s7 + $0x2e8] sm:$0xf] %v3244_v10 }
  0x9c   : > { %3247 = vst [vmem:[%s4815_s7 + $0x32c] sm:$0xf] %v3246_v11 }
  0x9d   : > { %3249 = vst [vmem:[%s4815_s7 + $0x370] sm:$0xf] %v3248_v12 }
  0x9e   : > { %3251 = vst [vmem:[%s4815_s7 + $0x3b4] sm:$0xf] %v3250_v13 }
  0x9f   : > { %3253 = vst [vmem:[%s4815_s7 + $0x3f8] sm:$0xf] %v3252_v14 }
  0xa0   : > { %3255 = vst [vmem:[%s4815_s7 + $0x43c] sm:$0xf] %v3254_v15 }
  0xa1 PF: > { %p3256_p5 = scmp.ge.s32.totalorder %s4737_s20, 1  ;;  %p502_p6 = scmp.lt.s32.totalorder %s4737_s20, 3 }
  0xa3   : > { %p503_p7 = pnand %p3256_p5, %p502_p6 }
  0xa4   : > { %s509_s8 = sand.u32 (!%p503_p7), 1, %s4729_s18   ;;  %s4740_s15 = smov (!%p503_p7), 127  }
  0xa5   : > { %506 = sbr.rel (%p503_p7) target bundleno = 1008 (0x3f0), region = 62  ;;  %s4742_s30 = smov (!%p503_p7), 110  }
  0xa6   : > { %s4643_s9 = smul.u32 (!%p503_p7), 1088, %s509_s8  ;;  %s4743_s6 = smov (!%p503_p7), 118  }
  0xa7   : > { %s4744_s7 = smov (!%p503_p7), 64   ;;  %p536_p8 = scmp.lt.s32.totalorder (!%p503_p7), %s3219_s21, 1 }
  0xa8   : > { %s5105_s10 = scalar_lea.vmem (!%p503_p7), [#allocation2], %s4643_s9 }
  0xaa   : > { %v3736_v16 = vld [vmem:[%s5105_s10 + $0x3b8] sm:$0xf]  ;;  %v4497_v17 = vld [vmem:[%s5105_s10 + $0x3f8] sm:$0xf0]  ;;  %v3738_v20 = vld [vmem:[%s5105_s10 + $0x3fc] sm:$0xf0] }
  0xab   : > { %v4489_v18 = vld [vmem:[%s5105_s10 + $0x3bc] sm:$0xf]  ;;  %v3737_v19 = vor.u32 %v4497_v17, %v3736_v16  ;;  %v3744_v21 = vld [vmem:[%s5105_s10 + $0x3c0] sm:$0xf]  ;;  %v4498_v22 = vld [vmem:[%s5105_s10 + $0x400] sm:$0xf0] }
  0xac   : > { %v3741_v23 = vor.u32 %v4489_v18, %v3738_v20  ;;  %v3745_v24 = vor.u32 %v4498_v22, %v3744_v21  ;;  %v4490_v25 = vld [vmem:[%s5105_s10 + $0x3c4] sm:$0xf]  ;;  %v3746_v26 = vld [vmem:[%s5105_s10 + $0x404] sm:$0xf0]  ;;  %v3668_v27 = vld [vmem:[%s5105_s10 + $0x330] sm:$0xf] }
  0xad   : > { %1379 = vmatpush.bf16.msra.mxu0 %v3737_v19  ;;  %v3749_v28 = vor.u32 %v4490_v25, %v3746_v26  ;;  %v4480_v29 = vld [vmem:[%s5105_s10 + $0x370] sm:$0xf0]  ;;  %v3670_v31 = vld [vmem:[%s5105_s10 + $0x374] sm:$0xf0]  ;;  %v4481_v35 = vld [vmem:[%s5105_s10 + $0x378] sm:$0xf0] }
  0xae   : > { %v4472_v30 = vld [vmem:[%s5105_s10 + $0x334] sm:$0xf]  ;;  %1392 = vmatpush.bf16.msra.mxu1 %v3741_v23  ;;  %1405 = vmatpush.bf16.msra.mxu2 %v3745_v24  ;;  %v3669_v32 = vor.u32 %v4480_v29, %v3668_v27  ;;  %v3676_v34 = vld [vmem:[%s5105_s10 + $0x338] sm:$0xf]  ;;  %v4473_v36 = vld [vmem:[%s5105_s10 + $0x33c] sm:$0xf] }
  0xaf   : > { %v3673_v33 = vor.u32 %v4472_v30, %v3670_v31  ;;  %1418 = vmatpush.bf16.msra.mxu3 %v3749_v28  ;;  %v3677_v37 = vor.u32 %v4481_v35, %v3676_v34  ;;  %v3678_v38 = vld [vmem:[%s5105_s10 + $0x37c] sm:$0xf0]  ;;  %v3600_v39 = vld [vmem:[%s5105_s10 + $0x2a8] sm:$0xf]  ;;  %v4463_v40 = vld [vmem:[%s5105_s10 + $0x2e8] sm:$0xf0] }
  0xb0   : > { %v3681_v41 = vor.u32 %v4473_v36, %v3678_v38  ;;  %v4455_v42 = vld [vmem:[%s5105_s10 + $0x2ac] sm:$0xf]  ;;  %v3602_v43 = vld [vmem:[%s5105_s10 + $0x2ec] sm:$0xf0]  ;;  %v3601_v45 = vor.u32 %v4463_v40, %v3600_v39  ;;  %v4464_v46 = vld [vmem:[%s5105_s10 + $0x2f0] sm:$0xf0] }
  0xb1   : > { %v3608_v44 = vld [vmem:[%s5105_s10 + $0x2b0] sm:$0xf]  ;;  %1380 = vmatpush.bf16.msra.mxu0 %v3669_v32  ;;  %v4456_v47 = vld [vmem:[%s5105_s10 + $0x2b4] sm:$0xf]  ;;  %v3610_v48 = vld [vmem:[%s5105_s10 + $0x2f4] sm:$0xf0]  ;;  %v3605_v49 = vor.u32 %v4455_v42, %v3602_v43 }
  0xb2   : > { %1393 = vmatpush.bf16.msra.mxu1 %v3673_v33  ;;  %1406 = vmatpush.bf16.msra.mxu2 %v3677_v37  ;;  %v3609_v50 = vor.u32 %v4464_v46, %v3608_v44  ;;  %v3532_v51 = vld [vmem:[%s5105_s10 + $0x220] sm:$0xf]  ;;  %v4446_v52 = vld [vmem:[%s5105_s10 + $0x260] sm:$0xf0]  ;;  %v3613_v54 = vor.u32 %v4456_v47, %v3610_v48  ;;  %v3534_v55 = vld [vmem:[%s5105_s10 + $0x264] sm:$0xf0] }
  0xb3   : > { %v4438_v53 = vld [vmem:[%s5105_s10 + $0x224] sm:$0xf]  ;;  %1419 = vmatpush.bf16.msra.mxu3 %v3681_v41  ;;  %v3540_v56 = vld [vmem:[%s5105_s10 + $0x228] sm:$0xf]  ;;  %v4447_v57 = vld [vmem:[%s5105_s10 + $0x268] sm:$0xf0]  ;;  %v3533_v60 = vor.u32 %v4446_v52, %v3532_v51 }
  0xb4   : > { %v4439_v58 = vld [vmem:[%s5105_s10 + $0x22c] sm:$0xf]  ;;  %v3542_v59 = vld [vmem:[%s5105_s10 + $0x26c] sm:$0xf0]  ;;  %v3537_v61 = vor.u32 %v4438_v53, %v3534_v55  ;;  %v3541_v62 = vor.u32 %v4447_v57, %v3540_v56  ;;  %v3464_v63 = vld [vmem:[%s5105_s10 + $0x198] sm:$0xf] }
  0xb5   : > { %1381 = vmatpush.bf16.msra.mxu0 %v3601_v45  ;;  %v4429_v0 = vld [vmem:[%s5105_s10 + $0x1d8] sm:$0xf0]  ;;  %v3545_v2 = vor.u32 %v4439_v58, %v3542_v59  ;;  %v3466_v3 = vld [vmem:[%s5105_s10 + $0x1dc] sm:$0xf0]  ;;  %v4430_v5 = vld [vmem:[%s5105_s10 + $0x1e0] sm:$0xf0] }
  0xb6   : > { %1394 = vmatpush.bf16.msra.mxu1 %v3605_v49  ;;  %1407 = vmatpush.bf16.msra.mxu2 %v3609_v50  ;;  %v4421_v1 = vld [vmem:[%s5105_s10 + $0x19c] sm:$0xf]  ;;  %v3472_v4 = vld [vmem:[%s5105_s10 + $0x1a0] sm:$0xf]  ;;  %v4422_v6 = vld [vmem:[%s5105_s10 + $0x1a4] sm:$0xf]  ;;  %v3465_v8 = vor.u32 %v4429_v0, %v3464_v63 }
  0xb7   : > { %1420 = vmatpush.bf16.msra.mxu3 %v3613_v54  ;;  %v3474_v7 = vld [vmem:[%s5105_s10 + $0x1e4] sm:$0xf0]  ;;  %v3469_v9 = vor.u32 %v4421_v1, %v3466_v3  ;;  %v3473_v10 = vor.u32 %v4430_v5, %v3472_v4  ;;  %v3396_v11 = vld [vmem:[%s5105_s10 + $0x110] sm:$0xf]  ;;  %v4412_v12 = vld [vmem:[%s5105_s10 + $0x150] sm:$0xf0] }
  0xb8   : > { %v4404_v13 = vld [vmem:[%s5105_s10 + $0x114] sm:$0xf]  ;;  %v3477_v14 = vor.u32 %v4422_v6, %v3474_v7  ;;  %v3398_v15 = vld [vmem:[%s5105_s10 + $0x154] sm:$0xf0]  ;;  %v4413_v17 = vld [vmem:[%s5105_s10 + $0x158] sm:$0xf0]  ;;  %v3397_v20 = vor.u32 %v4412_v12, %v3396_v11 }
  0xb9   : > { %1382 = vmatpush.bf16.msra.mxu0 %v3533_v60  ;;  %v3404_v16 = vld [vmem:[%s5105_s10 + $0x118] sm:$0xf]  ;;  %v4405_v18 = vld [vmem:[%s5105_s10 + $0x11c] sm:$0xf]  ;;  %v3406_v19 = vld [vmem:[%s5105_s10 + $0x15c] sm:$0xf0]  ;;  %v3401_v21 = vor.u32 %v4404_v13, %v3398_v15 }
  0xba   : > { %1395 = vmatpush.bf16.msra.mxu1 %v3537_v61  ;;  %1408 = vmatpush.bf16.msra.mxu2 %v3541_v62  ;;  %v3405_v22 = vor.u32 %v4413_v17, %v3404_v16  ;;  %v3328_v23 = vld [vmem:[%s5105_s10 + $0x88] sm:$0xf]  ;;  %v4395_v24 = vld [vmem:[%s5105_s10 + $0xc8] sm:$0xf0]  ;;  %v3409_v26 = vor.u32 %v4405_v18, %v3406_v19  ;;  %v3330_v27 = vld [vmem:[%s5105_s10 + $0xcc] sm:$0xf0] }
  0xbb   : > { %1421 = vmatpush.bf16.msra.mxu3 %v3545_v2  ;;  %v4387_v25 = vld [vmem:[%s5105_s10 + $0x8c] sm:$0xf]  ;;  %v3336_v28 = vld [vmem:[%s5105_s10 + $0x90] sm:$0xf]  ;;  %v4396_v29 = vld [vmem:[%s5105_s10 + $0xd0] sm:$0xf0]  ;;  %v3329_v32 = vor.u32 %v4395_v24, %v3328_v23 }
  0xbc   : > { %v4388_v30 = vld [vmem:[%s5105_s10 + $0x94] sm:$0xf]  ;;  %v3338_v31 = vld [vmem:[%s5105_s10 + $0xd4] sm:$0xf0]  ;;  %v3260_v33 = vld [vmem:[%s5105_s10] sm:$0xf]  ;;  %v3333_v35 = vor.u32 %v4387_v25, %v3330_v27  ;;  %v3337_v36 = vor.u32 %v4396_v29, %v3336_v28 }
  0xbd   : > { %1383 = vmatpush.bf16.msra.mxu0 %v3465_v8  ;;  %v4378_v34 = vld [vmem:[%s5105_s10 + $0x40] sm:$0xf0]  ;;  %v3262_v38 = vld [vmem:[%s5105_s10 + $0x44] sm:$0xf0]  ;;  %v3341_v40 = vor.u32 %v4388_v30, %v3338_v31  ;;  %v4379_v41 = vld [vmem:[%s5105_s10 + $0x48] sm:$0xf0] }
  0xbe   : > { %1396 = vmatpush.bf16.msra.mxu1 %v3469_v9  ;;  %1409 = vmatpush.bf16.msra.mxu2 %v3473_v10  ;;  %v4370_v37 = vld [vmem:[%s5105_s10 + $0x4] sm:$0xf]  ;;  %v3268_v39 = vld [vmem:[%s5105_s10 + $0x8] sm:$0xf]  ;;  %v4371_v42 = vld [vmem:[%s5105_s10 + $0xc] sm:$0xf]  ;;  %v3261_v47 = vor.u32 %v4378_v34, %v3260_v33 }
  0xbf   : > { %1422 = vmatpush.bf16.msra.mxu3 %v3477_v14  ;;  %v3270_v43 = vld [vmem:[%s5105_s10 + $0x4c] sm:$0xf0]  ;;  %v3752_v44 = vld [vmem:[%s5105_s10 + $0x3c8] sm:$0xf]  ;;  %v4499_v45 = vld [vmem:[%s5105_s10 + $0x408] sm:$0xf0]  ;;  %v3265_v51 = vor.u32 %v4370_v37, %v3262_v38  ;;  %v3269_v52 = vor.u32 %v4379_v41, %v3268_v39 }
  0xc0   : > { %v4491_v46 = vld [vmem:[%s5105_s10 + $0x3cc] sm:$0xf]  ;;  %v3754_v48 = vld [vmem:[%s5105_s10 + $0x40c] sm:$0xf0]  ;;  %v4500_v50 = vld [vmem:[%s5105_s10 + $0x410] sm:$0xf0]  ;;  %v3273_v55 = vor.u32 %v4371_v42, %v3270_v43  ;;  %v3753_v56 = vor.u32 %v4499_v45, %v3752_v44 }
  0xc1   : > { %1384 = vmatpush.bf16.msra.mxu0 %v3397_v20  ;;  %v3760_v49 = vld [vmem:[%s5105_s10 + $0x3d0] sm:$0xf]  ;;  %v4492_v53 = vld [vmem:[%s5105_s10 + $0x3d4] sm:$0xf]  ;;  %v3762_v54 = vld [vmem:[%s5105_s10 + $0x414] sm:$0xf0]  ;;  %v3757_v57 = vor.u32 %v4491_v46, %v3754_v48 }
  0xc2   : > { %1397 = vmatpush.bf16.msra.mxu1 %v3401_v21  ;;  %1410 = vmatpush.bf16.msra.mxu2 %v3405_v22  ;;  %v3761_v58 = vor.u32 %v4500_v50, %v3760_v49  ;;  %v3684_v59 = vld [vmem:[%s5105_s10 + $0x340] sm:$0xf]  ;;  %v4482_v60 = vld [vmem:[%s5105_s10 + $0x380] sm:$0xf0]  ;;  %v3765_v62 = vor.u32 %v4492_v53, %v3762_v54  ;;  %v3686_v63 = vld [vmem:[%s5105_s10 + $0x384] sm:$0xf0] }
  0xc3   : > { %1423 = vmatpush.bf16.msra.mxu3 %v3409_v26  ;;  %v4474_v61 = vld [vmem:[%s5105_s10 + $0x344] sm:$0xf]  ;;  %v3692_v0 = vld [vmem:[%s5105_s10 + $0x348] sm:$0xf]  ;;  %v4483_v1 = vld [vmem:[%s5105_s10 + $0x388] sm:$0xf0]  ;;  %v3685_v5 = vor.u32 %v4482_v60, %v3684_v59 }
  0xc4   : > { %v5188_v2 = vld [vmem:[%s5957_s1] sm:$0xf]  ;;  %v4475_v3 = vld [vmem:[%s5105_s10 + $0x34c] sm:$0xf]  ;;  %v3694_v4 = vld [vmem:[%s5105_s10 + $0x38c] sm:$0xf0]  ;;  %v3689_v7 = vor.u32 %v4474_v61, %v3686_v63  ;;  %v3693_v8 = vor.u32 %v4483_v1, %v3692_v0 }
  0xc5   : > { %1385 = vmatpush.bf16.msra.mxu0 %v3329_v32  ;;  %v3616_v6 = vld [vmem:[%s5105_s10 + $0x2b8] sm:$0xf]  ;;  %v4465_v9 = vld [vmem:[%s5105_s10 + $0x2f8] sm:$0xf0]  ;;  %v3697_v11 = vor.u32 %v4475_v3, %v3694_v4  ;;  %v3618_v12 = vld [vmem:[%s5105_s10 + $0x2fc] sm:$0xf0] }
  0xc6   : > { %1398 = vmatpush.bf16.msra.mxu1 %v3333_v35  ;;  %1411 = vmatpush.bf16.msra.mxu2 %v3337_v36  ;;  %v4457_v10 = vld [vmem:[%s5105_s10 + $0x2bc] sm:$0xf]  ;;  %v3624_v13 = vld [vmem:[%s5105_s10 + $0x2c0] sm:$0xf]  ;;  %v4466_v14 = vld [vmem:[%s5105_s10 + $0x300] sm:$0xf0]  ;;  %v3617_v17 = vor.u32 %v4465_v9, %v3616_v6 }
  0xc7   : > { %1424 = vmatpush.bf16.msra.mxu3 %v3341_v40  ;;  %v4458_v15 = vld [vmem:[%s5105_s10 + $0x2c4] sm:$0xf]  ;;  %v3626_v16 = vld [vmem:[%s5105_s10 + $0x304] sm:$0xf0]  ;;  %v4739_v18 = vmov 0   ;;  %v3621_v20 = vor.u32 %v4457_v10, %v3618_v12  ;;  %v3625_v21 = vor.u32 %v4466_v14, %v3624_v13  ;;  %s5966_s21 = smov (!%p536_p8, %s3219_s21), 1 }
  0xc8   : > { %4675 = vset.pattern.permute.xlu0 %v4739_v18  ;;  %v5206_v19 = vld [vmem:[%s5960_s4] sm:$0xff]  ;;  %v3548_v22 = vld [vmem:[%s5105_s10 + $0x230] sm:$0xf]  ;;  %v4448_v23 = vld [vmem:[%s5105_s10 + $0x270] sm:$0xf0]  ;;  %v3629_v25 = vor.u32 %v4458_v15, %v3626_v16  ;;  %s3257_s8 = sshll.u32 %s5966_s21, 1 }
  0xc9   : > { %1386 = vmatpush.bf16.msra.mxu0 %v3261_v47  ;;  %v4440_v24 = vld [vmem:[%s5105_s10 + $0x234] sm:$0xf]  ;;  %v3550_v26 = vld [vmem:[%s5105_s10 + $0x274] sm:$0xf0]  ;;  %v4449_v28 = vld [vmem:[%s5105_s10 + $0x278] sm:$0xf0]  ;;  %688 = vperm.xlu0 %4675, %v5206_v19   ;;  %v3549_v31 = vor.u32 %v4448_v23, %v3548_v22  ;;  %s539_s12 = scalar_lea.vmem %s5961_s5, %s3257_s8 }
  0xca   : > { %1399 = vmatpush.bf16.msra.mxu1 %v3265_v51  ;;  %1412 = vmatpush.bf16.msra.mxu2 %v3269_v52  ;;  %v3556_v27 = vld [vmem:[%s5105_s10 + $0x238] sm:$0xf]  ;;  %v4441_v29 = vld [vmem:[%s5105_s10 + $0x23c] sm:$0xf]  ;;  %v3558_v30 = vld [vmem:[%s5105_s10 + $0x27c] sm:$0xf0]  ;;  %v3553_v32 = vor.u32 %v4440_v24, %v3550_v26 }
  0xcb   : > { %1425 = vmatpush.bf16.msra.mxu3 %v3273_v55  ;;  %v3557_v33 = vor.u32 %v4449_v28, %v3556_v27  ;;  %v3480_v34 = vld [vmem:[%s5105_s10 + $0x1a8] sm:$0xf]  ;;  %v4431_v35 = vld [vmem:[%s5105_s10 + $0x1e8] sm:$0xf0]  ;;  %v3561_v37 = vor.u32 %v4441_v29, %v3558_v30  ;;  %v3482_v38 = vld [vmem:[%s5105_s10 + $0x1ec] sm:$0xf0] }
  0xcc   : > { %1387 = vmatmul.bf16.vlgmr.msra.gmra.mxu0 %v5188_v2  ;;  %v4423_v36 = vld [vmem:[%s5105_s10 + $0x1ac] sm:$0xf]  ;;  %v3488_v39 = vld [vmem:[%s5105_s10 + $0x1b0] sm:$0xf]  ;;  %v4432_v40 = vld [vmem:[%s5105_s10 + $0x1f0] sm:$0xf0]  ;;  %v3481_v43 = vor.u32 %v4431_v35, %v3480_v34 }
  0xcd   : > { %1431 = vmatpush.bf16.msrb.mxu0 %v3753_v56  ;;  %1413 = vmatmul.bf16.vlgmr.msra.gmra.mxu2 %v5188_v2  ;;  %v4424_v41 = vld [vmem:[%s5105_s10 + $0x1b4] sm:$0xf]  ;;  %v3490_v42 = vld [vmem:[%s5105_s10 + $0x1f4] sm:$0xf0]  ;;  %v3485_v44 = vor.u32 %v4423_v36, %v3482_v38  ;;  %v3489_v45 = vor.u32 %v4432_v40, %v3488_v39  ;;  %v3412_v46 = vld [vmem:[%s5105_s10 + $0x120] sm:$0xf] }
  0xce   : > { %1444 = vmatpush.bf16.msrb.mxu1 %v3757_v57  ;;  %1457 = vmatpush.bf16.msrb.mxu2 %v3761_v58  ;;  %v4414_v47 = vld [vmem:[%s5105_s10 + $0x160] sm:$0xf0]  ;;  %v3493_v49 = vor.u32 %v4424_v41, %v3490_v42  ;;  %v3414_v50 = vld [vmem:[%s5105_s10 + $0x164] sm:$0xf0]  ;;  %v4415_v52 = vld [vmem:[%s5105_s10 + $0x168] sm:$0xf0] }
  0xcf   : > { %1470 = vmatpush.bf16.msrb.mxu3 %v3765_v62  ;;  %1400 = vmatmul.bf16.vlgmr.msra.gmra.mxu1 %v5188_v2  ;;  %v4406_v48 = vld [vmem:[%s5105_s10 + $0x124] sm:$0xf]  ;;  %v3420_v51 = vld [vmem:[%s5105_s10 + $0x128] sm:$0xf]  ;;  %v4407_v53 = vld [vmem:[%s5105_s10 + $0x12c] sm:$0xf]  ;;  %v3413_v55 = vor.u32 %v4414_v47, %v3412_v46 }
  0xd0   : > { %1426 = vmatmul.bf16.vlgmr.msra.gmra.mxu3 %v5188_v2  ;;  %v3422_v54 = vld [vmem:[%s5105_s10 + $0x16c] sm:$0xf0]  ;;  %v3417_v56 = vor.u32 %v4406_v48, %v3414_v50  ;;  %v3421_v57 = vor.u32 %v4415_v52, %v3420_v51  ;;  %v3344_v58 = vld [vmem:[%s5105_s10 + $0x98] sm:$0xf]  ;;  %v4397_v59 = vld [vmem:[%s5105_s10 + $0xd8] sm:$0xf0] }
  0xd1   : > { %1432 = vmatpush.bf16.msrb.mxu0 %v3685_v5  ;;  %v4389_v60 = vld [vmem:[%s5105_s10 + $0x9c] sm:$0xf]  ;;  %v3425_v61 = vor.u32 %v4407_v53, %v3422_v54  ;;  %v3346_v62 = vld [vmem:[%s5105_s10 + $0xdc] sm:$0xf0]  ;;  %v4398_v0 = vld [vmem:[%s5105_s10 + $0xe0] sm:$0xf0]  ;;  %v3345_v4 = vor.u32 %v4397_v59, %v3344_v58  ;;  %3066 = vrot.lane.b32.xlu0 %v5206_v19, %s4740_s15 }
  0xd2   : > { %1445 = vmatpush.bf16.msrb.mxu1 %v3689_v7  ;;  %1458 = vmatpush.bf16.msrb.mxu2 %v3693_v8  ;;  %v3352_v63 = vld [vmem:[%s5105_s10 + $0xa0] sm:$0xf]  ;;  %v4390_v1 = vld [vmem:[%s5105_s10 + $0xa4] sm:$0xf]  ;;  %v3354_v3 = vld [vmem:[%s5105_s10 + $0xe4] sm:$0xf0]  ;;  %v3349_v7 = vor.u32 %v4389_v60, %v3346_v62 }
  0xd3   : > { %1471 = vmatpush.bf16.msrb.mxu3 %v3697_v11  ;;  %v3276_v5 = vld [vmem:[%s5105_s10 + $0x10] sm:$0xf]  ;;  %v4380_v6 = vld [vmem:[%s5105_s10 + $0x50] sm:$0xf0]  ;;  %v3353_v8 = vor.u32 %v4398_v0, %v3352_v63  ;;  %v3278_v10 = vld [vmem:[%s5105_s10 + $0x54] sm:$0xf0]  ;;  %v3357_v12 = vor.u32 %v4390_v1, %v3354_v3 }
  0xd4   : > { %v4372_v9 = vld [vmem:[%s5105_s10 + $0x14] sm:$0xf]  ;;  %v3284_v11 = vld [vmem:[%s5105_s10 + $0x18] sm:$0xf]  ;;  %v4381_v13 = vld [vmem:[%s5105_s10 + $0x58] sm:$0xf0] }
  0xd5   : > { %1433 = vmatpush.bf16.msrb.mxu0 %v3617_v17  ;;  %v4373_v14 = vld [vmem:[%s5105_s10 + $0x1c] sm:$0xf]  ;;  %v3286_v15 = vld [vmem:[%s5105_s10 + $0x5c] sm:$0xf0]  ;;  %v3768_v16 = vld [vmem:[%s5105_s10 + $0x3d8] sm:$0xf]  ;;  %v3281_v24 = vor.u32 %v4372_v9, %v3278_v10 }
  0xd6   : > { %1446 = vmatpush.bf16.msrb.mxu1 %v3621_v20  ;;  %1459 = vmatpush.bf16.msrb.mxu2 %v3625_v21  ;;  %v4501_v17 = vld [vmem:[%s5105_s10 + $0x418] sm:$0xf0]  ;;  %v3277_v20 = vor.u32 %v4380_v6, %v3276_v5  ;;  %v3770_v21 = vld [vmem:[%s5105_s10 + $0x41c] sm:$0xf0]  ;;  %v4502_v23 = vld [vmem:[%s5105_s10 + $0x420] sm:$0xf0]  ;;  %v3289_v28 = vor.u32 %v4373_v14, %v3286_v15 }
  0xd7   : > { %1472 = vmatpush.bf16.msrb.mxu3 %v3629_v25  ;;  %v4493_v18 = vld [vmem:[%s5105_s10 + $0x3dc] sm:$0xf]  ;;  %v3776_v22 = vld [vmem:[%s5105_s10 + $0x3e0] sm:$0xf]  ;;  %v3285_v25 = vor.u32 %v4381_v13, %v3284_v11  ;;  %v4494_v26 = vld [vmem:[%s5105_s10 + $0x3e4] sm:$0xf]  ;;  %v3769_v29 = vor.u32 %v4501_v17, %v3768_v16 }
  0xd8   : > { %v3778_v27 = vld [vmem:[%s5105_s10 + $0x424] sm:$0xf0]  ;;  %v3773_v30 = vor.u32 %v4493_v18, %v3770_v21  ;;  %v4476_v34 = vld [vmem:[%s5105_s10 + $0x354] sm:$0xf]  ;;  %v3702_v36 = vld [vmem:[%s5105_s10 + $0x394] sm:$0xf0] }
  0xd9   : > { %1434 = vmatpush.bf16.msrb.mxu0 %v3549_v31  ;;  %v3777_v31 = vor.u32 %v4502_v23, %v3776_v22  ;;  %v3781_v35 = vor.u32 %v4494_v26, %v3778_v27  ;;  %v4485_v38 = vld [vmem:[%s5105_s10 + $0x398] sm:$0xf0]  ;;  %v3710_v40 = vld [vmem:[%s5105_s10 + $0x39c] sm:$0xf0]  ;;  %v3705_v42 = vor.u32 %v4476_v34, %v3702_v36  ;;  %v4459_v46 = vld [vmem:[%s5105_s10 + $0x2cc] sm:$0xf] }
  0xda   : > { %1447 = vmatpush.bf16.msrb.mxu1 %v3553_v32  ;;  %1460 = vmatpush.bf16.msrb.mxu2 %v3557_v33  ;;  %v3700_v32 = vld [vmem:[%s5105_s10 + $0x350] sm:$0xf]  ;;  %v4484_v33 = vld [vmem:[%s5105_s10 + $0x390] sm:$0xf0]  ;;  %v4477_v39 = vld [vmem:[%s5105_s10 + $0x35c] sm:$0xf] }
  0xdb   : > { %1473 = vmatpush.bf16.msrb.mxu3 %v3561_v37  ;;  %v3708_v37 = vld [vmem:[%s5105_s10 + $0x358] sm:$0xf]  ;;  %v3701_v41 = vor.u32 %v4484_v33, %v3700_v32  ;;  %v3713_v47 = vor.u32 %v4477_v39, %v3710_v40  ;;  %v3634_v48 = vld [vmem:[%s5105_s10 + $0x30c] sm:$0xf0]  ;;  %v4468_v50 = vld [vmem:[%s5105_s10 + $0x310] sm:$0xf0] }
  0xdc   : > { %v4460_v51 = vld [vmem:[%s5105_s10 + $0x2d4] sm:$0xf]  ;;  %v3642_v52 = vld [vmem:[%s5105_s10 + $0x314] sm:$0xf0]  ;;  %v3637_v54 = vor.u32 %v4459_v46, %v3634_v48  ;;  %v4442_v58 = vld [vmem:[%s5105_s10 + $0x244] sm:$0xf] }
  0xdd   : > { %1435 = vmatpush.bf16.msrb.mxu0 %v3481_v43  ;;  %v3709_v43 = vor.u32 %v4485_v38, %v3708_v37  ;;  %v3645_v59 = vor.u32 %v4460_v51, %v3642_v52  ;;  %v3566_v60 = vld [vmem:[%s5105_s10 + $0x284] sm:$0xf0]  ;;  %v4451_v62 = vld [vmem:[%s5105_s10 + $0x288] sm:$0xf0]  ;;  %v3574_v0 = vld [vmem:[%s5105_s10 + $0x28c] sm:$0xf0] }
  0xde   : > { %1448 = vmatpush.bf16.msrb.mxu1 %v3485_v44  ;;  %1461 = vmatpush.bf16.msrb.mxu2 %v3489_v45  ;;  %v3632_v44 = vld [vmem:[%s5105_s10 + $0x2c8] sm:$0xf]  ;;  %v4467_v45 = vld [vmem:[%s5105_s10 + $0x308] sm:$0xf0]  ;;  %v3569_v3 = vor.u32 %v4442_v58, %v3566_v60  ;;  %v3496_v5 = vld [vmem:[%s5105_s10 + $0x1b8] sm:$0xf] }
  0xdf   : > { %1474 = vmatpush.bf16.msrb.mxu3 %v3493_v49  ;;  %v3640_v49 = vld [vmem:[%s5105_s10 + $0x2d0] sm:$0xf]  ;;  %v3633_v53 = vor.u32 %v4467_v45, %v3632_v44  ;;  %v4443_v63 = vld [vmem:[%s5105_s10 + $0x24c] sm:$0xf]  ;;  %v4433_v6 = vld [vmem:[%s5105_s10 + $0x1f8] sm:$0xf0] }
  0xe0   : > { %v3498_v9 = vld [vmem:[%s5105_s10 + $0x1fc] sm:$0xf0]  ;;  %v4434_v11 = vld [vmem:[%s5105_s10 + $0x200] sm:$0xf0]  ;;  %v3506_v13 = vld [vmem:[%s5105_s10 + $0x204] sm:$0xf0]  ;;  %v3497_v14 = vor.u32 %v4433_v6, %v3496_v5 }
  0xe1   : > { %1436 = vmatpush.bf16.msrb.mxu0 %v3413_v55  ;;  %v3641_v55 = vor.u32 %v4468_v50, %v3640_v49  ;;  %v3504_v10 = vld [vmem:[%s5105_s10 + $0x1c0] sm:$0xf]  ;;  %v3428_v17 = vld [vmem:[%s5105_s10 + $0x130] sm:$0xf]  ;;  %v4416_v18 = vld [vmem:[%s5105_s10 + $0x170] sm:$0xf0] }
  0xe2   : > { %1449 = vmatpush.bf16.msrb.mxu1 %v3417_v56  ;;  %1462 = vmatpush.bf16.msrb.mxu2 %v3421_v57  ;;  %v3564_v56 = vld [vmem:[%s5105_s10 + $0x240] sm:$0xf]  ;;  %v4450_v57 = vld [vmem:[%s5105_s10 + $0x280] sm:$0xf0]  ;;  %v3505_v16 = vor.u32 %v4434_v11, %v3504_v10  ;;  %v3430_v22 = vld [vmem:[%s5105_s10 + $0x174] sm:$0xf0]  ;;  %v3429_v27 = vor.u32 %v4416_v18, %v3428_v17 }
  0xe3   : > { %1475 = vmatpush.bf16.msrb.mxu3 %v3425_v61  ;;  %v3572_v61 = vld [vmem:[%s5105_s10 + $0x248] sm:$0xf]  ;;  %v3565_v1 = vor.u32 %v4450_v57, %v3564_v56  ;;  %v3436_v23 = vld [vmem:[%s5105_s10 + $0x138] sm:$0xf]  ;;  %v3438_v26 = vld [vmem:[%s5105_s10 + $0x17c] sm:$0xf0] }
  0xe4   : > { %v4391_v32 = vld [vmem:[%s5105_s10 + $0xac] sm:$0xf]  ;;  %v3362_v34 = vld [vmem:[%s5105_s10 + $0xec] sm:$0xf0]  ;;  %v4400_v36 = vld [vmem:[%s5105_s10 + $0xf0] sm:$0xf0] }
  0xe5   : > { %1437 = vmatpush.bf16.msrb.mxu0 %v3345_v4  ;;  %v3573_v4 = vor.u32 %v4451_v62, %v3572_v61  ;;  %v4392_v37 = vld [vmem:[%s5105_s10 + $0xb4] sm:$0xf]  ;;  %v3370_v38 = vld [vmem:[%s5105_s10 + $0xf4] sm:$0xf0]  ;;  %v3292_v40 = vld [vmem:[%s5105_s10 + $0x20] sm:$0xf] }
  0xe6   : > { %1450 = vmatpush.bf16.msrb.mxu1 %v3349_v7  ;;  %1463 = vmatpush.bf16.msrb.mxu2 %v3353_v8  ;;  %v4425_v7 = vld [vmem:[%s5105_s10 + $0x1bc] sm:$0xf]  ;;  %v3577_v8 = vor.u32 %v4443_v63, %v3574_v0  ;;  %v4374_v44 = vld [vmem:[%s5105_s10 + $0x24] sm:$0xf]  ;;  %v3294_v45 = vld [vmem:[%s5105_s10 + $0x64] sm:$0xf0] }
  0xe7   : > { %1476 = vmatpush.bf16.msrb.mxu3 %v3357_v12  ;;  %v4426_v12 = vld [vmem:[%s5105_s10 + $0x1c4] sm:$0xf]  ;;  %v3501_v15 = vor.u32 %v4425_v7, %v3498_v9  ;;  %v3300_v46 = vld [vmem:[%s5105_s10 + $0x28] sm:$0xf]  ;;  %v4383_v48 = vld [vmem:[%s5105_s10 + $0x68] sm:$0xf0]  ;;  %v3297_v58 = vor.u32 %v4374_v44, %v3294_v45 }
  0xe8   : > { %v3509_v21 = vor.u32 %v4426_v12, %v3506_v13  ;;  %v4375_v49 = vld [vmem:[%s5105_s10 + $0x2c] sm:$0xf]  ;;  %v3302_v50 = vld [vmem:[%s5105_s10 + $0x6c] sm:$0xf0]  ;;  %v3784_v51 = vld [vmem:[%s5105_s10 + $0x3e8] sm:$0xf] }
  0xe9   : > { %1438 = vmatpush.bf16.msrb.mxu0 %v3277_v20  ;;  %v4408_v20 = vld [vmem:[%s5105_s10 + $0x134] sm:$0xf]  ;;  %v4503_v52 = vld [vmem:[%s5105_s10 + $0x428] sm:$0xf0]  ;;  %v3792_v56 = vld [vmem:[%s5105_s10 + $0x3f0] sm:$0xf]  ;;  %v3305_v62 = vor.u32 %v4375_v49, %v3302_v50 }
  0xea   : > { %1451 = vmatpush.bf16.msrb.mxu1 %v3281_v24  ;;  %1464 = vmatpush.bf16.msrb.mxu2 %v3285_v25  ;;  %v4417_v24 = vld [vmem:[%s5105_s10 + $0x178] sm:$0xf0]  ;;  %v4504_v57 = vld [vmem:[%s5105_s10 + $0x430] sm:$0xf0]  ;;  %v3794_v61 = vld [vmem:[%s5105_s10 + $0x434] sm:$0xf0]  ;;  %v3785_v63 = vor.u32 %v4503_v52, %v3784_v51 }
  0xeb   : > { %1477 = vmatpush.bf16.msrb.mxu3 %v3289_v28  ;;  %v4409_v25 = vld [vmem:[%s5105_s10 + $0x13c] sm:$0xf]  ;;  %v3433_v28 = vor.u32 %v4408_v20, %v3430_v22  ;;  %v4496_v60 = vld [vmem:[%s5105_s10 + $0x3f4] sm:$0xf]  ;;  %v4478_v5 = vld [vmem:[%s5105_s10 + $0x364] sm:$0xf] }
  0xec   : > { %1439 = vmatmul.bf16.vlgmr.msrb.gmra.mxu0 %v5188_v2  ;;  %v3441_v33 = vor.u32 %v4409_v25, %v3438_v26  ;;  %v3797_v6 = vor.u32 %v4496_v60, %v3794_v61  ;;  %v3718_v7 = vld [vmem:[%s5105_s10 + $0x3a4] sm:$0xf0]  ;;  %v4487_v9 = vld [vmem:[%s5105_s10 + $0x3a8] sm:$0xf0]  ;;  %v3726_v11 = vld [vmem:[%s5105_s10 + $0x3ac] sm:$0xf0] }
  0xed   : > { %1483 = vmatpush.bf16.msra.mxu0 %v3769_v29  ;;  %1452 = vmatmul.bf16.vlgmr.msrb.gmra.mxu1 %v5188_v2  ;;  %v3437_v29 = vor.u32 %v4417_v24, %v3436_v23  ;;  %v4479_v10 = vld [vmem:[%s5105_s10 + $0x36c] sm:$0xf]  ;;  %v3721_v13 = vor.u32 %v4478_v5, %v3718_v7  ;;  %v4461_v17 = vld [vmem:[%s5105_s10 + $0x2dc] sm:$0xf]  ;;  %v3650_v20 = vld [vmem:[%s5105_s10 + $0x31c] sm:$0xf0] }
  0xee   : > { %1496 = vmatpush.bf16.msra.mxu1 %v3773_v30  ;;  %1509 = vmatpush.bf16.msra.mxu2 %v3777_v31  ;;  %v3360_v30 = vld [vmem:[%s5105_s10 + $0xa8] sm:$0xf]  ;;  %v4399_v31 = vld [vmem:[%s5105_s10 + $0xe8] sm:$0xf0]  ;;  %v3729_v18 = vor.u32 %v4479_v10, %v3726_v11  ;;  %v4470_v22 = vld [vmem:[%s5105_s10 + $0x320] sm:$0xf0]  ;;  %v3653_v26 = vor.u32 %v4461_v17, %v3650_v20 }
  0xef   : > { %1522 = vmatpush.bf16.msra.mxu3 %v3781_v35  ;;  %1465 = vmatmul.bf16.vlgmr.msrb.gmra.mxu2 %v5188_v2  ;;  %v3368_v35 = vld [vmem:[%s5105_s10 + $0xb0] sm:$0xf]  ;;  %v3361_v39 = vor.u32 %v4399_v31, %v3360_v30  ;;  %v4462_v23 = vld [vmem:[%s5105_s10 + $0x2e4] sm:$0xf]  ;;  %v3658_v24 = vld [vmem:[%s5105_s10 + $0x324] sm:$0xf0] }
  0xf0   : > { %1478 = vmatmul.bf16.vlgmr.msrb.gmra.mxu3 %v5188_v2  ;;  %v4444_v30 = vld [vmem:[%s5105_s10 + $0x254] sm:$0xf]  ;;  %v3661_v31 = vor.u32 %v4462_v23, %v3658_v24  ;;  %v3514_v44 = vld [vmem:[%s5105_s10 + $0x20c] sm:$0xf0]  ;;  %v3444_v52 = vld [vmem:[%s5105_s10 + $0x140] sm:$0xf] }
  0xf1   : > { %1484 = vmatpush.bf16.msra.mxu0 %v3701_v41  ;;  %v4382_v41 = vld [vmem:[%s5105_s10 + $0x60] sm:$0xf0]  ;;  %v3520_v45 = vld [vmem:[%s5105_s10 + $0x1d0] sm:$0xf]  ;;  %v3378_v5 = vld [vmem:[%s5105_s10 + $0xfc] sm:$0xf0] }
  0xf2   : > { %1497 = vmatpush.bf16.msra.mxu1 %v3705_v42  ;;  %1510 = vmatpush.bf16.msra.mxu2 %v3709_v43  ;;  %v3365_v42 = vor.u32 %v4391_v32, %v3362_v34  ;;  %v3369_v43 = vor.u32 %v4400_v36, %v3368_v35  ;;  %v3582_v32 = vld [vmem:[%s5105_s10 + $0x294] sm:$0xf0]  ;;  %v4453_v34 = vld [vmem:[%s5105_s10 + $0x298] sm:$0xf0]  ;;  %v3590_v36 = vld [vmem:[%s5105_s10 + $0x29c] sm:$0xf0] }
  0xf3   : > { %1523 = vmatpush.bf16.msra.mxu3 %v3713_v47  ;;  %v3373_v47 = vor.u32 %v4392_v37, %v3370_v38  ;;  %v4445_v35 = vld [vmem:[%s5105_s10 + $0x25c] sm:$0xf]  ;;  %v3585_v38 = vor.u32 %v4444_v30, %v3582_v32  ;;  %v3454_v60 = vld [vmem:[%s5105_s10 + $0x18c] sm:$0xf0]  ;;  %v4402_v7 = vld [vmem:[%s5105_s10 + $0x100] sm:$0xf0] }
  0xf4   : > { %v3308_v11 = vld [vmem:[%s5105_s10 + $0x30] sm:$0xf]  ;;  %v4385_v20 = vld [vmem:[%s5105_s10 + $0x78] sm:$0xf0]  ;;  %v3800_v23 = vld [vmem:[%s5105_s10 + $0x3f8] sm:$0xf] }
  0xf5   : > { %1485 = vmatpush.bf16.msra.mxu0 %v3633_v53  ;;  %v4495_v53 = vld [vmem:[%s5105_s10 + $0x3ec] sm:$0xf]  ;;  %v4505_v24 = vld [vmem:[%s5105_s10 + $0x438] sm:$0xf0]  ;;  %v3732_v30 = vld [vmem:[%s5105_s10 + $0x370] sm:$0xf] }
  0xf6   : > { %1498 = vmatpush.bf16.msra.mxu1 %v3637_v54  ;;  %1511 = vmatpush.bf16.msra.mxu2 %v3641_v55  ;;  %v3293_v54 = vor.u32 %v4382_v41, %v3292_v40  ;;  %v3786_v55 = vld [vmem:[%s5105_s10 + $0x42c] sm:$0xf0]  ;;  %v3512_v40 = vld [vmem:[%s5105_s10 + $0x1c8] sm:$0xf]  ;;  %v4435_v41 = vld [vmem:[%s5105_s10 + $0x208] sm:$0xf0] }
  0xf7   : > { %1524 = vmatpush.bf16.msra.mxu3 %v3645_v59  ;;  %v3301_v59 = vor.u32 %v4383_v48, %v3300_v46  ;;  %v3789_v0 = vor.u32 %v4495_v53, %v3786_v55  ;;  %v4436_v46 = vld [vmem:[%s5105_s10 + $0x210] sm:$0xf0]  ;;  %v3522_v48 = vld [vmem:[%s5105_s10 + $0x214] sm:$0xf0]  ;;  %v3513_v49 = vor.u32 %v4435_v41, %v3512_v40  ;;  %v4418_v53 = vld [vmem:[%s5105_s10 + $0x180] sm:$0xf0] }
  0xf8   : > { %v3521_v51 = vor.u32 %v4436_v46, %v3520_v45  ;;  %v3445_v61 = vor.u32 %v4418_v53, %v3444_v52  ;;  %v4513_v32 = vld [vmem:[%s5959_s3 + $0x38] sm:$0xff]  ;;  %v4528_v41 = vld [vmem:[%s5959_s3 + $0xb0] sm:$0xff]  ;;  %v4519_v45 = vld [vmem:[%s5959_s3 + $0x68] sm:$0xff] }
  0xf9   : > { %1486 = vmatpush.bf16.msra.mxu0 %v3565_v1  ;;  %v3793_v1 = vor.u32 %v4504_v57, %v3792_v56  ;;  %v3446_v56 = vld [vmem:[%s5105_s10 + $0x184] sm:$0xf0]  ;;  %v3460_v53 = vld [vmem:[%s5105_s10 + $0x150] sm:$0xf] }
  0xfa   : > { %1499 = vmatpush.bf16.msra.mxu1 %v3569_v3  ;;  %1512 = vmatpush.bf16.msra.mxu2 %v3573_v4  ;;  %v3716_v3 = vld [vmem:[%s5105_s10 + $0x360] sm:$0xf]  ;;  %v4486_v4 = vld [vmem:[%s5105_s10 + $0x3a0] sm:$0xf0]  ;;  %v3452_v57 = vld [vmem:[%s5105_s10 + $0x148] sm:$0xf] }
  0xfb   : > { %1525 = vmatpush.bf16.msra.mxu3 %v3577_v8  ;;  %v3724_v8 = vld [vmem:[%s5105_s10 + $0x368] sm:$0xf]  ;;  %v3717_v12 = vor.u32 %v4486_v4, %v3716_v3  ;;  %v4393_v3 = vld [vmem:[%s5105_s10 + $0xbc] sm:$0xf]  ;;  %v4556_v19 = vld [vmem:[%s5959_s3 + $0x190] sm:$0xff] }
  0xfd   : > { %1487 = vmatpush.bf16.msra.mxu0 %v3497_v14  ;;  %v3725_v14 = vor.u32 %v4487_v9, %v3724_v8  ;;  %v4394_v8 = vld [vmem:[%s5105_s10 + $0xc4] sm:$0xf]  ;;  %v3386_v9 = vld [vmem:[%s5105_s10 + $0x104] sm:$0xf0] }
  0xfe   : > { %1500 = vmatpush.bf16.msra.mxu1 %v3501_v15  ;;  %1513 = vmatpush.bf16.msra.mxu2 %v3505_v16  ;;  %v3648_v15 = vld [vmem:[%s5105_s10 + $0x2d8] sm:$0xf]  ;;  %v4469_v16 = vld [vmem:[%s5105_s10 + $0x318] sm:$0xf0]  ;;  %v3389_v17 = vor.u32 %v4394_v8, %v3386_v9  ;;  %v4506_v9 = vld [vmem:[%s5959_s3] sm:$0xff] }
  0xff   : > { %1526 = vmatpush.bf16.msra.mxu3 %v3509_v21  ;;  %v3656_v21 = vld [vmem:[%s5105_s10 + $0x2e0] sm:$0xf]  ;;  %v3649_v25 = vor.u32 %v4469_v16, %v3648_v15  ;;  %v4376_v15 = vld [vmem:[%s5105_s10 + $0x34] sm:$0xf]  ;;  %v3310_v16 = vld [vmem:[%s5105_s10 + $0x74] sm:$0xf0] }
 0x100   : > { %v4537_v8 = vld [vmem:[%s5959_s3 + $0xf8] sm:$0xff] }
 0x101   : > { %1488 = vmatpush.bf16.msra.mxu0 %v3429_v27  ;;  %v3657_v27 = vor.u32 %v4470_v22, %v3656_v21  ;;  %v4377_v21 = vld [vmem:[%s5105_s10 + $0x3c] sm:$0xf]  ;;  %v3318_v22 = vld [vmem:[%s5105_s10 + $0x7c] sm:$0xf0] }
 0x102   : > { %1501 = vmatpush.bf16.msra.mxu1 %v3433_v28  ;;  %1514 = vmatpush.bf16.msra.mxu2 %v3437_v29  ;;  %v3580_v28 = vld [vmem:[%s5105_s10 + $0x250] sm:$0xf]  ;;  %v4452_v29 = vld [vmem:[%s5105_s10 + $0x290] sm:$0xf0] }
 0x103   : > { %1527 = vmatpush.bf16.msra.mxu3 %v3441_v33  ;;  %v3588_v33 = vld [vmem:[%s5105_s10 + $0x258] sm:$0xf]  ;;  %v3581_v37 = vor.u32 %v4452_v29, %v3580_v28  ;;  %v3321_v28 = vor.u32 %v4377_v21, %v3318_v22  ;;  %v3801_v29 = vor.u32 %v4505_v24, %v3800_v23  ;;  %v4551_v22 = vld [vmem:[%s5959_s3 + $0x168] sm:$0xff]  ;;  %v4560_v23 = vld [vmem:[%s5959_s3 + $0x1b0] sm:$0xff] }
 0x104   : > { %v4534_v24 = vld [vmem:[%s5959_s3 + $0xe0] sm:$0xff] }
 0x105   : > { %1489 = vmatpush.bf16.msra.mxu0 %v3361_v39  ;;  %v3589_v39 = vor.u32 %v4453_v34, %v3588_v33  ;;  %v4521_v33 = vld [vmem:[%s5959_s3 + $0x78] sm:$0xff] }
 0x106   : > { %1502 = vmatpush.bf16.msra.mxu1 %v3365_v42  ;;  %1515 = vmatpush.bf16.msra.mxu2 %v3369_v43  ;;  %v4427_v42 = vld [vmem:[%s5105_s10 + $0x1cc] sm:$0xf]  ;;  %v3593_v43 = vor.u32 %v4445_v35, %v3590_v36  ;;  %v4529_v35 = vld [vmem:[%s5959_s3 + $0xb8] sm:$0xff]  ;;  %v3664_v36 = vld [vmem:[%s5105_s10 + $0x2e8] sm:$0xf] }
 0x107   : > { %1528 = vmatpush.bf16.msra.mxu3 %v3373_v47  ;;  %v4428_v47 = vld [vmem:[%s5105_s10 + $0x1d4] sm:$0xf]  ;;  %v3517_v50 = vor.u32 %v4427_v42, %v3514_v44  ;;  %v3596_v42 = vld [vmem:[%s5105_s10 + $0x260] sm:$0xf]  ;;  %v4511_v44 = vld [vmem:[%s5959_s3 + $0x28] sm:$0xff] }
 0x108   : > { %v3525_v55 = vor.u32 %v4428_v47, %v3522_v48  ;;  %v3528_v47 = vld [vmem:[%s5105_s10 + $0x1d8] sm:$0xf]  ;;  %v4437_v48 = vld [vmem:[%s5105_s10 + $0x218] sm:$0xf0] }
 0x109   : > { %1490 = vmatpush.bf16.msra.mxu0 %v3293_v54  ;;  %v4410_v54 = vld [vmem:[%s5105_s10 + $0x144] sm:$0xf]  ;;  %v3529_v52 = vor.u32 %v4437_v48, %v3528_v47  ;;  %v4540_v47 = vld [vmem:[%s5959_s3 + $0x110] sm:$0xff] }
 0x10a   : > { %1503 = vmatpush.bf16.msra.mxu1 %v3297_v58  ;;  %1516 = vmatpush.bf16.msra.mxu2 %v3301_v59  ;;  %v4419_v58 = vld [vmem:[%s5105_s10 + $0x188] sm:$0xf0] }
 0x10b   : > { %1529 = vmatpush.bf16.msra.mxu3 %v3305_v62  ;;  %v4411_v59 = vld [vmem:[%s5105_s10 + $0x14c] sm:$0xf]  ;;  %v3449_v62 = vor.u32 %v4410_v54, %v3446_v56  ;;  %v4420_v54 = vld [vmem:[%s5105_s10 + $0x190] sm:$0xf0]  ;;  %v4517_v56 = vld [vmem:[%s5959_s3 + $0x58] sm:$0xff] }
 0x10c   : > { %1491 = vmatmul.bf16.vlgmr.msra.gmra.mxu0 %v5188_v2  ;;  %v3457_v4 = vor.u32 %v4411_v59, %v3454_v60  ;;  %v3392_v59 = vld [vmem:[%s5105_s10 + $0xc8] sm:$0xf]  ;;  %v4403_v60 = vld [vmem:[%s5105_s10 + $0x108] sm:$0xf0] }
 0x10d   : > { %1535 = vmatpush.bf16.msrb.mxu0 %v3785_v63  ;;  %1504 = vmatmul.bf16.vlgmr.msra.gmra.mxu1 %v5188_v2  ;;  %v3453_v63 = vor.u32 %v4419_v58, %v3452_v57  ;;  %v4526_v57 = vld [vmem:[%s5959_s3 + $0xa0] sm:$0xff]  ;;  %v3461_v58 = vor.u32 %v4420_v54, %v3460_v53  ;;  %v4531_v53 = vld [vmem:[%s5959_s3 + $0xc8] sm:$0xff] }
 0x10e   : > { %1548 = vmatpush.bf16.msrb.mxu1 %v3789_v0  ;;  %1561 = vmatpush.bf16.msrb.mxu2 %v3793_v1  ;;  %v3376_v0 = vld [vmem:[%s5105_s10 + $0xb8] sm:$0xf]  ;;  %v4401_v1 = vld [vmem:[%s5105_s10 + $0xf8] sm:$0xf0] }
 0x10f   : > { %1574 = vmatpush.bf16.msrb.mxu3 %v3797_v6  ;;  %1517 = vmatmul.bf16.vlgmr.msra.gmra.mxu2 %v5188_v2  ;;  %v3384_v6 = vld [vmem:[%s5105_s10 + $0xc0] sm:$0xf]  ;;  %v3377_v10 = vor.u32 %v4401_v1, %v3376_v0  ;;  %v3393_v0 = vor.u32 %v4403_v60, %v3392_v59  ;;  %v1703_v59 = vld [vmem:[%s5958_s2 + $0x8] sm:$0xff] }
 0x110   : > { %1530 = vmatmul.bf16.vlgmr.msra.gmra.mxu3 %v5188_v2  ;;  %v3324_v1 = vld [vmem:[%s5105_s10 + $0x40] sm:$0xf] }
 0x111   : > { %1536 = vmatpush.bf16.msrb.mxu0 %v3717_v12  ;;  %v3381_v12 = vor.u32 %v4393_v3, %v3378_v5  ;;  %v4386_v3 = vld [vmem:[%s5105_s10 + $0x80] sm:$0xf0]  ;;  %v4515_v5 = vld [vmem:[%s5959_s3 + $0x48] sm:$0xff] }
 0x112   : > { %1549 = vmatpush.bf16.msrb.mxu1 %v3721_v13  ;;  %1562 = vmatpush.bf16.msrb.mxu2 %v3725_v14  ;;  %v3385_v13 = vor.u32 %v4402_v7, %v3384_v6  ;;  %v4384_v14 = vld [vmem:[%s5105_s10 + $0x70] sm:$0xf0]  ;;  %v3325_v7 = vor.u32 %v4386_v3, %v3324_v1  ;;  %v4569_v1 = vld [vmem:[%s5959_s3 + $0x1f8] sm:$0xff]  ;;  %v4538_v3 = vld [vmem:[%s5959_s3 + $0x100] sm:$0xff] }
 0x113   : > { %1575 = vmatpush.bf16.msrb.mxu3 %v3729_v18  ;;  %v3316_v18 = vld [vmem:[%s5105_s10 + $0x38] sm:$0xf]  ;;  %v4524_v6 = vld [vmem:[%s5959_s3 + $0x90] sm:$0xff] }
 0x115   : > { %1537 = vmatpush.bf16.msrb.mxu0 %v3649_v25  ;;  %v3309_v25 = vor.u32 %v4384_v14, %v3308_v11  ;;  %v4514_v11 = vld [vmem:[%s5959_s3 + $0x40] sm:$0xff]  ;;  %v4536_v14 = vld [vmem:[%s5959_s3 + $0xf0] sm:$0xff] }
 0x116   : > { %1550 = vmatpush.bf16.msrb.mxu1 %v3653_v26  ;;  %1563 = vmatpush.bf16.msrb.mxu2 %v3657_v27  ;;  %v3313_v26 = vor.u32 %v4376_v15, %v3310_v16  ;;  %v3317_v27 = vor.u32 %v4385_v20, %v3316_v18  ;;  %v4544_v15 = vld [vmem:[%s5959_s3 + $0x130] sm:$0xff]  ;;  %v4522_v16 = vld [vmem:[%s5959_s3 + $0x80] sm:$0xff]  ;;  %v4535_v20 = vld [vmem:[%s5959_s3 + $0xe8] sm:$0xff] }
 0x117   : > { %1576 = vmatpush.bf16.msrb.mxu3 %v3661_v31  ;;  %v4488_v31 = vld [vmem:[%s5105_s10 + $0x3b0] sm:$0xf0] }
 0x118   : > { %v3733_v34 = vor.u32 %v4488_v31, %v3732_v30  ;;  %v4552_v18 = vld [vmem:[%s5959_s3 + $0x170] sm:$0xff] }
 0x119   : > { %1538 = vmatpush.bf16.msrb.mxu0 %v3581_v37  ;;  %v4471_v37 = vld [vmem:[%s5105_s10 + $0x328] sm:$0xf0] }
 0x11a   : > { %1551 = vmatpush.bf16.msrb.mxu1 %v3585_v38  ;;  %1564 = vmatpush.bf16.msrb.mxu2 %v3589_v39  ;;  %v4512_v38 = vld [vmem:[%s5959_s3 + $0x30] sm:$0xff]  ;;  %v3665_v40 = vor.u32 %v4471_v37, %v3664_v36 }
 0x11b   : > { %1577 = vmatpush.bf16.msrb.mxu3 %v3593_v43  ;;  %v4520_v39 = vld [vmem:[%s5959_s3 + $0x70] sm:$0xff]  ;;  %v4454_v43 = vld [vmem:[%s5105_s10 + $0x2a0] sm:$0xf0] }
 0x11c   : > { %v3597_v46 = vor.u32 %v4454_v43, %v3596_v42  ;;  %v4532_v43 = vld [vmem:[%s5959_s3 + $0xd0] sm:$0xff] }
 0x11d   : > { %1539 = vmatpush.bf16.msrb.mxu0 %v3513_v49  ;;  %v4510_v49 = vld [vmem:[%s5959_s3 + $0x20] sm:$0xff] }
 0x11e   : > { %1552 = vmatpush.bf16.msrb.mxu1 %v3517_v50  ;;  %1565 = vmatpush.bf16.msrb.mxu2 %v3521_v51  ;;  %v4518_v50 = vld [vmem:[%s5959_s3 + $0x60] sm:$0xff]  ;;  %v4527_v51 = vld [vmem:[%s5959_s3 + $0xa8] sm:$0xff] }
 0x11f   : > { %1578 = vmatpush.bf16.msrb.mxu3 %v3525_v55  ;;  %v4509_v55 = vld [vmem:[%s5959_s3 + $0x18] sm:$0xff] }
 0x121   : > { %1540 = vmatpush.bf16.msrb.mxu0 %v3445_v61  ;;  %v4508_v61 = vld [vmem:[%s5959_s3 + $0x10] sm:$0xff] }
 0x122   : > { %1553 = vmatpush.bf16.msrb.mxu1 %v3449_v62  ;;  %1566 = vmatpush.bf16.msrb.mxu2 %v3453_v63  ;;  %v4516_v62 = vld [vmem:[%s5959_s3 + $0x50] sm:$0xff]  ;;  %v4525_v63 = vld [vmem:[%s5959_s3 + $0x98] sm:$0xff] }
 0x123   : > { %1579 = vmatpush.bf16.msrb.mxu3 %v3457_v4  ;;  %v4507_v4 = vld [vmem:[%s5959_s3 + $0x8] sm:$0xff] }
 0x125   : > { %1541 = vmatpush.bf16.msrb.mxu0 %v3377_v10  ;;  %v4545_v10 = vld [vmem:[%s5959_s3 + $0x138] sm:$0xff] }
 0x126   : > { %1554 = vmatpush.bf16.msrb.mxu1 %v3381_v12  ;;  %1567 = vmatpush.bf16.msrb.mxu2 %v3385_v13  ;;  %v4523_v12 = vld [vmem:[%s5959_s3 + $0x88] sm:$0xff]  ;;  %v4553_v13 = vld [vmem:[%s5959_s3 + $0x178] sm:$0xff] }
 0x127   : > { %1580 = vmatpush.bf16.msrb.mxu3 %v3389_v17  ;;  %v4561_v17 = vld [vmem:[%s5959_s3 + $0x1b8] sm:$0xff] }
 0x129   : > { %1542 = vmatpush.bf16.msrb.mxu0 %v3309_v25 }
 0x12a   : > { %1555 = vmatpush.bf16.msrb.mxu1 %v3313_v26  ;;  %1568 = vmatpush.bf16.msrb.mxu2 %v3317_v27  ;;  %v4542_v26 = vld [vmem:[%s5959_s3 + $0x120] sm:$0xff] }
 0x12b   : > { %1581 = vmatpush.bf16.msrb.mxu3 %v3321_v28  ;;  %v4550_v28 = vld [vmem:[%s5959_s3 + $0x160] sm:$0xff] }
 0x12c   : > { %1543 = vmatmul.bf16.vlgmr.msrb.gmra.mxu0 %v5188_v2 }
 0x12d   : > { %1587 = vmatpush.bf16.msra.mxu0 %v3801_v29  ;;  %1556 = vmatmul.bf16.vlgmr.msrb.gmra.mxu1 %v5188_v2  ;;  %v4559_v29 = vld [vmem:[%s5959_s3 + $0x1a8] sm:$0xff] }
 0x12e   : > { %2841 = vmatpush.bf16.msra.mxu1 %v4513_v32  ;;  %1569 = vmatmul.bf16.vlgmr.msrb.gmra.mxu2 %v5188_v2  ;;  %v4533_v32 = vld [vmem:[%s5959_s3 + $0xd8] sm:$0xff] }
 0x12f   : > { %1582 = vmatmul.bf16.vlgmr.msrb.gmra.mxu3 %v5188_v2  ;;  %2854 = vmatpush.bf16.msra.mxu2 %v4521_v33 }
 0x130   : > { %2867 = vmatpush.bf16.msra.mxu3 %v4529_v35 }
 0x131   : > { %1588 = vmatpush.bf16.msra.mxu0 %v3733_v34  ;;  %v4541_v34 = vld [vmem:[%s5959_s3 + $0x118] sm:$0xff] }
 0x132   : > { %2842 = vmatpush.bf16.msra.mxu1 %v4512_v38 }
 0x133   : > { %2855 = vmatpush.bf16.msra.mxu2 %v4520_v39 }
 0x134   : > { %2868 = vmatpush.bf16.msra.mxu3 %v4528_v41  ;;  %v4558_v41 = vld [vmem:[%s5959_s3 + $0x1a0] sm:$0xff] }
 0x135   : > { %1589 = vmatpush.bf16.msra.mxu0 %v3665_v40  ;;  %v4549_v40 = vld [vmem:[%s5959_s3 + $0x158] sm:$0xff] }
 0x136   : > { %2843 = vmatpush.bf16.msra.mxu1 %v4511_v44 }
 0x137   : > { %2856 = vmatpush.bf16.msra.mxu2 %v4519_v45 }
 0x138   : > { %2869 = vmatpush.bf16.msra.mxu3 %v4527_v51  ;;  %v4557_v51 = vld [vmem:[%s5959_s3 + $0x198] sm:$0xff] }
 0x139   : > { %1590 = vmatpush.bf16.msra.mxu0 %v3597_v46 }
 0x13a   : > { %2844 = vmatpush.bf16.msra.mxu1 %v4510_v49 }
 0x13b   : > { %2857 = vmatpush.bf16.msra.mxu2 %v4518_v50  ;;  %v5506_v21 = vpop.permute.xlu0 %688  ;;  %v4548_v50 = vld [vmem:[%s5959_s3 + $0x150] sm:$0xff] }
 0x13c   : > { %2870 = vmatpush.bf16.msra.mxu3 %v4526_v57 }
 0x13d   : > { %1591 = vmatpush.bf16.msra.mxu0 %v3529_v52 }
 0x13e   : > { %2845 = vmatpush.bf16.msra.mxu1 %v4509_v55  ;;  %v4539_v55 = vld [vmem:[%s5959_s3 + $0x108] sm:$0xff] }
 0x13f   : > { %2858 = vmatpush.bf16.msra.mxu2 %v4517_v56 }
 0x140   : > { %2871 = vmatpush.bf16.msra.mxu3 %v4525_v63 }
 0x141   : > { %1592 = vmatpush.bf16.msra.mxu0 %v3461_v58 }
 0x142   : > { %2846 = vmatpush.bf16.msra.mxu1 %v4508_v61  ;;  %v4547_v61 = vld [vmem:[%s5959_s3 + $0x148] sm:$0xff] }
 0x143   : > { %2859 = vmatpush.bf16.msra.mxu2 %v4516_v62  ;;  %v4530_v62 = vld [vmem:[%s5959_s3 + $0xc0] sm:$0xff] }
 0x144   : > { %2872 = vmatpush.bf16.msra.mxu3 %v4524_v6  ;;  %v1702_v6 = vld [vmem:[%s5958_s2] sm:$0xff] }
 0x145   : > { %1593 = vmatpush.bf16.msra.mxu0 %v3393_v0 }
 0x146   : > { %2847 = vmatpush.bf16.msra.mxu1 %v4507_v4 }
 0x147   : > { %2860 = vmatpush.bf16.msra.mxu2 %v4515_v5 }
 0x148   : > { %2873 = vmatpush.bf16.msra.mxu3 %v4523_v12 }
 0x149   : > { %1594 = vmatpush.bf16.msra.mxu0 %v3325_v7  ;;  %v1388_v31 = vpop.f32.mrf.mxu0 }
 0x14a   : > { %2848 = vmatpush.bf16.msra.mxu1 %v4506_v9  ;;  %v5531_v33 = vadd.f32 %v1388_v31, %v5506_v21  ;;  %v4555_v9 = vld [vmem:[%s5959_s3 + $0x188] sm:$0xff]  ;;  %v4593_v31 = vld [vmem:[%s5959_s3 + $0x2b8] sm:$0xff] }
 0x14b   : > { %2861 = vmatpush.bf16.msra.mxu2 %v4514_v11 }
 0x14c   : > { %1595 = vmatmul.bf16.vlgmr.msra.gmra.mxu0 %v5188_v2  ;;  %2874 = vmatpush.bf16.msra.mxu3 %v4522_v16  ;;  %v4543_v2 = vld [vmem:[%s5959_s3 + $0x128] sm:$0xff]  ;;  %v1401_v25 = vpop.f32.mrf.mxu1  ;;  %v1617_v37 = vmin.f32 %v5531_v33, 0.0  ;;  %vm1600_vm1 = vcmp.gt.f32.partialorder %v5531_v33, 0.0 }
 0x14d   : > { %2880 = vmatpush.bf16.msrb.mxu0 %v4537_v8  ;;  %v1402_v27 = vadd.f32 %v1401_v25, %v5506_v21  ;;  %v4546_v8 = vld [vmem:[%s5959_s3 + $0x140] sm:$0xff] }
 0x14e   : > { %2893 = vmatpush.bf16.msrb.mxu1 %v4545_v10  ;;  %v1634_v44 = vmul.f32 1.442695, %v1617_v37 }
 0x14f   : > { %2906 = vmatpush.bf16.msrb.mxu2 %v4553_v13  ;;  %v1618_v30 = vmin.f32 %v1402_v27, 0.0  ;;  %vm1601_vm0 = vcmp.gt.f32.partialorder %v1402_v27, 0.0 }
 0x150   : > { %2919 = vmatpush.bf16.msrb.mxu3 %v4561_v17  ;;  %v1414_v36 = vpop.f32.mrf.mxu2 }
 0x151   : > { %2881 = vmatpush.bf16.msrb.mxu0 %v4536_v14  ;;  %v1636_v35 = vmul.f32 1.442695, %v1618_v30  ;;  %v5538_v38 = vadd.f32 %v1414_v36, %v5506_v21  ;;  %v1390_v54 = vpop.f32.mrf.mxu0  ;;  %v1704_v14 = vld [vmem:[%s5958_s2 + $0x10] sm:$0xff]  ;;  %v4567_v30 = vld [vmem:[%s5959_s3 + $0x1e8] sm:$0xff] }
 0x152   : > { %2894 = vmatpush.bf16.msrb.mxu1 %v4544_v15  ;;  %v4585_v15 = vld [vmem:[%s5959_s3 + $0x278] sm:$0xff]  ;;  %v4592_v36 = vld [vmem:[%s5959_s3 + $0x2b0] sm:$0xff] }
 0x153   : > { %2907 = vmatpush.bf16.msrb.mxu2 %v4552_v18  ;;  %v1427_v39 = vpop.f32.mrf.mxu3  ;;  %4678 = vpow2.f32 %v1636_v35  ;;  %v1619_v45 = vmin.f32 %v5538_v38, 0.0  ;;  %vm1602_vm2 = vcmp.gt.f32.partialorder %v5538_v38, 0.0  ;;  %v1705_v18 = vld [vmem:[%s5958_s2 + $0x18] sm:$0xff]  ;;  %v4566_v35 = vld [vmem:[%s5959_s3 + $0x1e0] sm:$0xff] }
 0x154   : > { %2920 = vmatpush.bf16.msrb.mxu3 %v4560_v23  ;;  %v5547_v42 = vadd.f32 %v1427_v39, %v5506_v21  ;;  %v1403_v46 = vpop.f32.mrf.mxu1  ;;  %4680 = vpow2.f32 %v1634_v44  ;;  %v4565_v44 = vld [vmem:[%s5959_s3 + $0x1d8] sm:$0xff] }
 0x155   : > { %2882 = vmatpush.bf16.msrb.mxu0 %v4535_v20  ;;  %v1638_v49 = vmul.f32 1.442695, %v1619_v45  ;;  %v4568_v20 = vld [vmem:[%s5959_s3 + $0x1f0] sm:$0xff]  ;;  %v4591_v45 = vld [vmem:[%s5959_s3 + $0x2a8] sm:$0xff] }
 0x156   : > { %2895 = vmatpush.bf16.msrb.mxu1 %v4543_v2  ;;  %v1620_v48 = vmin.f32 %v5547_v42, 0.0  ;;  %vm1603_vm3 = vcmp.gt.f32.partialorder %v5547_v42, 0.0 }
 0x157   : > { %2908 = vmatpush.bf16.msrb.mxu2 %v4551_v22  ;;  %4682 = vpow2.f32 %v1638_v49  ;;  %v4577_v22 = vld [vmem:[%s5959_s3 + $0x238] sm:$0xff] }
 0x158   : > { %2921 = vmatpush.bf16.msrb.mxu3 %v4559_v29  ;;  %v1640_v52 = vmul.f32 1.442695, %v1620_v48  ;;  %v1416_v57 = vpop.f32.mrf.mxu2 }
 0x159   : > { %2883 = vmatpush.bf16.msrb.mxu0 %v4534_v24  ;;  %v4679_v56 = vpop.eup %4678  ;;  %v4573_v57 = vld [vmem:[%s5959_s3 + $0x218] sm:$0xff] }
 0x15a   : > { %2896 = vmatpush.bf16.msrb.mxu1 %v4542_v26  ;;  %4684 = vpow2.f32 %v1640_v52  ;;  %v3803_v58 = vadd.f32 -1.0, %v4679_v56  ;;  %v4681_v63 = vpop.eup %4680  ;;  %v4554_v26 = vld [vmem:[%s5959_s3 + $0x180] sm:$0xff]  ;;  %v4564_v52 = vld [vmem:[%s5959_s3 + $0x1d0] sm:$0xff] }
 0x15b   : > { %2909 = vmatpush.bf16.msrb.mxu2 %v4550_v28  ;;  %v1429_v60 = vpop.f32.mrf.mxu3  ;;  %v3802_v5 = vadd.f32 -1.0, %v4681_v63  ;;  %v4584_v28 = vld [vmem:[%s5959_s3 + $0x270] sm:$0xff]  ;;  %v4589_v63 = vld [vmem:[%s5959_s3 + $0x298] sm:$0xff] }
 0x15c   : > { %2922 = vmatpush.bf16.msrb.mxu3 %v4558_v41  ;;  %v1686_v0 = vsel %vm1601_vm0, %v1402_v27, %v3803_v58 }
 0x15d   : > { %2884 = vmatpush.bf16.msrb.mxu0 %v4533_v32  ;;  %v1720_v4 = vmul.f32 %v1703_v59, %v1686_v0  ;;  %v4683_v7 = vpop.eup %4682  ;;  %v1685_v12 = vsel %vm1600_vm1, %v5531_v33, %v3802_v5  ;;  %v4576_v33 = vld [vmem:[%s5959_s3 + $0x230] sm:$0xff]  ;;  %vm3068_vm1 = vcmask 64512  }
 0x15e   : > { %2897 = vmatpush.bf16.msrb.mxu1 %v4541_v34  ;;  %v3804_v13 = vadd.f32 -1.0, %v4683_v7  ;;  %v1719_v16 = vmul.f32 %v1702_v6, %v1685_v12  ;;  %v4583_v34 = vld [vmem:[%s5959_s3 + $0x268] sm:$0xff]  ;;  %v1706_v7 = vld [vmem:[%s5958_s2 + $0x20] sm:$0xff] }
 0x15f   : > { %2910 = vmatpush.bf16.msrb.mxu2 %v4549_v40  ;;  %v1737_v11 = vpack.c.bf16 %v1720_v4, %v1720_v4 }
 0x160   : > { %2923 = vmatpush.bf16.msrb.mxu3 %v4557_v51  ;;  %v4685_v10 = vpop.eup %4684  ;;  %v1687_v2 = vsel %vm1602_vm2, %v5538_v38, %v3804_v13  ;;  %v1736_v23 = vpack.c.bf16 %v1719_v16, %v1719_v16  ;;  %v4575_v38 = vld [vmem:[%s5959_s3 + $0x228] sm:$0xff]  ;;  %v4588_v13 = vld [vmem:[%s5959_s3 + $0x290] sm:$0xff] }
 0x161   : > { %2885 = vmatpush.bf16.msrb.mxu0 %v4532_v43  ;;  %v3805_v17 = vadd.f32 -1.0, %v4685_v10  ;;  %2862 = vmatmul.bf16.vlgmr.msra.gmra.mxu2 %v1737_v11  ;;  %v1721_v24 = vmul.f32 %v1704_v14, %v1687_v2  ;;  %v1707_v10 = vld [vmem:[%s5958_s2 + $0x28] sm:$0xff]  ;;  %v4562_v11 = vld [vmem:[%s5959_s3 + $0x1c0] sm:$0xff] }
 0x162   : > { %2898 = vmatpush.bf16.msrb.mxu1 %v4540_v47  ;;  %v4574_v47 = vld [vmem:[%s5959_s3 + $0x220] sm:$0xff] }
 0x163   : > { %2911 = vmatpush.bf16.msrb.mxu2 %v4548_v50  ;;  %v1688_v25 = vsel %vm1603_vm3, %v5547_v42, %v3805_v17  ;;  %v1738_v29 = vpack.c.bf16 %v1721_v24, %v1721_v24  ;;  %2849 = vmatmul.bf16.vlgmr.msra.gmra.mxu1 %v1736_v23  ;;  %v4582_v42 = vld [vmem:[%s5959_s3 + $0x260] sm:$0xff]  ;;  %v4581_v50 = vld [vmem:[%s5959_s3 + $0x258] sm:$0xff]  ;;  %v4571_v17 = vld [vmem:[%s5959_s3 + $0x208] sm:$0xff]  ;;  %vm3154_vm3 = vcmask 517120  }
 0x164   : > { %2924 = vmatpush.bf16.msrb.mxu3 %v4556_v19  ;;  %v1722_v27 = vmul.f32 %v1705_v18, %v1688_v25  ;;  %v4578_v23 = vld [vmem:[%s5959_s3 + $0x240] sm:$0xff]  ;;  %v4587_v24 = vld [vmem:[%s5959_s3 + $0x288] sm:$0xff] }
 0x165   : > { %2886 = vmatpush.bf16.msrb.mxu0 %v4531_v53  ;;  %2875 = vmatmul.bf16.vlgmr.msra.gmra.mxu3 %v1738_v29  ;;  %v4590_v53 = vld [vmem:[%s5959_s3 + $0x2a0] sm:$0xff] }
 0x166   : > { %2899 = vmatpush.bf16.msrb.mxu1 %v4539_v55  ;;  %v1739_v32 = vpack.c.bf16 %v1722_v27, %v1722_v27  ;;  %v4600_v27 = vld [vmem:[%s5959_s3 + $0x2f0] sm:$0xff] }
 0x167   : > { %2912 = vmatpush.bf16.msrb.mxu2 %v4547_v61  ;;  %v4580_v61 = vld [vmem:[%s5959_s3 + $0x250] sm:$0xff] }
 0x168   : > { %2925 = vmatpush.bf16.msrb.mxu3 %v4555_v9 }
 0x169   : > { %2887 = vmatpush.bf16.msrb.mxu0 %v4530_v62  ;;  %v1440_v37 = vpop.f32.mrf.mxu0  ;;  %v4563_v62 = vld [vmem:[%s5959_s3 + $0x1c8] sm:$0xff] }
 0x16a   : > { %2900 = vmatpush.bf16.msrb.mxu1 %v4538_v3  ;;  %v1441_v39 = vadd.f32 %v1440_v37, %v5506_v21  ;;  %v1453_v40 = vpop.f32.mrf.mxu1  ;;  %v4586_v37 = vld [vmem:[%s5959_s3 + $0x280] sm:$0xff] }
 0x16b   : > { %2913 = vmatpush.bf16.msrb.mxu2 %v4546_v8  ;;  %v5649_v41 = vadd.f32 %v1453_v40, %v5506_v21  ;;  %v4579_v8 = vld [vmem:[%s5959_s3 + $0x248] sm:$0xff] }
 0x16c   : > { %2926 = vmatpush.bf16.msrb.mxu3 %v4554_v26  ;;  %2888 = vmatmul.bf16.vlgmr.msrb.gmra.mxu0 %v1739_v32  ;;  %v1621_v43 = vmin.f32 %v1441_v39, 0.0  ;;  %vm1604_vm4 = vcmp.gt.f32.partialorder %v1441_v39, 0.0  ;;  %v4609_v32 = vld [vmem:[%s5959_s3 + $0x338] sm:$0xff]  ;;  %v4599_v40 = vld [vmem:[%s5959_s3 + $0x2e8] sm:$0xff] }
 0x16d   : > { %2932 = vmatpush.bf16.msra.mxu0 %v4569_v1  ;;  %v1622_v46 = vmin.f32 %v5649_v41, 0.0  ;;  %v4572_v1 = vld [vmem:[%s5959_s3 + $0x210] sm:$0xff]  ;;  %vm1605_vm5 = vcmp.gt.f32.partialorder %v5649_v41, 0.0 }
 0x16e   : > { %2945 = vmatpush.bf16.msra.mxu1 %v4577_v22  ;;  %v1642_v48 = vmul.f32 1.442695, %v1621_v43 }
 0x16f   : > { %2958 = vmatpush.bf16.msra.mxu2 %v4585_v15  ;;  %v1644_v49 = vmul.f32 1.442695, %v1622_v46  ;;  %v4601_v15 = vld [vmem:[%s5959_s3 + $0x2f8] sm:$0xff] }
 0x170   : > { %2971 = vmatpush.bf16.msra.mxu3 %v4593_v31  ;;  %4686 = vpow2.f32 %v1642_v48  ;;  %v1708_v31 = vld [vmem:[%s5958_s2 + $0x30] sm:$0xff]  ;;  %v4607_v48 = vld [vmem:[%s5959_s3 + $0x328] sm:$0xff] }
 0x171   : > { %2933 = vmatpush.bf16.msra.mxu0 %v4568_v20  ;;  %4688 = vpow2.f32 %v1644_v49  ;;  %v1442_v56 = vpop.f32.mrf.mxu0 }
 0x172   : > { %2946 = vmatpush.bf16.msra.mxu1 %v4576_v33  ;;  %v1466_v51 = vpop.f32.mrf.mxu2  ;;  %v1455_v59 = vpop.f32.mrf.mxu1  ;;  %v4617_v33 = vld [vmem:[%s5959_s3 + $0x378] sm:$0xff] }
 0x173   : > { %2959 = vmatpush.bf16.msra.mxu2 %v4584_v28  ;;  %v5674_v54 = vadd.f32 %v1466_v51, %v5506_v21  ;;  %v1479_v55 = vpop.f32.mrf.mxu3  ;;  %v4570_v28 = vld [vmem:[%s5959_s3 + $0x200] sm:$0xff]  ;;  %v4624_v51 = vld [vmem:[%s5959_s3 + $0x3b0] sm:$0xff] }
 0x174   : > { %2972 = vmatpush.bf16.msra.mxu3 %v4592_v36  ;;  %v5680_v58 = vadd.f32 %v1479_v55, %v5506_v21  ;;  %v4597_v55 = vld [vmem:[%s5959_s3 + $0x2d8] sm:$0xff]  ;;  %v4614_v59 = vld [vmem:[%s5959_s3 + $0x360] sm:$0xff] }
 0x175   : > { %2934 = vmatpush.bf16.msra.mxu0 %v4567_v30  ;;  %v1623_v60 = vmin.f32 %v5674_v54, 0.0  ;;  %vm1606_vm6 = vcmp.gt.f32.partialorder %v5674_v54, 0.0 }
 0x176   : > { %2947 = vmatpush.bf16.msra.mxu1 %v4575_v38  ;;  %v1624_v19 = vmin.f32 %v5680_v58, 0.0  ;;  %v4687_v3 = vpop.eup %4686  ;;  %vm1607_vm7 = vcmp.gt.f32.partialorder %v5680_v58, 0.0 }
 0x177   : > { %2960 = vmatpush.bf16.msra.mxu2 %v4583_v34  ;;  %v1646_v0 = vmul.f32 1.442695, %v1623_v60  ;;  %v4689_v5 = vpop.eup %4688  ;;  %v3806_v6 = vadd.f32 -1.0, %v4687_v3  ;;  %v4623_v60 = vld [vmem:[%s5959_s3 + $0x3a8] sm:$0xff] }
 0x178   : > { %2973 = vmatpush.bf16.msra.mxu3 %v4591_v45  ;;  %v1648_v4 = vmul.f32 1.442695, %v1624_v19  ;;  %v3807_v9 = vadd.f32 -1.0, %v4689_v5  ;;  %v4625_v45 = vld [vmem:[%s5959_s3 + $0x3b8] sm:$0xff] }
 0x179   : > { %2935 = vmatpush.bf16.msra.mxu0 %v4566_v35  ;;  %4690 = vpow2.f32 %v1646_v0  ;;  %v1689_v14 = vsel %vm1604_vm4, %v1441_v39, %v3806_v6  ;;  %v1709_v35 = vld [vmem:[%s5958_s2 + $0x38] sm:$0xff]  ;;  %v4622_v6 = vld [vmem:[%s5959_s3 + $0x3a0] sm:$0xff] }
 0x17a   : > { %2948 = vmatpush.bf16.msra.mxu1 %v4574_v47  ;;  %4692 = vpow2.f32 %v1648_v4  ;;  %v1468_v12 = vpop.f32.mrf.mxu2  ;;  %v1723_v18 = vmul.f32 %v1706_v7, %v1689_v14  ;;  %v1690_v20 = vsel %vm1605_vm5, %v5649_v41, %v3807_v9  ;;  %v4598_v47 = vld [vmem:[%s5959_s3 + $0x2e0] sm:$0xff]  ;;  %v4605_v0 = vld [vmem:[%s5959_s3 + $0x318] sm:$0xff]  ;;  %v4612_v14 = vld [vmem:[%s5959_s3 + $0x350] sm:$0xff] }
 0x17b   : > { %2961 = vmatpush.bf16.msra.mxu2 %v4582_v42  ;;  %v1481_v16 = vpop.f32.mrf.mxu3  ;;  %v1724_v2 = vmul.f32 %v1707_v10, %v1690_v20  ;;  %v4608_v42 = vld [vmem:[%s5959_s3 + $0x330] sm:$0xff]  ;;  %v4613_v5 = vld [vmem:[%s5959_s3 + $0x358] sm:$0xff]  ;;  %v4595_v10 = vld [vmem:[%s5959_s3 + $0x2c8] sm:$0xff] }
 0x17c   : > { %2974 = vmatpush.bf16.msra.mxu3 %v4590_v53  ;;  %v1740_v22 = vpack.c.bf16 %v1723_v18, %v1723_v18  ;;  %v4604_v12 = vld [vmem:[%s5959_s3 + $0x310] sm:$0xff] }
 0x17d   : > { %2936 = vmatpush.bf16.msra.mxu0 %v4565_v44  ;;  %v1741_v26 = vpack.c.bf16 %v1724_v2, %v1724_v2  ;;  %v4616_v44 = vld [vmem:[%s5959_s3 + $0x370] sm:$0xff]  ;;  %v1710_v2 = vld [vmem:[%s5958_s2 + $0x40] sm:$0xff] }
 0x17e   : > { %2949 = vmatpush.bf16.msra.mxu1 %v4573_v57  ;;  %v4606_v57 = vld [vmem:[%s5959_s3 + $0x320] sm:$0xff] }
 0x17f   : > { %2962 = vmatpush.bf16.msra.mxu2 %v4581_v50  ;;  %v4691_v25 = vpop.eup %4690  ;;  %2901 = vmatmul.bf16.vlgmr.msrb.gmra.mxu1 %v1740_v22  ;;  %v4615_v50 = vld [vmem:[%s5959_s3 + $0x368] sm:$0xff]  ;;  %v4594_v22 = vld [vmem:[%s5959_s3 + $0x2c0] sm:$0xff] }
 0x180   : > { %2975 = vmatpush.bf16.msra.mxu3 %v4589_v63  ;;  %v4693_v29 = vpop.eup %4692  ;;  %v3808_v30 = vadd.f32 -1.0, %v4691_v25  ;;  %2914 = vmatmul.bf16.vlgmr.msrb.gmra.mxu2 %v1741_v26  ;;  %v4633_v25 = vld [vmem:[%s5959_s3 + $0x3f8] sm:$0xff] }
 0x181   : > { %2937 = vmatpush.bf16.msra.mxu0 %v4564_v52  ;;  %v3809_v34 = vadd.f32 -1.0, %v4693_v29 }
 0x182   : > { %2950 = vmatpush.bf16.msra.mxu1 %v4572_v1  ;;  %v1691_v36 = vsel %vm1606_vm6, %v5674_v54, %v3808_v30  ;;  %v4611_v30 = vld [vmem:[%s5959_s3 + $0x348] sm:$0xff] }
 0x183   : > { %2963 = vmatpush.bf16.msra.mxu2 %v4580_v61  ;;  %v1725_v38 = vmul.f32 %v1708_v31, %v1691_v36  ;;  %v1692_v39 = vsel %vm1607_vm7, %v5680_v58, %v3809_v34  ;;  %v4620_v31 = vld [vmem:[%s5959_s3 + $0x390] sm:$0xff] }
 0x184   : > { %2976 = vmatpush.bf16.msra.mxu3 %v4588_v13  ;;  %v1726_v41 = vmul.f32 %v1709_v35, %v1692_v39  ;;  %v4632_v36 = vld [vmem:[%s5959_s3 + $0x3f0] sm:$0xff] }
 0x185   : > { %2938 = vmatpush.bf16.msra.mxu0 %v4563_v62  ;;  %v1742_v43 = vpack.c.bf16 %v1725_v38, %v1725_v38  ;;  %v4596_v62 = vld [vmem:[%s5959_s3 + $0x2d0] sm:$0xff] }
 0x186   : > { %2951 = vmatpush.bf16.msra.mxu1 %v4571_v17  ;;  %v1743_v46 = vpack.c.bf16 %v1726_v41, %v1726_v41  ;;  %v4641_v41 = vld [vmem:[%s5959_s3 + $0x438] sm:$0xff] }
 0x187   : > { %2964 = vmatpush.bf16.msra.mxu2 %v4579_v8  ;;  %2927 = vmatmul.bf16.vlgmr.msrb.gmra.mxu3 %v1742_v43 }
 0x188   : > { %2977 = vmatpush.bf16.msra.mxu3 %v4587_v24  ;;  %v1711_v24 = vld [vmem:[%s5958_s2 + $0x48] sm:$0xff] }
 0x189   : > { %2939 = vmatpush.bf16.msra.mxu0 %v4562_v11  ;;  %v1492_v49 = vpop.f32.mrf.mxu0 }
 0x18a   : > { %2952 = vmatpush.bf16.msra.mxu1 %v4570_v28  ;;  %v1493_v52 = vadd.f32 %v1492_v49, %v5506_v21  ;;  %v1505_v53 = vpop.f32.mrf.mxu1  ;;  %v4631_v49 = vld [vmem:[%s5959_s3 + $0x3e8] sm:$0xff] }
 0x18b   : > { %2965 = vmatpush.bf16.msra.mxu2 %v4578_v23  ;;  %v5776_v54 = vadd.f32 %v1505_v53, %v5506_v21 }
 0x18c   : > { %2978 = vmatpush.bf16.msra.mxu3 %v4586_v37  ;;  %2940 = vmatmul.bf16.vlgmr.msra.gmra.mxu0 %v1743_v46  ;;  %v1625_v56 = vmin.f32 %v1493_v52, 0.0  ;;  %vm1608_vm8 = vcmp.gt.f32.partialorder %v1493_v52, 0.0  ;;  %v4602_v37 = vld [vmem:[%s5959_s3 + $0x300] sm:$0xff] }
 0x18d   : > { %2984 = vmatpush.bf16.msrb.mxu0 %v4601_v15  ;;  %v1626_v58 = vmin.f32 %v5776_v54, 0.0  ;;  %v4621_v15 = vld [vmem:[%s5959_s3 + $0x398] sm:$0xff]  ;;  %vm1609_vm9 = vcmp.gt.f32.partialorder %v5776_v54, 0.0 }
 0x18e   : > { %2997 = vmatpush.bf16.msrb.mxu1 %v4609_v32  ;;  %v1650_v61 = vmul.f32 1.442695, %v1625_v56 }
 0x18f   : > { %3010 = vmatpush.bf16.msrb.mxu2 %v4617_v33  ;;  %v1652_v19 = vmul.f32 1.442695, %v1626_v58  ;;  %v4639_v58 = vld [vmem:[%s5959_s3 + $0x428] sm:$0xff] }
 0x190   : > { %3023 = vmatpush.bf16.msrb.mxu3 %v4625_v45  ;;  %4694 = vpow2.f32 %v1650_v61  ;;  %v4619_v45 = vld [vmem:[%s5959_s3 + $0x388] sm:$0xff] }
 0x191   : > { %2985 = vmatpush.bf16.msrb.mxu0 %v4600_v27  ;;  %4696 = vpow2.f32 %v1652_v19  ;;  %v1494_v4 = vpop.f32.mrf.mxu0  ;;  %v4603_v27 = vld [vmem:[%s5959_s3 + $0x308] sm:$0xff] }
 0x192   : > { %2998 = vmatpush.bf16.msrb.mxu1 %v4608_v42  ;;  %v1518_v63 = vpop.f32.mrf.mxu2  ;;  %v1507_v8 = vpop.f32.mrf.mxu1 }
 0x193   : > { %3011 = vmatpush.bf16.msrb.mxu2 %v4616_v44  ;;  %v5798_v1 = vadd.f32 %v1518_v63, %v5506_v21  ;;  %v1531_v3 = vpop.f32.mrf.mxu3  ;;  %v1712_v44 = vld [vmem:[%s5958_s2 + $0x50] sm:$0xff] }
 0x194   : > { %3024 = vmatpush.bf16.msrb.mxu3 %v4624_v51  ;;  %v5807_v7 = vadd.f32 %v1531_v3, %v5506_v21 }
 0x195   : > { %2986 = vmatpush.bf16.msrb.mxu0 %v4599_v40  ;;  %v1627_v9 = vmin.f32 %v5798_v1, 0.0  ;;  %v4610_v40 = vld [vmem:[%s5959_s3 + $0x340] sm:$0xff]  ;;  %vm1610_vm10 = vcmp.gt.f32.partialorder %v5798_v1, 0.0 }
 0x196   : > { %2999 = vmatpush.bf16.msrb.mxu1 %v4607_v48  ;;  %v1628_v11 = vmin.f32 %v5807_v7, 0.0  ;;  %v4695_v16 = vpop.eup %4694  ;;  %vm1611_vm11 = vcmp.gt.f32.partialorder %v5807_v7, 0.0 }
 0x197   : > { %3012 = vmatpush.bf16.msrb.mxu2 %v4615_v50  ;;  %v1654_v13 = vmul.f32 1.442695, %v1627_v9  ;;  %v4697_v18 = vpop.eup %4696  ;;  %v3810_v20 = vadd.f32 -1.0, %v4695_v16  ;;  %v4636_v16 = vld [vmem:[%s5959_s3 + $0x410] sm:$0xff] }
 0x198   : > { %3025 = vmatpush.bf16.msrb.mxu3 %v4623_v60  ;;  %v1656_v17 = vmul.f32 1.442695, %v1628_v11  ;;  %v3811_v23 = vadd.f32 -1.0, %v4697_v18 }
 0x199   : > { %2987 = vmatpush.bf16.msrb.mxu0 %v4598_v47  ;;  %4698 = vpow2.f32 %v1654_v13  ;;  %v1693_v28 = vsel %vm1608_vm8, %v1493_v52, %v3810_v20  ;;  %v1713_v47 = vld [vmem:[%s5958_s2 + $0x58] sm:$0xff]  ;;  %v4640_v52 = vld [vmem:[%s5959_s3 + $0x430] sm:$0xff] }
 0x19a   : > { %3000 = vmatpush.bf16.msrb.mxu1 %v4606_v57  ;;  %4700 = vpow2.f32 %v1656_v17  ;;  %v1520_v26 = vpop.f32.mrf.mxu2  ;;  %v1727_v32 = vmul.f32 %v1710_v2, %v1693_v28  ;;  %v1694_v33 = vsel %vm1609_vm9, %v5776_v54, %v3811_v23  ;;  %v4618_v54 = vld [vmem:[%s5959_s3 + $0x380] sm:$0xff]  ;;  %v4635_v28 = vld [vmem:[%s5959_s3 + $0x408] sm:$0xff] }
 0x19b   : > { %3013 = vmatpush.bf16.msrb.mxu2 %v4614_v59  ;;  %v1533_v29 = vpop.f32.mrf.mxu3  ;;  %v1728_v34 = vmul.f32 %v1711_v24, %v1694_v33  ;;  %v4630_v57 = vld [vmem:[%s5959_s3 + $0x3e0] sm:$0xff]  ;;  %v1715_v26 = vld [vmem:[%s5958_s2 + $0x68] sm:$0xff] }
 0x19c   : > { %3026 = vmatpush.bf16.msrb.mxu3 %v4622_v6  ;;  %v1744_v35 = vpack.c.bf16 %v1727_v32, %v1727_v32  ;;  %v1714_v23 = vld [vmem:[%s5958_s2 + $0x60] sm:$0xff] }
 0x19d   : > { %2988 = vmatpush.bf16.msrb.mxu0 %v4597_v55  ;;  %v1745_v39 = vpack.c.bf16 %v1728_v34, %v1728_v34  ;;  %v4626_v24 = vld [vmem:[%s5959_s3 + $0x3c0] sm:$0xff] }
 0x19e   : > { %3001 = vmatpush.bf16.msrb.mxu1 %v4605_v0  ;;  %v4638_v0 = vld [vmem:[%s5959_s3 + $0x420] sm:$0xff] }
 0x19f   : > { %3014 = vmatpush.bf16.msrb.mxu2 %v4613_v5  ;;  %v4699_v38 = vpop.eup %4698  ;;  %2953 = vmatmul.bf16.vlgmr.msra.gmra.mxu1 %v1744_v35  ;;  %v4628_v5 = vld [vmem:[%s5959_s3 + $0x3d0] sm:$0xff]  ;;  %v4634_v35 = vld [vmem:[%s5959_s3 + $0x400] sm:$0xff] }
 0x1a0   : > { %3027 = vmatpush.bf16.msrb.mxu3 %v4621_v15  ;;  %v4701_v42 = vpop.eup %4700  ;;  %v3812_v43 = vadd.f32 -1.0, %v4699_v38  ;;  %2966 = vmatmul.bf16.vlgmr.msra.gmra.mxu2 %v1745_v39 }
 0x1a1   : > { %2989 = vmatpush.bf16.msrb.mxu0 %v4596_v62  ;;  %v3813_v46 = vadd.f32 -1.0, %v4701_v42  ;;  %v4629_v62 = vld [vmem:[%s5959_s3 + $0x3d8] sm:$0xff] }
 0x1a2   : > { %3002 = vmatpush.bf16.msrb.mxu1 %v4604_v12  ;;  %v1695_v48 = vsel %vm1610_vm10, %v5798_v1, %v3812_v43  ;;  %v1717_v42 = vld [vmem:[%s5958_s2 + $0x78] sm:$0xff] }
 0x1a3   : > { %3015 = vmatpush.bf16.msrb.mxu2 %v4612_v14  ;;  %v1729_v50 = vmul.f32 %v1712_v44, %v1695_v48  ;;  %v1696_v51 = vsel %vm1611_vm11, %v5807_v7, %v3813_v46  ;;  %v4637_v7 = vld [vmem:[%s5959_s3 + $0x418] sm:$0xff]  ;;  %v4627_v14 = vld [vmem:[%s5959_s3 + $0x3c8] sm:$0xff] }
 0x1a4   : > { %3028 = vmatpush.bf16.msrb.mxu3 %v4620_v31  ;;  %v1730_v53 = vmul.f32 %v1713_v47, %v1696_v51 }
 0x1a5   : > { %2990 = vmatpush.bf16.msrb.mxu0 %v4595_v10  ;;  %v1746_v55 = vpack.c.bf16 %v1729_v50, %v1729_v50 }
 0x1a6   : > { %3003 = vmatpush.bf16.msrb.mxu1 %v4603_v27  ;;  %v1747_v56 = vpack.c.bf16 %v1730_v53, %v1730_v53 }
 0x1a7   : > { %3016 = vmatpush.bf16.msrb.mxu2 %v4611_v30  ;;  %2979 = vmatmul.bf16.vlgmr.msra.gmra.mxu3 %v1746_v55 }
 0x1a8   : > { %3029 = vmatpush.bf16.msrb.mxu3 %v4619_v45 }
 0x1a9   : > { %2991 = vmatpush.bf16.msrb.mxu0 %v4594_v22  ;;  %v1544_v59 = vpop.f32.mrf.mxu0 }
 0x1aa   : > { %3004 = vmatpush.bf16.msrb.mxu1 %v4602_v37  ;;  %v1545_v60 = vadd.f32 %v1544_v59, %v5506_v21  ;;  %v1557_v61 = vpop.f32.mrf.mxu1 }
 0x1ab   : > { %3017 = vmatpush.bf16.msrb.mxu2 %v4610_v40  ;;  %v1558_v19 = vadd.f32 %v1557_v61, %v5506_v21  ;;  %v1716_v40 = vld [vmem:[%s5958_s2 + $0x70] sm:$0xff] }
 0x1ac   : > { %2992 = vmatmul.bf16.vlgmr.msrb.gmra.mxu0 %v1747_v56  ;;  %3030 = vmatpush.bf16.msrb.mxu3 %v4618_v54  ;;  %v1629_v63 = vmin.f32 %v1545_v60, 0.0  ;;  %vm1612_vm12 = vcmp.gt.f32.partialorder %v1545_v60, 0.0  ;;  %v1718_v56 = vld [vmem:[%s5958_s2 + $0x80] sm:$0xff] }
 0x1ad   : > { %3036 = vmatpush.bf16.msra.mxu0 %v4633_v25  ;;  %v1630_v1 = vmin.f32 %v1558_v19, 0.0  ;;  %vm1613_vm13 = vcmp.gt.f32.partialorder %v1558_v19, 0.0 }
 0x1ae   : > { %3049 = vmatpush.bf16.msra.mxu1 %v4641_v41  ;;  %v1658_v3 = vmul.f32 1.442695, %v1629_v63 }
 0x1af   : > { %v1660_v4 = vmul.f32 1.442695, %v1630_v1 }
 0x1b0   : > { %4702 = vpow2.f32 %v1658_v3 }
 0x1b1   : > { %3037 = vmatpush.bf16.msra.mxu0 %v4632_v36  ;;  %v1570_v6 = vpop.f32.mrf.mxu2  ;;  %4704 = vpow2.f32 %v1660_v4  ;;  %v1546_v10 = vpop.f32.mrf.mxu0 }
 0x1b2   : > { %3050 = vmatpush.bf16.msra.mxu1 %v4640_v52  ;;  %v1571_v8 = vadd.f32 %v1570_v6, %v5506_v21  ;;  %v1583_v9 = vpop.f32.mrf.mxu3  ;;  %v1559_v12 = vpop.f32.mrf.mxu1 }
 0x1b3   : > { %v1584_v11 = vadd.f32 %v1583_v9, %v5506_v21 }
 0x1b4   : > { %v1631_v13 = vmin.f32 %v1571_v8, 0.0  ;;  %vm1614_vm14 = vcmp.gt.f32.partialorder %v1571_v8, 0.0 }
 0x1b5   : > { %3038 = vmatpush.bf16.msra.mxu0 %v4631_v49  ;;  %v1632_v15 = vmin.f32 %v1584_v11, 0.0  ;;  %vm1615_vm15 = vcmp.gt.f32.partialorder %v1584_v11, 0.0 }
 0x1b6   : > { %3051 = vmatpush.bf16.msra.mxu1 %v4639_v58  ;;  %v1662_v17 = vmul.f32 1.442695, %v1631_v13  ;;  %v4703_v18 = vpop.eup %4702 }
 0x1b7   : > { %v1664_v20 = vmul.f32 1.442695, %v1632_v15  ;;  %v4705_v2 = vpop.eup %4704  ;;  %v3814_v22 = vadd.f32 -1.0, %v4703_v18 }
 0x1b8   : > { %4706 = vpow2.f32 %v1662_v17  ;;  %v3815_v25 = vadd.f32 -1.0, %v4705_v2 }
 0x1b9   : > { %3039 = vmatpush.bf16.msra.mxu0 %v4630_v57  ;;  %4708 = vpow2.f32 %v1664_v20  ;;  %v1572_v27 = vpop.f32.mrf.mxu2  ;;  %v1697_v29 = vsel %vm1612_vm12, %v1545_v60, %v3814_v22 }
 0x1ba   : > { %3052 = vmatpush.bf16.msra.mxu1 %v4638_v0  ;;  %v1585_v30 = vpop.f32.mrf.mxu3  ;;  %v1731_v31 = vmul.f32 %v1714_v23, %v1697_v29  ;;  %v1698_v32 = vsel %vm1613_vm13, %v1558_v19, %v3815_v25 }
 0x1bb   : > { %v1732_v33 = vmul.f32 %v1715_v26, %v1698_v32 }
 0x1bc   : > { %v1748_v34 = vpack.c.bf16 %v1731_v31, %v1731_v31  ;;  %v4714_v31 = vld [vmem:[%s5960_s4] sm:$0xff] }
 0x1bd   : > { %3040 = vmatpush.bf16.msra.mxu0 %v4629_v62  ;;  %v1749_v37 = vpack.c.bf16 %v1732_v33, %v1732_v33  ;;  %3097 = vrot.lane.b32.xlu2 %v4714_v31, %s4742_s30 }
 0x1be   : > { %3053 = vmatpush.bf16.msra.mxu1 %v4637_v7  ;;  %v4707_v36 = vpop.eup %4706 }
 0x1bf   : > { %v4709_v38 = vpop.eup %4708  ;;  %v3816_v39 = vadd.f32 -1.0, %v4707_v36  ;;  %3005 = vmatmul.bf16.vlgmr.msrb.gmra.mxu1 %v1748_v34  ;;  %3018 = vmatmul.bf16.vlgmr.msrb.gmra.mxu2 %v1749_v37 }
 0x1c0   : > { %v3817_v41 = vadd.f32 -1.0, %v4709_v38 }
 0x1c1   : > { %3041 = vmatpush.bf16.msra.mxu0 %v4628_v5  ;;  %v1699_v43 = vsel %vm1614_vm14, %v1571_v8, %v3816_v39 }
 0x1c2   : > { %3054 = vmatpush.bf16.msra.mxu1 %v4636_v16  ;;  %v1733_v44 = vmul.f32 %v1716_v40, %v1699_v43  ;;  %v1700_v45 = vsel %vm1615_vm15, %v1584_v11, %v3817_v41 }
 0x1c3   : > { %v1734_v46 = vmul.f32 %v1717_v42, %v1700_v45 }
 0x1c4   : > { %v1750_v47 = vpack.c.bf16 %v1733_v44, %v1733_v44 }
 0x1c5   : > { %3042 = vmatpush.bf16.msra.mxu0 %v4627_v14  ;;  %v1751_v48 = vpack.c.bf16 %v1734_v46, %v1734_v46  ;;  %3125 = vrot.lane.b32.xlu2 %v4714_v31, %s4743_s6 }
 0x1c6   : > { %3055 = vmatpush.bf16.msra.mxu1 %v4635_v28  ;;  %3031 = vmatmul.bf16.vlgmr.msrb.gmra.mxu3 %v1750_v47  ;;  %v4741_v28 = vmov 9   ;;  %v3067_v47 = vpop.permute.xlu0 %3066 }
 0x1c7   : > { %4676 = vset.pattern.permute.xlu1 %v4741_v28 }
 0x1c8   : > { %3063 = vperm.xlu1 %4676, %v4714_v31  }
 0x1c9   : > { %3043 = vmatpush.bf16.msra.mxu0 %v4626_v24  ;;  %v1596_v49 = vpop.f32.mrf.mxu0 }
 0x1ca   : > { %3056 = vmatpush.bf16.msra.mxu1 %v4634_v35  ;;  %v1597_v50 = vadd.f32 %v1596_v49, %v5506_v21 }
 0x1cc   : > { %3044 = vmatmul.bf16.vlgmr.msra.gmra.mxu0 %v1751_v48  ;;  %v1633_v51 = vmin.f32 %v1597_v50, 0.0  ;;  %vm1616_vm0 = vcmp.gt.f32.partialorder %v1597_v50, 0.0 }
 0x1ce   : > { %v1666_v52 = vmul.f32 1.442695, %v1633_v51 }
 0x1d0   : > { %4710 = vpow2.f32 %v1666_v52 }
 0x1d1   : > { %v1598_v53 = vpop.f32.mrf.mxu0 }
 0x1d6   : > { %v4711_v54 = vpop.eup %4710 }
 0x1d7   : > { %v3818_v55 = vadd.f32 -1.0, %v4711_v54 }
 0x1d9   : > { %v1701_v57 = vsel %vm1616_vm0, %v1597_v50, %v3818_v55 }
 0x1da   : > { %v1735_v58 = vmul.f32 %v1718_v56, %v1701_v57 }
 0x1dc   : > { %v1752_v59 = vpack.c.bf16 %v1735_v58, %v1735_v58 }
 0x1de   : > { %3057 = vmatmul.bf16.vlgmr.msra.gmra.mxu1 %v1752_v59  ;;  %v4745_v59 = vmov 26  }
 0x1df   : > { %4677 = vset.pattern.permute.xlu0 %v4745_v59 }
 0x1e0   : > { %v2850_v60 = vpop.f32.mrf.mxu1  ;;  %3150 = vperm.xlu0 %4677, %v4714_v31  }
 0x1e4   : > { %v2863_v19 = vpop.f32.mrf.mxu2 }
 0x1e5   : > { %v2864_v62 = vadd.f32 %v2863_v19, %v2850_v60 }
 0x1e8   : > { %v2876_v21 = vpop.f32.mrf.mxu3  ;;  %v2852_v63 = vpop.f32.mrf.mxu1 }
 0x1e9   : > { %v2889_v61 = vpop.f32.mrf.mxu0  ;;  %v2877_v0 = vadd.f32 %v2876_v21, %v2864_v62 }
 0x1eb   : > { %v2890_v4 = vadd.f32 %v2889_v61, %v2877_v0 }
 0x1ec   : > { %v2865_v3 = vpop.f32.mrf.mxu2 }
 0x1f0   : > { %v2878_v5 = vpop.f32.mrf.mxu3 }
 0x1f1   : > { %v2891_v1 = vpop.f32.mrf.mxu0 }
 0x1fc   : > { %v2902_v6 = vpop.f32.mrf.mxu1 }
 0x1fd   : > { %v2903_v7 = vadd.f32 %v2902_v6, %v2890_v4 }
 0x203   : > { %v2915_v8 = vpop.f32.mrf.mxu2 }
 0x204   : > { %v2904_v10 = vpop.f32.mrf.mxu1  ;;  %v2916_v25 = vadd.f32 %v2915_v8, %v2903_v7 }
 0x209   : > { %v2941_v9 = vpop.f32.mrf.mxu0 }
 0x20a   : > { %v2928_v11 = vpop.f32.mrf.mxu3 }
 0x20b   : > { %v2917_v12 = vpop.f32.mrf.mxu2  ;;  %v2929_v26 = vadd.f32 %v2928_v11, %v2916_v25 }
 0x20d   : > { %v2942_v32 = vadd.f32 %v2941_v9, %v2929_v26 }
 0x211   : > { %v2943_v13 = vpop.f32.mrf.mxu0 }
 0x212   : > { %v2930_v14 = vpop.f32.mrf.mxu3 }
 0x217   : > { %v3098_v57 = vpop.permute.xlu2 %3097 }
 0x21c   : > { %v2954_v15 = vpop.f32.mrf.mxu1 }
 0x21d   : > { %v2955_v33 = vadd.f32 %v2954_v15, %v2942_v32 }
 0x21f   : > { %v3126_v58 = vpop.permute.xlu2 %3125 }
 0x223   : > { %v2967_v16 = vpop.f32.mrf.mxu2 }
 0x224   : > { %v2956_v18 = vpop.f32.mrf.mxu1  ;;  %v2968_v34 = vadd.f32 %v2967_v16, %v2955_v33 }
 0x229   : > { %v2993_v17 = vpop.f32.mrf.mxu0 }
 0x22a   : > { %v2980_v20 = vpop.f32.mrf.mxu3 }
 0x22b   : > { %v2969_v2 = vpop.f32.mrf.mxu2  ;;  %v2981_v36 = vadd.f32 %v2980_v20, %v2968_v34 }
 0x22d   : > { %v2994_v39 = vadd.f32 %v2993_v17, %v2981_v36 }
 0x231   : > { %v2995_v22 = vpop.f32.mrf.mxu0 }
 0x232   : > { %v2982_v23 = vpop.f32.mrf.mxu3 }
 0x23a   : > { %v3064_v49 = vpop.permute.xlu1 %3063 }
 0x23c   : > { %v3006_v24 = vpop.f32.mrf.mxu1 }
 0x23d   : > { %v3007_v40 = vadd.f32 %v3006_v24, %v2994_v39 }
 0x242   : > { %v3019_v27 = vpop.f32.mrf.mxu2 }
 0x243   : > { %v3020_v42 = vadd.f32 %v3019_v27, %v3007_v40 }
 0x244   : > { %v3008_v30 = vpop.f32.mrf.mxu1 }
 0x249   : > { %v3045_v29 = vpop.f32.mrf.mxu0  ;;  %v3032_v35 = vpop.f32.mrf.mxu3 }
 0x24a   : > { %v3021_v37 = vpop.f32.mrf.mxu2  ;;  %v3033_v43 = vadd.f32 %v3032_v35, %v3020_v42 }
 0x24c   : > { %v3046_v44 = vadd.f32 %v3045_v29, %v3033_v43 }
 0x251   : > { %v3047_v38 = vpop.f32.mrf.mxu0  ;;  %v3034_v41 = vpop.f32.mrf.mxu3 }
 0x252   : > { %v3151_v62 = vpop.permute.xlu0 %3150 }
 0x25b   : > { %v3058_v45 = vpop.f32.mrf.mxu1 }
 0x25c   : > { %v3059_v46 = vadd.f32 %v3058_v45, %v3046_v44 }
 0x25e   : > { %3086 = vmatpush.msra.mxu2 %v3059_v46 }
 0x25f   : > { %4363 = vmatmul.msk.f32.vlgmr.msra.gmra.mxu2 %vm3068_vm1, %v3067_v47 }
 0x263   : > { %v3060_v48 = vpop.f32.mrf.mxu1 }
 0x2e2   : > { %v3088_v50 = vpop.f32.mrf.mxu2 }
 0x2e3   : > { %v3089_v51 = vadd.f32 %v3088_v50, %v3064_v49 }
 0x2e5   : > { %v3092_v52 = vmin.f32 %v3089_v51, 0.0  ;;  %vm3091_vm2 = vcmp.gt.f32.partialorder %v3089_v51, 0.0 }
 0x2e7   : > { %v3093_v53 = vmul.f32 1.442695, %v3092_v52 }
 0x2e9   : > { %4712 = vpow2.f32 %v3093_v53 }
 0x2ef   : > { %v4713_v54 = vpop.eup %4712 }
 0x2f0   : > { %v4364_v55 = vadd.f32 -1.0, %v4713_v54 }
 0x2f2   : > { %v3096_v56 = vsel %vm3091_vm2, %v3089_v51, %v4364_v55 }
 0x2f3   : > { %3100 = vrot.lane.b32.xlu1 %v3096_v56, %s4744_s7  ;;  %3144 = vmatpush.msrb.mxu2 %v3096_v56 }
 0x2f4   : > { %4366 = vmatmul.msk.f32.vlgmr.msrb.gmra.mxu2 %vm3068_vm1, %v3126_v58 }
 0x365   : > { %v3101_v60 = vpop.permute.xlu1 %3100 }
 0x366   : > { %3120 = vmatpush.msra.mxu3 %v3101_v60 }
 0x367   : > { %4365 = vmatmul.msk.f32.vlgmr.msra.gmra.mxu3 %vm3068_vm1, %v3098_v57 }
 0x377   : > { %v3146_v61 = vpop.f32.mrf.mxu2 }
 0x3ea   : > { %v3122_v19 = vpop.f32.mrf.mxu3 }
 0x3eb   : > { %v3147_v21 = vadd.f32 %v3146_v61, %v3122_v19 }
 0x3ed   : > { %v3153_v63 = vadd.f32 %v3151_v62, %v3147_v21 }
 0x3ef   : > { %3155 = vst.msk [vmem:[%s539_s12] sm:$0x3] %vm3154_vm3, %v3153_v63 }
 0x3f0 PF: > { %p12_p9 = scmp.ge.s32.totalorder %s4793_s22, 4   ;;  %s5962_s18 = smov %s4733_s19 }
 0x3f1   : > { %s5963_s19 = smov %s4802_s25  ;;  %s5964_s20 = smov %s4793_s22 }
 0x3f2   :  { %14 = sbr.rel (!%p12_p9) target bundleno = 2 (0x2), region = 107 }

</bundles_post_ra>
